<compile_context>
chip_gen: v5e
topology: v5e:2x2
jax: 0.10.0
libtpu: 0.0.40
codegen_flags: <defaults>
</compile_context>

<pallas_src>
import functools

import jax
import jax.numpy as jnp
from jax import lax
from jax.experimental import pallas as pl
from jax.experimental.pallas import tpu as pltpu


def _round_up(x, m):
    return (x + m - 1) // m * m


# ----------------------------------------------------------------------------
# Kernel
# ----------------------------------------------------------------------------
def _lstm_bidir_fc_kernel(xf_ref,        # (chunk*Bp, E)  forward-order chunk (bf16)
                          xb_ref,        # (chunk*Bp, E)  time-reversed chunk (bf16)
                          wih_f_ref,     # (E, 8*Hp)      fwd input weights, fused gate layout
                          wih_b_ref,     # (E, 8*Hp)      bwd input weights, fused gate layout
                          whh_ref,       # (2*Hp, 8*Hp)   block-diag recurrent weights (both dirs)
                          b_ref,         # (1, 8*Hp)      b_ih + b_hh, both dirs (f32)
                          wfc_ref,       # (2*Hp, O)      fc weights for [h_f | h_b]
                          bfc_ref,       # (1, O)
                          out_ref,       # (Bp, O)
                          h_ref, c_ref,  # (Bp, 2*Hp) f32 carries (persist across chunks)
                          gx_ref,        # (chunk*Bp, 8*Hp) bf16 fused input projections
                          *, chunk, Bp, Hp):
    k = pl.program_id(0)
    nc = pl.num_programs(0)
    Hp2 = 2 * Hp

    @pl.when(k == 0)
    def _init():
        h_ref[...] = jnp.zeros_like(h_ref)
        c_ref[...] = jnp.zeros_like(c_ref)

    # --- Hoisted input projections for this chunk, both directions fused into
    # --- a single slab (fwd/bwd gate columns are disjoint -> sum never mixes).
    gx = (jnp.dot(xf_ref[...], wih_f_ref[...], preferred_element_type=jnp.float32)
          + jnp.dot(xb_ref[...], wih_b_ref[...], preferred_element_type=jnp.float32)
          + b_ref[...])
    gx_ref[...] = gx.astype(gx_ref.dtype)          # round once to bf16 on store

    # --- Serial recurrence: one fused MXU matmul per step. ---------------------
    whh = whh_ref[...]                              # (2Hp, 8Hp) bf16, hoisted

    def step(t, carry):
        h, c = carry                                # (Bp, 2Hp) f32
        row = pl.multiple_of(t * Bp, Bp)            # tile-aligned: Bp % 16 == 0
        gx_t = gx_ref[pl.ds(row, Bp), :].astype(jnp.float32)     # (Bp, 8Hp)
        gates = jnp.dot(h.astype(whh.dtype), whh,
                        preferred_element_type=jnp.float32) + gx_t
        # Lane-aligned whole-vreg gate slices (each 2*Hp = 256 lanes).
        i = jax.nn.sigmoid(gates[:, 0 * Hp2:1 * Hp2])
        f = jax.nn.sigmoid(gates[:, 1 * Hp2:2 * Hp2])
        g = jnp.tanh(gates[:, 2 * Hp2:3 * Hp2])
        o = jax.nn.sigmoid(gates[:, 3 * Hp2:4 * Hp2])
        c_new = f * c + i * g
        h_new = o * jnp.tanh(c_new)
        return h_new, c_new

    h, c = lax.fori_loop(0, chunk, step, (h_ref[...], c_ref[...]), unroll=4)
    h_ref[...] = h
    c_ref[...] = c

    # --- Final chunk: fc(cat([h_fwd, h_bwd])) as a single matmul. --------------
    @pl.when(k == nc - 1)
    def _final():
        out_ref[...] = (jnp.dot(h.astype(wfc_ref.dtype), wfc_ref[...],
                                preferred_element_type=jnp.float32)
                        + bfc_ref[...]).astype(out_ref.dtype)


# ----------------------------------------------------------------------------
# Parameter preparation: fused, lane-aligned, bf16 weight layouts
# ----------------------------------------------------------------------------
def prepare_kernel_params(params, matmul_dtype=jnp.bfloat16):
    """Build padded/fused weight layouts consumed by the kernel.

    Fused gate column layout (width 8*Hp):
        [i_f, i_b, f_f, f_b, g_f, g_b, o_f, o_b], each block Hp=round_up(H,128)
    so that h_cat / c_cat = [fwd Hp | bwd Hp] line up with every gate slice.
    """
    E = params["wih_f"].shape[0]
    H = params["whh_f"].shape[0]
    O = params["bfc"].shape[-1]
    Hp = _round_up(H, 128)

    def place_gates(w, direction):
        # w: (rows, 4H), PyTorch gate order (i, f, g, o) -> (rows, 8*Hp)
        rows = w.shape[0]
        out = jnp.zeros((rows, 8 * Hp), jnp.float32)
        for g in range(4):
            c0 = g * 2 * Hp + direction * Hp
            out = out.at[:, c0:c0 + H].set(w[:, g * H:(g + 1) * H])
        return out

    wih_f_wide = place_gates(params["wih_f"], 0)
    wih_b_wide = place_gates(params["wih_b"], 1)

    whh = jnp.zeros((2 * Hp, 8 * Hp), jnp.float32)
    whh = whh.at[0:H, :].set(place_gates(params["whh_f"], 0))
    whh = whh.at[Hp:Hp + H, :].set(place_gates(params["whh_b"], 1))

    b_cat = place_gates(params["b_f"], 0) + place_gates(params["b_b"], 1)

    wfc = jnp.zeros((2 * Hp, O), jnp.float32)
    wfc = wfc.at[0:H, :].set(params["wfc_f"])
    wfc = wfc.at[Hp:Hp + H, :].set(params["wfc_b"])

    md = matmul_dtype
    return dict(
        embedding=params["embedding"].astype(md),      # gather directly in bf16
        wih_f=wih_f_wide.astype(md), wih_b=wih_b_wide.astype(md),
        whh=whh.astype(md), b=b_cat.astype(jnp.float32),
        wfc=wfc.astype(md), bfc=params["bfc"].astype(jnp.float32),
        E=E, H=H, Hp=Hp, O=O, matmul_dtype=md)


# ----------------------------------------------------------------------------
# VMEM budgeting
# ----------------------------------------------------------------------------
def _vmem_bytes_estimate(chunk, Bp, E, Hp, O):
    bf16, f32 = 2, 4
    gx = chunk * Bp * 8 * Hp * bf16                      # fused gx slab (bf16)
    x_stream = 2 * 2 * chunk * Bp * E * bf16             # 2 dirs, double-buffered
    weights = 2 * ((2 * E + 2 * Hp) * 8 * Hp * bf16      # wih_f + wih_b + whh
                   + 2 * Hp * max(O, 128) * bf16)        # wfc (dbl-buffered)
    biases = (8 * Hp + 128) * f32 * 2
    carries = 2 * Bp * 2 * Hp * f32
    return gx + x_stream + weights + biases + carries


def _pick_chunk(T, Bp, E, Hp, O, budget_bytes):
    best = 1
    for c in range(1, T + 1):
        if T % c == 0 and _vmem_bytes_estimate(c, Bp, E, Hp, O) <= budget_bytes:
            best = c
    return best


# ----------------------------------------------------------------------------
# Wrapper
# ----------------------------------------------------------------------------
def lstm_classifier_forward(X, kparams, *, chunk=None,
                            vmem_budget_bytes=40 * 1024 * 1024):
    """X: (T, B) int32 token ids (time-major, PyTorch nn.LSTM default)."""
    T, B = X.shape
    E, Hp, O = kparams["E"], kparams["Hp"], kparams["O"]

    # Batch padded to the bf16 sublane tile so every per-step gx slice is a
    # whole-tile read inside the serial recurrence.
    Bp = _round_up(B, 16)

    if chunk is None:
        chunk = _pick_chunk(T, Bp, E, Hp, O, vmem_budget_bytes)
    assert T % chunk == 0, "chunk must divide seq_len"
    nc = T // chunk

    # Embedding lookup is a gather -> JAX glue (done directly in bf16, no f32
    # round trip); recurrence + FC run in-kernel.
    emb = kparams["embedding"][X]                               # (T, B, E) bf16
    emb = jnp.pad(emb, ((0, 0), (0, Bp - B), (0, 0)))           # (T, Bp, E)
    emb_f = emb.reshape(nc, chunk * Bp, E)
    emb_b = jnp.flip(emb, axis=0).reshape(nc, chunk * Bp, E)    # time-reversed

    kernel = functools.partial(_lstm_bidir_fc_kernel, chunk=chunk, Bp=Bp, Hp=Hp)

    grid_spec = pltpu.PrefetchScalarGridSpec(
        num_scalar_prefetch=0,
        grid=(nc,),
        in_specs=[
            pl.BlockSpec((pl.Squeezed(), chunk * Bp, E), lambda k: (k, 0, 0)),
            pl.BlockSpec((pl.Squeezed(), chunk * Bp, E), lambda k: (k, 0, 0)),
            pl.BlockSpec((E, 8 * Hp), lambda k: (0, 0)),
            pl.BlockSpec((E, 8 * Hp), lambda k: (0, 0)),
            pl.BlockSpec((2 * Hp, 8 * Hp), lambda k: (0, 0)),
            pl.BlockSpec((1, 8 * Hp), lambda k: (0, 0)),
            pl.BlockSpec((2 * Hp, O), lambda k: (0, 0)),
            pl.BlockSpec((1, O), lambda k: (0, 0)),
        ],
        out_specs=pl.BlockSpec((Bp, O), lambda k: (0, 0)),
        scratch_shapes=[
            pltpu.VMEM((Bp, 2 * Hp), jnp.float32),              # h_cat carry
            pltpu.VMEM((Bp, 2 * Hp), jnp.float32),              # c_cat carry
            pltpu.VMEM((chunk * Bp, 8 * Hp), jnp.bfloat16),     # fused gx slab
        ],
    )

    vmem_limit = int(min(128 * 1024 * 1024,
                         max(32 * 1024 * 1024,
                             2 * _vmem_bytes_estimate(chunk, Bp, E, Hp, O))))

    out = pl.pallas_call(
        kernel,
        out_shape=jax.ShapeDtypeStruct((Bp, O), jnp.float32),
        grid_spec=grid_spec,
        compiler_params=pltpu.CompilerParams(
            dimension_semantics=("arbitrary",),        # chunk axis carries h/c
            vmem_limit_bytes=vmem_limit),
    )(emb_f, emb_b,
      kparams["wih_f"], kparams["wih_b"], kparams["whh"], kparams["b"],
      kparams["wfc"], kparams["bfc"])
    return out[:B]


# ----------------------------------------------------------------------------
# Init + reference (matches PyTorch LSTMClassifier(bidirectional=True) forward)
# ----------------------------------------------------------------------------
def init_params(key, vocab, E, H, O):
    ks = jax.random.split(key, 12)
    s = 1.0 / float(jnp.sqrt(jnp.float32(H)))

    def u(k, shape):
        return jax.random.uniform(k, shape, jnp.float32, -s, s)

    emb = jax.random.normal(ks[0], (vocab, E), jnp.float32)      # nn.Embedding ~ N(0,1)
    wih_f = u(ks[1], (E, 4 * H))
    whh_f = u(ks[2], (H, 4 * H))
    b_f = u(ks[3], (1, 4 * H)) + u(ks[4], (1, 4 * H))            # b_ih + b_hh
    wih_b = u(ks[5], (E, 4 * H))
    whh_b = u(ks[6], (H, 4 * H))
    b_b = u(ks[7], (1, 4 * H)) + u(ks[8], (1, 4 * H))
    wfc = u(ks[9], (2 * H, O))                                   # nn.Linear(2H, O)
    bfc = u(ks[10], (1, O))
    return dict(embedding=emb,
                wih_f=wih_f, whh_f=whh_f, b_f=b_f,
                wih_b=wih_b, whh_b=whh_b, b_b=b_b,
                wfc_f=wfc[:H], wfc_b=wfc[H:], bfc=bfc)


def reference_forward(X, params, matmul_dtype=jnp.bfloat16):
    """Pure-JAX reference (PyTorch semantics) with the kernel's precision
    policy: bf16 matmul operands, f32 accumulation, input-projection gates
    rounded once to bf16 (the kernel's gx slab dtype), f32 elementwise."""
    def mm(a, b):
        return jnp.dot(a.astype(matmul_dtype), b.astype(matmul_dtype),
                       preferred_element_type=jnp.float32)

    emb = params["embedding"][X].astype(jnp.float32)
    T, B, _ = emb.shape
    H = params["whh_f"].shape[0]

    def cell(x_t, h, c, wih, whh, b):
        gx = (mm(x_t, wih) + b).astype(jnp.bfloat16).astype(jnp.float32)
        gates = mm(h, whh) + gx
        i, f, g, o = jnp.split(gates, 4, axis=1)
        c = jax.nn.sigmoid(f) * c + jax.nn.sigmoid(i) * jnp.tanh(g)
        h = jax.nn.sigmoid(o) * jnp.tanh(c)
        return h, c

    h_f = c_f = h_b = c_b = jnp.zeros((B, H), jnp.float32)
    for t in range(T):
        h_f, c_f = cell(emb[t], h_f, c_f,
                        params["wih_f"], params["whh_f"], params["b_f"])
        h_b, c_b = cell(emb[T - 1 - t], h_b, c_b,
                        params["wih_b"], params["whh_b"], params["b_b"])
    return mm(h_f, params["wfc_f"]) + mm(h_b, params["wfc_b"]) + params["bfc"]


if __name__ == "__main__":
    vocab, E, H, O = 50, 16, 32, 5
    T, B = 8, 2                     # seq_len, batch

    key = jax.random.PRNGKey(0)
    k_params, k_x = jax.random.split(key)
    params = init_params(k_params, vocab, E, H, O)
    X = jax.random.randint(k_x, (T, B), 0, vocab, dtype=jnp.int32)

    kparams = prepare_kernel_params(params, matmul_dtype=jnp.bfloat16)

    # chunk=4 -> 2 grid steps over the time axis (exercises the chunked carry).
    out = lstm_classifier_forward(X, kparams, chunk=4)
    out = jax.block_until_ready(out)

    ref = reference_forward(X, params, matmul_dtype=jnp.bfloat16)
    assert out.shape == (B, O), out.shape
    assert jnp.allclose(out, ref, atol=2e-3, rtol=2e-3), (out, ref)
    print("KERNEL_OK")
</pallas_src>

<mosaic_0001>
module attributes {stable_mosaic.version = 11 : i64} {
  func.func @_lstm_bidir_fc_kernel(%arg0: i32, %arg1: memref<1x64x16xbf16, #tpu.memory_space<vmem>>, %arg2: memref<1x64x16xbf16, #tpu.memory_space<vmem>>, %arg3: memref<16x1024xbf16, #tpu.memory_space<vmem>>, %arg4: memref<16x1024xbf16, #tpu.memory_space<vmem>>, %arg5: memref<256x1024xbf16, #tpu.memory_space<vmem>>, %arg6: memref<1x1024xf32, #tpu.memory_space<vmem>>, %arg7: memref<256x5xbf16, #tpu.memory_space<vmem>>, %arg8: memref<1x5xf32, #tpu.memory_space<vmem>>, %arg9: memref<16x5xf32, #tpu.memory_space<vmem>>, %arg10: memref<16x256xf32, #tpu.memory_space<vmem>>, %arg11: memref<16x256xf32, #tpu.memory_space<vmem>>, %arg12: memref<64x1024xbf16, #tpu.memory_space<vmem>>) attributes {dimension_semantics = [#tpu.dimension_semantics<arbitrary>], iteration_bounds = array<i64: 2>, scalar_prefetch = 0 : i64, scratch_operands = 3 : i64, tpu.core_type = #tpu.core_type<tc>, window_params = [{transform_indices = @transform_0, window_bounds = array<i64: 1, 64, 16>}, {transform_indices = @transform_1, window_bounds = array<i64: 1, 64, 16>}, {pipeline_mode = #tpu.pipeline_mode<synchronous>, transform_indices = @transform_2, window_bounds = array<i64: 16, 1024>}, {pipeline_mode = #tpu.pipeline_mode<synchronous>, transform_indices = @transform_3, window_bounds = array<i64: 16, 1024>}, {pipeline_mode = #tpu.pipeline_mode<synchronous>, transform_indices = @transform_4, window_bounds = array<i64: 256, 1024>}, {pipeline_mode = #tpu.pipeline_mode<synchronous>, transform_indices = @transform_5, window_bounds = array<i64: 1, 1024>}, {pipeline_mode = #tpu.pipeline_mode<synchronous>, transform_indices = @transform_6, window_bounds = array<i64: 256, 5>}, {pipeline_mode = #tpu.pipeline_mode<synchronous>, transform_indices = @transform_7, window_bounds = array<i64: 1, 5>}, {pipeline_mode = #tpu.pipeline_mode<synchronous>, transform_indices = @transform_8, window_bounds = array<i64: 16, 5>}]} {
    %c0_i32 = arith.constant 0 : i32
    %0 = arith.cmpi eq, %arg0, %c0_i32 : i32
    %1 = arith.extui %0 : i1 to i32
    %c0_i32_0 = arith.constant 0 : i32
    %2 = arith.cmpi ne, %1, %c0_i32_0 : i32
    scf.if %2 {
      %cst_51 = arith.constant 0.000000e+00 : f32
      %157 = vector.broadcast %cst_51 : f32 to vector<16x256xf32>
      %c0_52 = arith.constant 0 : index
      %c0_53 = arith.constant 0 : index
      %158 = vector.load %arg10[%c0_52, %c0_53] : memref<16x256xf32, #tpu.memory_space<vmem>>, vector<16x256xf32>
      tpu.vector_store %arg10[%c0_52, %c0_53], %157 {strides = array<i32>} : memref<16x256xf32, #tpu.memory_space<vmem>>, vector<16x256xf32>,
      %cst_54 = arith.constant 0.000000e+00 : f32
      %159 = vector.broadcast %cst_54 : f32 to vector<16x256xf32>
      %c0_55 = arith.constant 0 : index
      %c0_56 = arith.constant 0 : index
      %160 = vector.load %arg11[%c0_55, %c0_56] : memref<16x256xf32, #tpu.memory_space<vmem>>, vector<16x256xf32>
      tpu.vector_store %arg11[%c0_55, %c0_56], %159 {strides = array<i32>} : memref<16x256xf32, #tpu.memory_space<vmem>>, vector<16x256xf32>,
    } else {
    }
    %c0 = arith.constant 0 : index
    %c0_1 = arith.constant 0 : index
    %c0_2 = arith.constant 0 : index
    %3 = vector.load %arg1[%c0, %c0_1, %c0_2] : memref<1x64x16xbf16, #tpu.memory_space<vmem>>, vector<1x64x16xbf16>
    %4 = vector.shape_cast %3 : vector<1x64x16xbf16> to vector<64x16xbf16>
    %c0_3 = arith.constant 0 : index
    %c0_4 = arith.constant 0 : index
    %5 = vector.load %arg3[%c0_3, %c0_4] : memref<16x1024xbf16, #tpu.memory_space<vmem>>, vector<16x1024xbf16>
    %cst = arith.constant dense<0.000000e+00> : vector<64x1024xf32>
    %6 = tpu.matmul %4, %5, %cst {dimension_numbers = #tpu.dot_dimension_numbers<[1], [0], [0], [1], [0, 0, 1, 1], [], []>} : vector<64x16xbf16>, vector<16x1024xbf16>, vector<64x1024xf32> -> vector<64x1024xf32>
    %c0_5 = arith.constant 0 : index
    %c0_6 = arith.constant 0 : index
    %c0_7 = arith.constant 0 : index
    %7 = vector.load %arg2[%c0_5, %c0_6, %c0_7] : memref<1x64x16xbf16, #tpu.memory_space<vmem>>, vector<1x64x16xbf16>
    %8 = vector.shape_cast %7 : vector<1x64x16xbf16> to vector<64x16xbf16>
    %c0_8 = arith.constant 0 : index
    %c0_9 = arith.constant 0 : index
    %9 = vector.load %arg4[%c0_8, %c0_9] : memref<16x1024xbf16, #tpu.memory_space<vmem>>, vector<16x1024xbf16>
    %cst_10 = arith.constant dense<0.000000e+00> : vector<64x1024xf32>
    %10 = tpu.matmul %8, %9, %cst_10 {dimension_numbers = #tpu.dot_dimension_numbers<[1], [0], [0], [1], [0, 0, 1, 1], [], []>} : vector<64x16xbf16>, vector<16x1024xbf16>, vector<64x1024xf32> -> vector<64x1024xf32>
    %11 = arith.addf %6, %10 : vector<64x1024xf32>
    %c0_11 = arith.constant 0 : index
    %c0_12 = arith.constant 0 : index
    %12 = vector.load %arg6[%c0_11, %c0_12] : memref<1x1024xf32, #tpu.memory_space<vmem>>, vector<1x1024xf32>
    %13 = vector.broadcast %12 : vector<1x1024xf32> to vector<64x1024xf32>
    %14 = arith.addf %11, %13 : vector<64x1024xf32>
    %15 = arith.truncf %14 : vector<64x1024xf32> to vector<64x1024xbf16>
    %c0_13 = arith.constant 0 : index
    %c0_14 = arith.constant 0 : index
    %16 = vector.load %arg12[%c0_13, %c0_14] : memref<64x1024xbf16, #tpu.memory_space<vmem>>, vector<64x1024xbf16>
    tpu.vector_store %arg12[%c0_13, %c0_14], %15 {strides = array<i32>} : memref<64x1024xbf16, #tpu.memory_space<vmem>>, vector<64x1024xbf16>,
    %c0_15 = arith.constant 0 : index
    %c0_16 = arith.constant 0 : index
    %17 = vector.load %arg5[%c0_15, %c0_16] : memref<256x1024xbf16, #tpu.memory_space<vmem>>, vector<256x1024xbf16>
    %c0_17 = arith.constant 0 : index
    %c0_18 = arith.constant 0 : index
    %18 = vector.load %arg10[%c0_17, %c0_18] : memref<16x256xf32, #tpu.memory_space<vmem>>, vector<16x256xf32>
    %c0_19 = arith.constant 0 : index
    %c0_20 = arith.constant 0 : index
    %19 = vector.load %arg11[%c0_19, %c0_20] : memref<16x256xf32, #tpu.memory_space<vmem>>, vector<16x256xf32>
    %c0_i32_21 = arith.constant 0 : i32
    %c16_i32 = arith.constant 16 : i32
    %20 = arith.muli %c0_i32_21, %c16_i32 : i32
    %21 = tpu.assume_multiple %20, 16 : i32
    %22 = arith.index_cast %21 : i32 to index
    %c0_22 = arith.constant 0 : index
    %23 = vector.load %arg12[%22, %c0_22] : memref<64x1024xbf16, #tpu.memory_space<vmem>>, vector<16x1024xbf16>
    %24 = arith.extf %23 : vector<16x1024xbf16> to vector<16x1024xf32>
    %25 = arith.truncf %18 : vector<16x256xf32> to vector<16x256xbf16>
    %cst_23 = arith.constant dense<0.000000e+00> : vector<16x1024xf32>
    %26 = tpu.matmul %25, %17, %cst_23 {dimension_numbers = #tpu.dot_dimension_numbers<[1], [0], [0], [1], [0, 0, 1, 1], [], []>} : vector<16x256xbf16>, vector<256x1024xbf16>, vector<16x1024xf32> -> vector<16x1024xf32>
    %27 = arith.addf %26, %24 : vector<16x1024xf32>
    %28 = vector.extract_strided_slice %27 {offsets = [0, 0], sizes = [16, 256], strides = [1, 1]} : vector<16x1024xf32> to vector<16x256xf32>
    %29 = arith.negf %28 : vector<16x256xf32>
    %30 = math.exp %29 : vector<16x256xf32>
    %cst_24 = arith.constant 1.000000e+00 : f32
    %31 = vector.broadcast %cst_24 : f32 to vector<16x256xf32>
    %32 = arith.addf %31, %30 : vector<16x256xf32>
    %33 = arith.divf %31, %32 : vector<16x256xf32>
    %34 = vector.extract_strided_slice %27 {offsets = [0, 256], sizes = [16, 256], strides = [1, 1]} : vector<16x1024xf32> to vector<16x256xf32>
    %35 = arith.negf %34 : vector<16x256xf32>
    %36 = math.exp %35 : vector<16x256xf32>
    %cst_25 = arith.constant 1.000000e+00 : f32
    %37 = vector.broadcast %cst_25 : f32 to vector<16x256xf32>
    %38 = arith.addf %37, %36 : vector<16x256xf32>
    %39 = arith.divf %37, %38 : vector<16x256xf32>
    %40 = vector.extract_strided_slice %27 {offsets = [0, 512], sizes = [16, 256], strides = [1, 1]} : vector<16x1024xf32> to vector<16x256xf32>
    %41 = math.tanh %40 : vector<16x256xf32>
    %42 = vector.extract_strided_slice %27 {offsets = [0, 768], sizes = [16, 256], strides = [1, 1]} : vector<16x1024xf32> to vector<16x256xf32>
    %43 = arith.negf %42 : vector<16x256xf32>
    %44 = math.exp %43 : vector<16x256xf32>
    %cst_26 = arith.constant 1.000000e+00 : f32
    %45 = vector.broadcast %cst_26 : f32 to vector<16x256xf32>
    %46 = arith.addf %45, %44 : vector<16x256xf32>
    %47 = arith.divf %45, %46 : vector<16x256xf32>
    %48 = arith.mulf %39, %19 : vector<16x256xf32>
    %49 = arith.mulf %33, %41 : vector<16x256xf32>
    %50 = arith.addf %48, %49 : vector<16x256xf32>
    %51 = math.tanh %50 : vector<16x256xf32>
    %52 = arith.mulf %47, %51 : vector<16x256xf32>
    %c1_i32 = arith.constant 1 : i32
    %c16_i32_27 = arith.constant 16 : i32
    %53 = arith.muli %c1_i32, %c16_i32_27 : i32
    %54 = tpu.assume_multiple %53, 16 : i32
    %55 = arith.index_cast %54 : i32 to index
    %c0_28 = arith.constant 0 : index
    %56 = vector.load %arg12[%55, %c0_28] : memref<64x1024xbf16, #tpu.memory_space<vmem>>, vector<16x1024xbf16>
    %57 = arith.extf %56 : vector<16x1024xbf16> to vector<16x1024xf32>
    %58 = arith.truncf %52 : vector<16x256xf32> to vector<16x256xbf16>
    %cst_29 = arith.constant dense<0.000000e+00> : vector<16x1024xf32>
    %59 = tpu.matmul %58, %17, %cst_29 {dimension_numbers = #tpu.dot_dimension_numbers<[1], [0], [0], [1], [0, 0, 1, 1], [], []>} : vector<16x256xbf16>, vector<256x1024xbf16>, vector<16x1024xf32> -> vector<16x1024xf32>
    %60 = arith.addf %59, %57 : vector<16x1024xf32>
    %61 = vector.extract_strided_slice %60 {offsets = [0, 0], sizes = [16, 256], strides = [1, 1]} : vector<16x1024xf32> to vector<16x256xf32>
    %62 = arith.negf %61 : vector<16x256xf32>
    %63 = math.exp %62 : vector<16x256xf32>
    %cst_30 = arith.constant 1.000000e+00 : f32
    %64 = vector.broadcast %cst_30 : f32 to vector<16x256xf32>
    %65 = arith.addf %64, %63 : vector<16x256xf32>
    %66 = arith.divf %64, %65 : vector<16x256xf32>
    %67 = vector.extract_strided_slice %60 {offsets = [0, 256], sizes = [16, 256], strides = [1, 1]} : vector<16x1024xf32> to vector<16x256xf32>
    %68 = arith.negf %67 : vector<16x256xf32>
    %69 = math.exp %68 : vector<16x256xf32>
    %cst_31 = arith.constant 1.000000e+00 : f32
    %70 = vector.broadcast %cst_31 : f32 to vector<16x256xf32>
    %71 = arith.addf %70, %69 : vector<16x256xf32>
    %72 = arith.divf %70, %71 : vector<16x256xf32>
    %73 = vector.extract_strided_slice %60 {offsets = [0, 512], sizes = [16, 256], strides = [1, 1]} : vector<16x1024xf32> to vector<16x256xf32>
    %74 = math.tanh %73 : vector<16x256xf32>
    %75 = vector.extract_strided_slice %60 {offsets = [0, 768], sizes = [16, 256], strides = [1, 1]} : vector<16x1024xf32> to vector<16x256xf32>
    %76 = arith.negf %75 : vector<16x256xf32>
    %77 = math.exp %76 : vector<16x256xf32>
    %cst_32 = arith.constant 1.000000e+00 : f32
    %78 = vector.broadcast %cst_32 : f32 to vector<16x256xf32>
    %79 = arith.addf %78, %77 : vector<16x256xf32>
    %80 = arith.divf %78, %79 : vector<16x256xf32>
    %81 = arith.mulf %72, %50 : vector<16x256xf32>
    %82 = arith.mulf %66, %74 : vector<16x256xf32>
    %83 = arith.addf %81, %82 : vector<16x256xf32>
    %84 = math.tanh %83 : vector<16x256xf32>
    %85 = arith.mulf %80, %84 : vector<16x256xf32>
    %c2_i32 = arith.constant 2 : i32
    %c16_i32_33 = arith.constant 16 : i32
    %86 = arith.muli %c2_i32, %c16_i32_33 : i32
    %87 = tpu.assume_multiple %86, 16 : i32
    %88 = arith.index_cast %87 : i32 to index
    %c0_34 = arith.constant 0 : index
    %89 = vector.load %arg12[%88, %c0_34] : memref<64x1024xbf16, #tpu.memory_space<vmem>>, vector<16x1024xbf16>
    %90 = arith.extf %89 : vector<16x1024xbf16> to vector<16x1024xf32>
    %91 = arith.truncf %85 : vector<16x256xf32> to vector<16x256xbf16>
    %cst_35 = arith.constant dense<0.000000e+00> : vector<16x1024xf32>
    %92 = tpu.matmul %91, %17, %cst_35 {dimension_numbers = #tpu.dot_dimension_numbers<[1], [0], [0], [1], [0, 0, 1, 1], [], []>} : vector<16x256xbf16>, vector<256x1024xbf16>, vector<16x1024xf32> -> vector<16x1024xf32>
    %93 = arith.addf %92, %90 : vector<16x1024xf32>
    %94 = vector.extract_strided_slice %93 {offsets = [0, 0], sizes = [16, 256], strides = [1, 1]} : vector<16x1024xf32> to vector<16x256xf32>
    %95 = arith.negf %94 : vector<16x256xf32>
    %96 = math.exp %95 : vector<16x256xf32>
    %cst_36 = arith.constant 1.000000e+00 : f32
    %97 = vector.broadcast %cst_36 : f32 to vector<16x256xf32>
    %98 = arith.addf %97, %96 : vector<16x256xf32>
    %99 = arith.divf %97, %98 : vector<16x256xf32>
    %100 = vector.extract_strided_slice %93 {offsets = [0, 256], sizes = [16, 256], strides = [1, 1]} : vector<16x1024xf32> to vector<16x256xf32>
    %101 = arith.negf %100 : vector<16x256xf32>
    %102 = math.exp %101 : vector<16x256xf32>
    %cst_37 = arith.constant 1.000000e+00 : f32
    %103 = vector.broadcast %cst_37 : f32 to vector<16x256xf32>
    %104 = arith.addf %103, %102 : vector<16x256xf32>
    %105 = arith.divf %103, %104 : vector<16x256xf32>
    %106 = vector.extract_strided_slice %93 {offsets = [0, 512], sizes = [16, 256], strides = [1, 1]} : vector<16x1024xf32> to vector<16x256xf32>
    %107 = math.tanh %106 : vector<16x256xf32>
    %108 = vector.extract_strided_slice %93 {offsets = [0, 768], sizes = [16, 256], strides = [1, 1]} : vector<16x1024xf32> to vector<16x256xf32>
    %109 = arith.negf %108 : vector<16x256xf32>
    %110 = math.exp %109 : vector<16x256xf32>
    %cst_38 = arith.constant 1.000000e+00 : f32
    %111 = vector.broadcast %cst_38 : f32 to vector<16x256xf32>
    %112 = arith.addf %111, %110 : vector<16x256xf32>
    %113 = arith.divf %111, %112 : vector<16x256xf32>
    %114 = arith.mulf %105, %83 : vector<16x256xf32>
    %115 = arith.mulf %99, %107 : vector<16x256xf32>
    %116 = arith.addf %114, %115 : vector<16x256xf32>
    %117 = math.tanh %116 : vector<16x256xf32>
    %118 = arith.mulf %113, %117 : vector<16x256xf32>
    %c3_i32 = arith.constant 3 : i32
    %c16_i32_39 = arith.constant 16 : i32
    %119 = arith.muli %c3_i32, %c16_i32_39 : i32
    %120 = tpu.assume_multiple %119, 16 : i32
    %121 = arith.index_cast %120 : i32 to index
    %c0_40 = arith.constant 0 : index
    %122 = vector.load %arg12[%121, %c0_40] : memref<64x1024xbf16, #tpu.memory_space<vmem>>, vector<16x1024xbf16>
    %123 = arith.extf %122 : vector<16x1024xbf16> to vector<16x1024xf32>
    %124 = arith.truncf %118 : vector<16x256xf32> to vector<16x256xbf16>
    %cst_41 = arith.constant dense<0.000000e+00> : vector<16x1024xf32>
    %125 = tpu.matmul %124, %17, %cst_41 {dimension_numbers = #tpu.dot_dimension_numbers<[1], [0], [0], [1], [0, 0, 1, 1], [], []>} : vector<16x256xbf16>, vector<256x1024xbf16>, vector<16x1024xf32> -> vector<16x1024xf32>
    %126 = arith.addf %125, %123 : vector<16x1024xf32>
    %127 = vector.extract_strided_slice %126 {offsets = [0, 0], sizes = [16, 256], strides = [1, 1]} : vector<16x1024xf32> to vector<16x256xf32>
    %128 = arith.negf %127 : vector<16x256xf32>
    %129 = math.exp %128 : vector<16x256xf32>
    %cst_42 = arith.constant 1.000000e+00 : f32
    %130 = vector.broadcast %cst_42 : f32 to vector<16x256xf32>
    %131 = arith.addf %130, %129 : vector<16x256xf32>
    %132 = arith.divf %130, %131 : vector<16x256xf32>
    %133 = vector.extract_strided_slice %126 {offsets = [0, 256], sizes = [16, 256], strides = [1, 1]} : vector<16x1024xf32> to vector<16x256xf32>
    %134 = arith.negf %133 : vector<16x256xf32>
    %135 = math.exp %134 : vector<16x256xf32>
    %cst_43 = arith.constant 1.000000e+00 : f32
    %136 = vector.broadcast %cst_43 : f32 to vector<16x256xf32>
    %137 = arith.addf %136, %135 : vector<16x256xf32>
    %138 = arith.divf %136, %137 : vector<16x256xf32>
    %139 = vector.extract_strided_slice %126 {offsets = [0, 512], sizes = [16, 256], strides = [1, 1]} : vector<16x1024xf32> to vector<16x256xf32>
    %140 = math.tanh %139 : vector<16x256xf32>
    %141 = vector.extract_strided_slice %126 {offsets = [0, 768], sizes = [16, 256], strides = [1, 1]} : vector<16x1024xf32> to vector<16x256xf32>
    %142 = arith.negf %141 : vector<16x256xf32>
    %143 = math.exp %142 : vector<16x256xf32>
    %cst_44 = arith.constant 1.000000e+00 : f32
    %144 = vector.broadcast %cst_44 : f32 to vector<16x256xf32>
    %145 = arith.addf %144, %143 : vector<16x256xf32>
    %146 = arith.divf %144, %145 : vector<16x256xf32>
    %147 = arith.mulf %138, %116 : vector<16x256xf32>
    %148 = arith.mulf %132, %140 : vector<16x256xf32>
    %149 = arith.addf %147, %148 : vector<16x256xf32>
    %150 = math.tanh %149 : vector<16x256xf32>
    %151 = arith.mulf %146, %150 : vector<16x256xf32>
    %c4_i32 = arith.constant 4 : i32
    %c0_45 = arith.constant 0 : index
    %c0_46 = arith.constant 0 : index
    %152 = vector.load %arg10[%c0_45, %c0_46] : memref<16x256xf32, #tpu.memory_space<vmem>>, vector<16x256xf32>
    tpu.vector_store %arg10[%c0_45, %c0_46], %151 {strides = array<i32>} : memref<16x256xf32, #tpu.memory_space<vmem>>, vector<16x256xf32>,
    %c0_47 = arith.constant 0 : index
    %c0_48 = arith.constant 0 : index
    %153 = vector.load %arg11[%c0_47, %c0_48] : memref<16x256xf32, #tpu.memory_space<vmem>>, vector<16x256xf32>
    tpu.vector_store %arg11[%c0_47, %c0_48], %149 {strides = array<i32>} : memref<16x256xf32, #tpu.memory_space<vmem>>, vector<16x256xf32>,
    %c1_i32_49 = arith.constant 1 : i32
    %154 = arith.cmpi eq, %arg0, %c1_i32_49 : i32
    %155 = arith.extui %154 : i1 to i32
    %c0_i32_50 = arith.constant 0 : i32
    %156 = arith.cmpi ne, %155, %c0_i32_50 : i32
    scf.if %156 {
      %157 = arith.truncf %151 : vector<16x256xf32> to vector<16x256xbf16>
      %c0_51 = arith.constant 0 : index
      %c0_52 = arith.constant 0 : index
      %158 = vector.load %arg7[%c0_51, %c0_52] : memref<256x5xbf16, #tpu.memory_space<vmem>>, vector<256x5xbf16>
      %cst_53 = arith.constant dense<0.000000e+00> : vector<16x5xf32>
      %159 = tpu.matmul %157, %158, %cst_53 {dimension_numbers = #tpu.dot_dimension_numbers<[1], [0], [0], [1], [0, 0, 1, 1], [], []>} : vector<16x256xbf16>, vector<256x5xbf16>, vector<16x5xf32> -> vector<16x5xf32>
      %c0_54 = arith.constant 0 : index
      %c0_55 = arith.constant 0 : index
      %160 = vector.load %arg8[%c0_54, %c0_55] : memref<1x5xf32, #tpu.memory_space<vmem>>, vector<1x5xf32>
      %161 = vector.broadcast %160 : vector<1x5xf32> to vector<16x5xf32>
      %162 = arith.addf %159, %161 : vector<16x5xf32>
      %c0_56 = arith.constant 0 : index
      %c0_57 = arith.constant 0 : index
      %163 = vector.load %arg9[%c0_56, %c0_57] : memref<16x5xf32, #tpu.memory_space<vmem>>, vector<16x5xf32>
      tpu.vector_store %arg9[%c0_56, %c0_57], %162 {strides = array<i32>} : memref<16x5xf32, #tpu.memory_space<vmem>>, vector<16x5xf32>,
    } else {
    }
    return
  }
  func.func @transform_0(%arg0: i32) -> (i32, i32, i32) {
    %c0_i32 = arith.constant 0 : i32
    %c0_i32_0 = arith.constant 0 : i32
    %c0_i32_1 = arith.constant 0 : i32
    return %arg0, %c0_i32, %c0_i32_0 : i32, i32, i32
  }
  func.func @transform_1(%arg0: i32) -> (i32, i32, i32) {
    %c0_i32 = arith.constant 0 : i32
    %c0_i32_0 = arith.constant 0 : i32
    %c0_i32_1 = arith.constant 0 : i32
    return %arg0, %c0_i32, %c0_i32_0 : i32, i32, i32
  }
  func.func @transform_2(%arg0: i32) -> (i32, i32) {
    %c0_i32 = arith.constant 0 : i32
    %c0_i32_0 = arith.constant 0 : i32
    %c0_i32_1 = arith.constant 0 : i32
    return %c0_i32, %c0_i32_0 : i32, i32
  }
  func.func @transform_3(%arg0: i32) -> (i32, i32) {
    %c0_i32 = arith.constant 0 : i32
    %c0_i32_0 = arith.constant 0 : i32
    %c0_i32_1 = arith.constant 0 : i32
    return %c0_i32, %c0_i32_0 : i32, i32
  }
  func.func @transform_4(%arg0: i32) -> (i32, i32) {
    %c0_i32 = arith.constant 0 : i32
    %c0_i32_0 = arith.constant 0 : i32
    %c0_i32_1 = arith.constant 0 : i32
    return %c0_i32, %c0_i32_0 : i32, i32
  }
  func.func @transform_5(%arg0: i32) -> (i32, i32) {
    %c0_i32 = arith.constant 0 : i32
    %c0_i32_0 = arith.constant 0 : i32
    %c0_i32_1 = arith.constant 0 : i32
    return %c0_i32, %c0_i32_0 : i32, i32
  }
  func.func @transform_6(%arg0: i32) -> (i32, i32) {
    %c0_i32 = arith.constant 0 : i32
    %c0_i32_0 = arith.constant 0 : i32
    %c0_i32_1 = arith.constant 0 : i32
    return %c0_i32, %c0_i32_0 : i32, i32
  }
  func.func @transform_7(%arg0: i32) -> (i32, i32) {
    %c0_i32 = arith.constant 0 : i32
    %c0_i32_0 = arith.constant 0 : i32
    %c0_i32_1 = arith.constant 0 : i32
    return %c0_i32, %c0_i32_0 : i32, i32
  }
  func.func @transform_8(%arg0: i32) -> (i32, i32) {
    %c0_i32 = arith.constant 0 : i32
    %c0_i32_0 = arith.constant 0 : i32
    %c0_i32_1 = arith.constant 0 : i32
    return %c0_i32, %c0_i32_0 : i32, i32
  }
}

</mosaic_0001>

<bundles_post_ra>
// kernel: tpu_custom_call.1
= control target key start
LH: loop header
LB: loop body
LE: loop exit
PB: predicated region body
PF: predicated region fallthrough
CT: control target
= control target key end

     0   :  { %13 = vsyncpa [#allocation6], 0  ;;  %s5494_s27 = smov 0   ;;  %s7915_s0 = inlined_call_operand.vmem [shape: bf16[2,64,16], index: 0, kind: input, shape index: {}]   ;;  %s7916_s1 = inlined_call_operand.vmem [shape: bf16[2,64,16], index: 1, kind: input, shape index: {}]   ;;  %s7917_s2 = inlined_call_operand.vmem [shape: bf16[16,1024], index: 2, kind: input, shape index: {}]   ;;  %s7918_s3 = inlined_call_operand.vmem [shape: bf16[16,1024], index: 3, kind: input, shape index: {}]   ;;  %s7919_s4 = inlined_call_operand.hbm [shape: bf16[256,1024], index: 4, kind: input, shape index: {}]   ;;  %s7920_s5 = inlined_call_operand.vmem [shape: f32[1,1024], index: 5, kind: input, shape index: {}]   ;;  %s7921_s6 = inlined_call_operand.vmem [shape: bf16[256,5], index: 6, kind: input, shape index: {}]   ;;  %s7922_s7 = inlined_call_operand.vmem [shape: f32[1,5], index: 7, kind: input, shape index: {}]   ;;  %s7923_s8 = inlined_call_operand.vmem [shape: f32[16,5], index: 8, kind: output, shape index: {}]  }
   0x1 LB: > { %s240_s30 = sshll.u32 %s7919_s4, 4  ;;  %s5503_s9 = sadd.s32 4294967295, %s5443_s27   ;;  %s5443_s27 = sphi %s5494_s27, %s19_s27   ;;  %s241_s30 = int_to_ptr.hbm [resolvable:$true] %s240_s30 }
   0x2   : > { %p4157_p0 = scmp.ge.s32.totalorder %s5443_s27, 1  ;;  %p223_p1 = scmp.lt.s32.totalorder %s5443_s27, 3 }
   0x3   : > { %p4158_p2 = scmp.ne.s32.totalorder %s5503_s9, 0  ;;  %p5132_p3 = scmp.eq.s32.totalorder %s5503_s9, 0 }
   0x4   : > { %p224_p4 = pnand %p4157_p0, %p223_p1  ;;  %s5445_s10 = smov [#allocation5]  }
   0x5   : > { %s242_s11 = sshll.u32 %s5445_s10, 4  ;;  %s5446_s12 = smov 512   ;;  %s243_s11 = int_to_ptr.vmem [resolvable:$true] %s242_s11 }
   0x6   : > { %p5128_p5 = pneg %p224_p4  ;;  %s5447_s13 = smov 32  }
   0x7   : > { %283 = sbr.rel (%p224_p4) target bundleno = 1430 (0x596), region = 52 }
   0x8   : > { %p5129_p6 = pnand %p5132_p3, %p5128_p5 }
   0xa   : > { %5131 = dma.hbm_to_vmem [thread:$0]  (!%p5129_p6), %s241_s30, 16384, %s243_s11, [#allocation6], %s5446_s12, %s5446_s12, %s5447_s13  }
   0xc   : > { %5438 = dma.done.wait (%p5132_p3), [#allocation6], 16384  }
   0xd   : > { %5440 = vsyncadd (%p5132_p3), [#allocation6], 4294950912  ;;  %p318_p7 = scmp.lt.s32.totalorder %s5503_s9, 1 }
   0xe   : > { %332 = sbr.rel (%p4158_p2) target bundleno = 28 (0x1c), region = 60 }
   0xf   : > { %s319_s14 = scalar_select %p318_p7, %s5503_s9, 1 }
  0x11   : > { %s4954_s15 = sshll.u32 %s319_s14, 5 }
  0x12   : > { %s5514_s18 = scalar_lea.vmem %s7915_s0, %s4954_s15  ;;  %s5519_s21 = scalar_lea.vmem %s7916_s1, %s4954_s15 }
  0x13   : > { %v5448_v0 = vmov 0.0  }
  0x14   : > { %333 = vst [vmem:[#allocation2 + $0x10] sm:$0xff] %v5448_v0 }
  0x15   : > { %334 = vst [vmem:[#allocation2] sm:$0xff] %v5448_v0 }
  0x16   : > { %335 = vst [vmem:[#allocation2 + $0x18] sm:$0xff] %v5448_v0 }
  0x17   : > { %336 = vst [vmem:[#allocation2 + $0x8] sm:$0xff] %v5448_v0 }
  0x18   : > { %337 = vst [vmem:[#allocation3] sm:$0xff] %v5448_v0 }
  0x19   : > { %338 = vst [vmem:[#allocation3 + $0x18] sm:$0xff] %v5448_v0 }
  0x1a   : > { %339 = vst [vmem:[#allocation3 + $0x8] sm:$0xff] %v5448_v0 }
  0x1b   : > { %340 = vst [vmem:[#allocation3 + $0x10] sm:$0xff] %v5448_v0 }
  0x1c PF: > { %v4185_v1 = vld [vmem:[%s7918_s3] sm:$0xf]  ;;  %v4972_v3 = vld [vmem:[%s7918_s3 + $0x4] sm:$0xf]  ;;  %v4193_v6 = vld [vmem:[%s7918_s3 + $0x8] sm:$0xf] }
  0x1d   : > { %v4976_v2 = vld [vmem:[%s7918_s3 + $0x1c] sm:$0xf0]  ;;  %v4187_v5 = vld [vmem:[%s7918_s3 + $0x20] sm:$0xf0]  ;;  %v4977_v7 = vld [vmem:[%s7918_s3 + $0x24] sm:$0xf0] }
  0x1e   : > { %v4186_v4 = vor.u32 %v4976_v2, %v4185_v1  ;;  %v4190_v8 = vor.u32 %v4972_v3, %v4187_v5  ;;  %v4194_v9 = vor.u32 %v4977_v7, %v4193_v6  ;;  %v4973_v10 = vld [vmem:[%s7918_s3 + $0xc] sm:$0xf]  ;;  %v4968_v12 = vld [vmem:[%s5519_s21] sm:$0xff]  ;;  %vm433_vm0 = vcmask 130048   ;;  %v4209_v15 = vld [vmem:[%s7918_s3 + $0x18] sm:$0xf] }
  0x1f   : > { %v4195_v11 = vld [vmem:[%s7918_s3 + $0x28] sm:$0xf0]  ;;  %v4979_v16 = vld [vmem:[%s7918_s3 + $0x34] sm:$0xf0]  ;;  %v4975_v17 = vld [vmem:[%s7918_s3 + $0x1c] sm:$0xf] }
  0x20   : > { %453 = vmatpush.bf16.msra.mxu0 %v4186_v4  ;;  %v4198_v13 = vor.u32 %v4973_v10, %v4195_v11  ;;  %482 = vmatpush.bf16.msra.mxu1 %v4190_v8  ;;  %v4969_v14 = vld [vmem:[%s5519_s21 + $0x8] sm:$0xff]  ;;  %v4210_v18 = vor.u32 %v4979_v16, %v4209_v15  ;;  %v4211_v19 = vld [vmem:[%s7918_s3 + $0x38] sm:$0xf0]  ;;  %v4201_v20 = vld [vmem:[%s7918_s3 + $0x10] sm:$0xf]  ;;  %p4887_p8 = scmp.ne.s32.totalorder %s5503_s9, 1 }
  0x21   : > { %511 = vmatpush.bf16.msra.mxu2 %v4194_v9  ;;  %v4978_v21 = vld [vmem:[%s7918_s3 + $0x2c] sm:$0xf0]  ;;  %v4214_v22 = vor.u32 %v4975_v17, %v4211_v19  ;;  %v4974_v24 = vld [vmem:[%s7918_s3 + $0x14] sm:$0xf]  ;;  %v4971_v28 = vld [vmem:[%s5519_s21 + $0x18] sm:$0xff] }
  0x22   : > { %540 = vmatpush.bf16.msra.mxu3 %v4198_v13  ;;  %v4202_v23 = vor.u32 %v4978_v21, %v4201_v20  ;;  %v4203_v25 = vld [vmem:[%s7918_s3 + $0x30] sm:$0xf0]  ;;  %v4273_v29 = vld [vmem:[%s7917_s2 + $0x8] sm:$0xf]  ;;  %v4961_v31 = vld [vmem:[%s7917_s2 + $0xc] sm:$0xf] }
  0x23   : > { %4215 = vmatmul.msk.bf16.vlgmr.msra.gmra.mxu0 %vm433_vm0, %v4968_v12  ;;  %4219 = vmatmul.msk.bf16.vlgmr.msra.gmra.mxu1 %vm433_vm0, %v4968_v12  ;;  %v4206_v26 = vor.u32 %v4974_v24, %v4203_v25  ;;  %v4970_v27 = vld [vmem:[%s5519_s21 + $0x10] sm:$0xff]  ;;  %v4965_v30 = vld [vmem:[%s7917_s2 + $0x24] sm:$0xf0]  ;;  %v4275_v33 = vld [vmem:[%s7917_s2 + $0x28] sm:$0xf0] }
  0x24   : > { %4223 = vmatmul.msk.bf16.vlgmr.msra.gmra.mxu2 %vm433_vm0, %v4968_v12  ;;  %569 = vmatpush.bf16.msrb.mxu0 %v4202_v23  ;;  %v4274_v32 = vor.u32 %v4965_v30, %v4273_v29  ;;  %v4265_v34 = vld [vmem:[%s7917_s2] sm:$0xf]  ;;  %v4278_v36 = vor.u32 %v4961_v31, %v4275_v33  ;;  %v4960_v38 = vld [vmem:[%s7917_s2 + $0x4] sm:$0xf]  ;;  %v5657_v49 = vld [vmem:[%s5514_s18 + $0x8] sm:$0xff] }
  0x25   : > { %4227 = vmatmul.msk.bf16.vlgmr.msra.gmra.mxu3 %vm433_vm0, %v4968_v12  ;;  %627 = vmatpush.bf16.msrb.mxu2 %v4210_v18  ;;  %v4964_v35 = vld [vmem:[%s7917_s2 + $0x1c] sm:$0xf0]  ;;  %v4267_v39 = vld [vmem:[%s7917_s2 + $0x20] sm:$0xf0]  ;;  %v4289_v53 = vld [vmem:[%s7917_s2 + $0x18] sm:$0xf] }
  0x26   : > { %656 = vmatpush.bf16.msrb.mxu3 %v4214_v22  ;;  %598 = vmatpush.bf16.msrb.mxu1 %v4206_v26  ;;  %v4266_v37 = vor.u32 %v4964_v35, %v4265_v34  ;;  %v4270_v40 = vor.u32 %v4960_v38, %v4267_v39  ;;  %v5632_v41 = vld [vmem:[%s5514_s18] sm:$0xff]  ;;  %v4967_v54 = vld [vmem:[%s7917_s2 + $0x34] sm:$0xf0]  ;;  %v4963_v55 = vld [vmem:[%s7917_s2 + $0x1c] sm:$0xf] }
  0x27   : > { %v4290_v56 = vor.u32 %v4967_v54, %v4289_v53  ;;  %v4291_v57 = vld [vmem:[%s7917_s2 + $0x38] sm:$0xf0]  ;;  %v4281_v62 = vld [vmem:[%s7917_s2 + $0x10] sm:$0xf]  ;;  %v4962_v2 = vld [vmem:[%s7917_s2 + $0x14] sm:$0xf] }
  0x28   : > { %757 = vmatpush.bf16.msra.mxu0 %v4266_v37  ;;  %v4294_v59 = vor.u32 %v4963_v55, %v4291_v57  ;;  %v4966_v63 = vld [vmem:[%s7917_s2 + $0x2c] sm:$0xf0]  ;;  %v4283_v3 = vld [vmem:[%s7917_s2 + $0x30] sm:$0xf0]  ;;  %v4553_v13 = vld [vmem:[#allocation5 + $0x1c0] sm:$0xf] }
  0x29   : > { %815 = vmatpush.bf16.msra.mxu2 %v4274_v32  ;;  %v4282_v1 = vor.u32 %v4966_v63, %v4281_v62  ;;  %v4286_v4 = vor.u32 %v4962_v2, %v4283_v3  ;;  %v5708_v6 = vld [vmem:[%s5514_s18 + $0x10] sm:$0xff]  ;;  %v4809_v15 = vld [vmem:[#allocation5 + $0x3c0] sm:$0xf]  ;;  %v5036_v19 = vld [vmem:[#allocation5 + $0x1c4] sm:$0xf] }
  0x2a   : > { %844 = vmatpush.bf16.msra.mxu3 %v4278_v36  ;;  %786 = vmatpush.bf16.msra.mxu1 %v4270_v40  ;;  %v5104_v18 = vld [vmem:[#allocation5 + $0x3dc] sm:$0xf0]  ;;  %v4555_v20 = vld [vmem:[#allocation5 + $0x1e0] sm:$0xf0]  ;;  %v5755_v39 = vld [vmem:[%s5514_s18 + $0x18] sm:$0xff] }
  0x2b   : > { %v5734_v21 = vor.u32 %v5104_v18, %v4809_v15  ;;  %v5736_v22 = vor.u32 %v5036_v19, %v4555_v20  ;;  %v5100_v23 = vld [vmem:[#allocation5 + $0x3c4] sm:$0xf]  ;;  %v4521_v25 = vld [vmem:[#allocation5 + $0x180] sm:$0xf] }
  0x2c   : > { %v4811_v24 = vld [vmem:[#allocation5 + $0x3e0] sm:$0xf0]  ;;  %v5096_v29 = vld [vmem:[#allocation5 + $0x39c] sm:$0xf0] }
  0x2d   : > { %8212 = vst [vmem:[#allocation13_spill] sm:$0xff] %v5734_v21  ;;  %v5739_v26 = vor.u32 %v5100_v23, %v4811_v24  ;;  %v5028_v32 = vld [vmem:[#allocation5 + $0x184] sm:$0xf]  ;;  %v4489_v54 = vld [vmem:[#allocation5 + $0x140] sm:$0xf] }
  0x2e   : > { %8213 = vst [vmem:[#allocation14_spill] sm:$0xff] %v5736_v22  ;;  %v4523_v33 = vld [vmem:[#allocation5 + $0x1a0] sm:$0xf0]  ;;  %v5024_v55 = vld [vmem:[#allocation5 + $0x15c] sm:$0xf0] }
  0x2f   : > { %8214 = vst [vmem:[#allocation15_spill] sm:$0xff] %v5739_v26  ;;  %v5092_v34 = vld [vmem:[#allocation5 + $0x384] sm:$0xf]  ;;  %v5748_v35 = vor.u32 %v5028_v32, %v4523_v33  ;;  %v5088_v62 = vld [vmem:[#allocation5 + $0x35c] sm:$0xf0] }
  0x30   : > { %v4779_v36 = vld [vmem:[#allocation5 + $0x3a0] sm:$0xf0]  ;;  %v4457_v15 = vld [vmem:[#allocation5 + $0x100] sm:$0xf] }
  0x31   : > { %8217 = vst [vmem:[#allocation18_spill] sm:$0xff] %v5748_v35  ;;  %v5750_v37 = vor.u32 %v5092_v34, %v4779_v36  ;;  %v5020_v63 = vld [vmem:[#allocation5 + $0x144] sm:$0xf]  ;;  %v5016_v18 = vld [vmem:[#allocation5 + $0x11c] sm:$0xf0] }
  0x32   : > { %v4713_v19 = vld [vmem:[#allocation5 + $0x300] sm:$0xf]  ;;  %v5784_v20 = vor.u32 %v5016_v18, %v4457_v15  ;;  %v5012_v24 = vld [vmem:[#allocation5 + $0x104] sm:$0xf] }
  0x33   : > { %4216 = vmatmul.msk.bf16.gmra.mxu0 %vm433_vm0, %v4969_v14  ;;  %4220 = vmatmul.msk.bf16.gmra.mxu1 %vm433_vm0, %v4969_v14  ;;  %8218 = vst [vmem:[#allocation19_spill] sm:$0xff] %v5750_v37  ;;  %v5080_v23 = vld [vmem:[#allocation5 + $0x31c] sm:$0xf0]  ;;  %v4715_v32 = vld [vmem:[#allocation5 + $0x320] sm:$0xf0] }
  0x34   : > { %4224 = vmatmul.msk.bf16.gmra.mxu2 %vm433_vm0, %v4969_v14  ;;  %8223 = vst [vmem:[#allocation24_spill] sm:$0xff] %v5784_v20  ;;  %v4427_v15 = vld [vmem:[#allocation5 + $0xe0] sm:$0xf0] }
  0x35   : > { %4228 = vmatmul.msk.bf16.gmra.mxu3 %vm433_vm0, %v4969_v14 }
  0x43   : > { %4217 = vmatmul.msk.bf16.gmra.mxu0 %vm433_vm0, %v4970_v27  ;;  %4221 = vmatmul.msk.bf16.gmra.mxu1 %vm433_vm0, %v4970_v27 }
  0x44   : > { %4225 = vmatmul.msk.bf16.gmra.mxu2 %vm433_vm0, %v4970_v27 }
  0x45   : > { %4229 = vmatmul.msk.bf16.gmra.mxu3 %vm433_vm0, %v4970_v27 }
  0x53   : > { %4218 = vmatmul.msk.bf16.gmra.mxu0 %vm433_vm0, %v4971_v28  ;;  %4222 = vmatmul.msk.bf16.gmra.mxu1 %vm433_vm0, %v4971_v28 }
  0x54   : > { %4226 = vmatmul.msk.bf16.gmra.mxu2 %vm433_vm0, %v4971_v28 }
  0x55   : > { %4230 = vmatmul.msk.bf16.gmra.mxu3 %vm433_vm0, %v4971_v28 }
  0x63   : > { %4231 = vmatmul.msk.bf16.vlgmr.msrb.gmra.mxu0 %vm433_vm0, %v4968_v12  ;;  %4235 = vmatmul.msk.bf16.vlgmr.msrb.gmra.mxu1 %vm433_vm0, %v4968_v12 }
  0x64   : > { %4239 = vmatmul.msk.bf16.vlgmr.msrb.gmra.mxu2 %vm433_vm0, %v4968_v12  ;;  %873 = vmatpush.bf16.msrb.mxu0 %v4282_v1  ;;  %v4491_v1 = vld [vmem:[#allocation5 + $0x160] sm:$0xf0] }
  0x65   : > { %4243 = vmatmul.msk.bf16.vlgmr.msrb.gmra.mxu3 %vm433_vm0, %v4968_v12  ;;  %931 = vmatpush.bf16.msrb.mxu2 %v4290_v56  ;;  %v4745_v56 = vld [vmem:[#allocation5 + $0x340] sm:$0xf]  ;;  %v5771_v3 = vor.u32 %v5020_v63, %v4491_v1 }
  0x66   : > { %960 = vmatpush.bf16.msrb.mxu3 %v4294_v59  ;;  %902 = vmatpush.bf16.msrb.mxu1 %v4286_v4  ;;  %v5767_v59 = vor.u32 %v5024_v55, %v4489_v54  ;;  %v5769_v2 = vor.u32 %v5088_v62, %v4745_v56  ;;  %v5084_v4 = vld [vmem:[#allocation5 + $0x344] sm:$0xf]  ;;  %v4425_v55 = vld [vmem:[#allocation5 + $0xc0] sm:$0xf] }
  0x67   : > { %8221 = vst [vmem:[#allocation22_spill] sm:$0xff] %v5771_v3  ;;  %v5008_v56 = vld [vmem:[#allocation5 + $0xdc] sm:$0xf0] }
  0x68   : > { %8219 = vst [vmem:[#allocation20_spill] sm:$0xff] %v5767_v59  ;;  %v4681_v62 = vld [vmem:[#allocation5 + $0x2c0] sm:$0xf]  ;;  %v5804_v1 = vor.u32 %v5008_v56, %v4425_v55 }
  0x69   : > { %8220 = vst [vmem:[#allocation21_spill] sm:$0xff] %v5769_v2  ;;  %v4649_v55 = vld [vmem:[#allocation5 + $0x280] sm:$0xf] }
  0x6a   : > { %8227 = vst [vmem:[#allocation28_spill] sm:$0xff] %v5804_v1  ;;  %v5064_v56 = vld [vmem:[#allocation5 + $0x29c] sm:$0xf0] }
  0x73   : > { %4232 = vmatmul.msk.bf16.gmra.mxu0 %vm433_vm0, %v4969_v14  ;;  %4236 = vmatmul.msk.bf16.gmra.mxu1 %vm433_vm0, %v4969_v14 }
  0x74   : > { %4240 = vmatmul.msk.bf16.gmra.mxu2 %vm433_vm0, %v4969_v14 }
  0x75   : > { %4244 = vmatmul.msk.bf16.gmra.mxu3 %vm433_vm0, %v4969_v14  ;;  %v5040_v14 = vld [vmem:[#allocation5 + $0x1dc] sm:$0xf0] }
  0x76   : > { %v5732_v17 = vor.u32 %v5040_v14, %v4553_v13  ;;  %v4747_v13 = vld [vmem:[#allocation5 + $0x360] sm:$0xf0] }
  0x77   : > { %v5775_v14 = vor.u32 %v5084_v4, %v4747_v13  ;;  %v5072_v4 = vld [vmem:[#allocation5 + $0x2dc] sm:$0xf0]  ;;  %v5004_v13 = vld [vmem:[#allocation5 + $0xc4] sm:$0xf] }
  0x78   : > { %8211 = vst [vmem:[#allocation12_spill] sm:$0xff] %v5732_v17  ;;  %v5808_v18 = vor.u32 %v5072_v4, %v4681_v62  ;;  %v4651_v62 = vld [vmem:[#allocation5 + $0x2a0] sm:$0xf0]  ;;  %v5820_v4 = vor.u32 %v5064_v56, %v4649_v55 }
  0x79   : > { %8222 = vst [vmem:[#allocation23_spill] sm:$0xff] %v5775_v14  ;;  %v4363_v56 = vld [vmem:[#allocation5 + $0x60] sm:$0xf0] }
  0x7a   : > { %8228 = vst [vmem:[#allocation29_spill] sm:$0xff] %v5808_v18 }
  0x7b   : > { %8232 = vst [vmem:[#allocation33_spill] sm:$0xff] %v5820_v4 }
  0x83   : > { %4233 = vmatmul.msk.bf16.gmra.mxu0 %vm433_vm0, %v4970_v27  ;;  %4237 = vmatmul.msk.bf16.gmra.mxu1 %vm433_vm0, %v4970_v27 }
  0x84   : > { %4241 = vmatmul.msk.bf16.gmra.mxu2 %vm433_vm0, %v4970_v27 }
  0x85   : > { %4245 = vmatmul.msk.bf16.gmra.mxu3 %vm433_vm0, %v4970_v27  ;;  %v5032_v27 = vld [vmem:[#allocation5 + $0x19c] sm:$0xf0] }
  0x86   : > { %v5743_v30 = vor.u32 %v5032_v27, %v4521_v25  ;;  %v4459_v25 = vld [vmem:[#allocation5 + $0x120] sm:$0xf0]  ;;  %v5788_v27 = vor.u32 %v5080_v23, %v4713_v19  ;;  %v5810_v19 = vor.u32 %v5004_v13, %v4427_v15 }
  0x87   : > { %v5068_v23 = vld [vmem:[#allocation5 + $0x2c4] sm:$0xf] }
  0x88   : > { %8215 = vst [vmem:[#allocation16_spill] sm:$0xff] %v5743_v30 }
  0x89   : > { %8224 = vst [vmem:[#allocation25_spill] sm:$0xff] %v5788_v27 }
  0x8a   : > { %8229 = vst [vmem:[#allocation30_spill] sm:$0xff] %v5810_v19 }
  0x93   : > { %4234 = vmatmul.msk.bf16.gmra.mxu0 %vm433_vm0, %v4971_v28  ;;  %4238 = vmatmul.msk.bf16.gmra.mxu1 %vm433_vm0, %v4971_v28 }
  0x94   : > { %4242 = vmatmul.msk.bf16.gmra.mxu2 %vm433_vm0, %v4971_v28 }
  0x95   : > { %4246 = vmatmul.msk.bf16.gmra.mxu3 %vm433_vm0, %v4971_v28  ;;  %v4777_v28 = vld [vmem:[#allocation5 + $0x380] sm:$0xf] }
  0x96   : > { %v5745_v31 = vor.u32 %v5096_v29, %v4777_v28  ;;  %v5790_v28 = vor.u32 %v5012_v24, %v4459_v25  ;;  %v5076_v29 = vld [vmem:[#allocation5 + $0x304] sm:$0xf]  ;;  %v4393_v25 = vld [vmem:[#allocation5 + $0x80] sm:$0xf] }
  0x97   : > { %v5795_v34 = vor.u32 %v5076_v29, %v4715_v32  ;;  %v4683_v24 = vld [vmem:[#allocation5 + $0x2e0] sm:$0xf0]  ;;  %v5000_v32 = vld [vmem:[#allocation5 + $0x9c] sm:$0xf0] }
  0x98   : > { %8216 = vst [vmem:[#allocation17_spill] sm:$0xff] %v5745_v31  ;;  %v5813_v29 = vor.u32 %v5068_v23, %v4683_v24 }
  0x99   : > { %8225 = vst [vmem:[#allocation26_spill] sm:$0xff] %v5790_v28 }
  0x9a   : > { %8226 = vst [vmem:[#allocation27_spill] sm:$0xff] %v5795_v34 }
  0x9b   : > { %8230 = vst [vmem:[#allocation31_spill] sm:$0xff] %v5813_v29 }
  0xa0   : > { %v5634_v42 = vpop.f32.mrf.mxu0  ;;  %v5636_v43 = vpop.f32.mrf.mxu1 }
  0xa3   : > { %4295 = vmatmul.msk.bf16.vlgmr.msra.gmra.mxu0 %vm433_vm0, %v5632_v41  ;;  %4299 = vmatmul.msk.bf16.vlgmr.msra.gmra.mxu1 %vm433_vm0, %v5632_v41 }
  0xa4   : > { %4303 = vmatmul.msk.bf16.vlgmr.msra.gmra.mxu2 %vm433_vm0, %v5632_v41  ;;  %1933 = vmatpush.bf16.msra.mxu0 %v5732_v17 }
  0xa5   : > { %4307 = vmatmul.msk.bf16.vlgmr.msra.gmra.mxu3 %vm433_vm0, %v5632_v41  ;;  %1947 = vmatpush.bf16.msra.mxu1 %v5734_v21 }
  0xa6   : > { %1961 = vmatpush.bf16.msra.mxu2 %v5736_v22  ;;  %1975 = vmatpush.bf16.msra.mxu3 %v5739_v26 }
  0xa7   : > { %v5646_v44 = vpop.f32.mrf.mxu2 }
  0xa8   : > { %v5648_v45 = vpop.f32.mrf.mxu3  ;;  %v5650_v46 = vpop.f32.mrf.mxu0  ;;  %1934 = vmatpush.bf16.msra.mxu0 %v5743_v30 }
  0xa9   : > { %8207 = vst [vmem:[#allocation8_spill] sm:$0xff] %v5650_v46  ;;  %v5652_v47 = vpop.f32.mrf.mxu1  ;;  %1948 = vmatpush.bf16.msra.mxu1 %v5745_v31  ;;  %v5816_v46 = vor.u32 %v5000_v32, %v4393_v25  ;;  %v4361_v25 = vld [vmem:[#allocation5 + $0x40] sm:$0xf] }
  0xaa   : > { %8208 = vst [vmem:[#allocation9_spill] sm:$0xff] %v5652_v47  ;;  %1962 = vmatpush.bf16.msra.mxu2 %v5748_v35  ;;  %1976 = vmatpush.bf16.msra.mxu3 %v5750_v37  ;;  %v5060_v47 = vld [vmem:[#allocation5 + $0x284] sm:$0xf]  ;;  %v4992_v32 = vld [vmem:[#allocation5 + $0x5c] sm:$0xf0] }
  0xab   : > { %8231 = vst [vmem:[#allocation32_spill] sm:$0xff] %v5816_v46  ;;  %v5827_v23 = vor.u32 %v5060_v47, %v4651_v62  ;;  %v5836_v55 = vor.u32 %v4992_v32, %v4361_v25  ;;  %v4329_v32 = vld [vmem:[#allocation5] sm:$0xf]  ;;  %v5034_v37 = vld [vmem:[#allocation5 + $0x1ac] sm:$0xf0] }
  0xac   : > { %1935 = vmatpush.bf16.msra.mxu0 %v5767_v59  ;;  %v4793_v59 = vld [vmem:[#allocation5 + $0x390] sm:$0xf] }
  0xad   : > { %1949 = vmatpush.bf16.msra.mxu1 %v5769_v2  ;;  %8234 = vst [vmem:[#allocation35_spill] sm:$0xff] %v5827_v23  ;;  %v5033_v2 = vld [vmem:[#allocation5 + $0x1a4] sm:$0xf0] }
  0xae   : > { %1963 = vmatpush.bf16.msra.mxu2 %v5771_v3  ;;  %1977 = vmatpush.bf16.msra.mxu3 %v5775_v14  ;;  %8235 = vst [vmem:[#allocation36_spill] sm:$0xff] %v5836_v55 }
  0xaf   : > { %v5654_v48 = vpop.f32.mrf.mxu2 }
  0xb0   : > { %8209 = vst [vmem:[#allocation10_spill] sm:$0xff] %v5654_v48  ;;  %v5659_v50 = vpop.f32.mrf.mxu3  ;;  %v5661_v51 = vpop.f32.mrf.mxu0  ;;  %1936 = vmatpush.bf16.msra.mxu0 %v5784_v20  ;;  %v4395_v48 = vld [vmem:[#allocation5 + $0xa0] sm:$0xf0] }
  0xb1   : > { %8210 = vst [vmem:[#allocation11_spill] sm:$0xff] %v5659_v50  ;;  %v5663_v52 = vpop.f32.mrf.mxu1  ;;  %1950 = vmatpush.bf16.msra.mxu1 %v5788_v27  ;;  %v4996_v50 = vld [vmem:[#allocation5 + $0x84] sm:$0xf]  ;;  %v4561_v27 = vld [vmem:[#allocation5 + $0x1c8] sm:$0xf] }
  0xb2   : > { %1964 = vmatpush.bf16.msra.mxu2 %v5790_v28  ;;  %1978 = vmatpush.bf16.msra.mxu3 %v5795_v34  ;;  %v5822_v13 = vor.u32 %v4996_v50, %v4395_v48  ;;  %v5056_v48 = vld [vmem:[#allocation5 + $0x25c] sm:$0xf0]  ;;  %v4988_v50 = vld [vmem:[#allocation5 + $0x44] sm:$0xf] }
  0xb3   : > { %4296 = vmatmul.msk.bf16.gmra.mxu0 %vm433_vm0, %v5657_v49  ;;  %4300 = vmatmul.msk.bf16.gmra.mxu1 %vm433_vm0, %v5657_v49  ;;  %v5842_v62 = vor.u32 %v4988_v50, %v4363_v56  ;;  %v5048_v56 = vld [vmem:[#allocation5 + $0x21c] sm:$0xf0] }
  0xb4   : > { %4304 = vmatmul.msk.bf16.gmra.mxu2 %vm433_vm0, %v5657_v49  ;;  %1937 = vmatpush.bf16.msra.mxu0 %v5804_v1  ;;  %8233 = vst [vmem:[#allocation34_spill] sm:$0xff] %v5822_v13  ;;  %v4617_v1 = vld [vmem:[#allocation5 + $0x240] sm:$0xf] }
  0xb5   : > { %4308 = vmatmul.msk.bf16.gmra.mxu3 %vm433_vm0, %v5657_v49  ;;  %1951 = vmatpush.bf16.msra.mxu1 %v5808_v18  ;;  %v5840_v47 = vor.u32 %v5056_v48, %v4617_v1  ;;  %8237 = vst [vmem:[#allocation38_spill] sm:$0xff] %v5842_v62  ;;  %v4984_v1 = vld [vmem:[#allocation5 + $0x1c] sm:$0xf0] }
  0xb6   : > { %1965 = vmatpush.bf16.msra.mxu2 %v5810_v19  ;;  %1979 = vmatpush.bf16.msra.mxu3 %v5813_v29  ;;  %v5052_v29 = vld [vmem:[#allocation5 + $0x244] sm:$0xf]  ;;  %v4585_v48 = vld [vmem:[#allocation5 + $0x200] sm:$0xf]  ;;  %v5856_v50 = vor.u32 %v4984_v1, %v4329_v32  ;;  %v5041_v32 = vld [vmem:[#allocation5 + $0x1e4] sm:$0xf0] }
  0xb7   : > { %v5685_v58 = vpop.f32.mrf.mxu2  ;;  %8236 = vst [vmem:[#allocation37_spill] sm:$0xff] %v5840_v47  ;;  %v4619_v19 = vld [vmem:[#allocation5 + $0x260] sm:$0xf0]  ;;  %v4817_v1 = vld [vmem:[#allocation5 + $0x3c8] sm:$0xf] }
  0xb8   : > { %v5687_v60 = vpop.f32.mrf.mxu3  ;;  %v5689_v61 = vpop.f32.mrf.mxu0  ;;  %1938 = vmatpush.bf16.msra.mxu0 %v5816_v46  ;;  %v5847_v25 = vor.u32 %v5052_v29, %v4619_v19  ;;  %8239 = vst [vmem:[#allocation40_spill] sm:$0xff] %v5856_v50  ;;  %v4331_v19 = vld [vmem:[#allocation5 + $0x20] sm:$0xf0]  ;;  %v5860_v29 = vor.u32 %v5048_v56, %v4585_v48  ;;  %v5873_v48 = vor.u32 %v5041_v32, %v4561_v27  ;;  %v5037_v56 = vld [vmem:[#allocation5 + $0x1cc] sm:$0xf] }
  0xb9   : > { %v5697_v0 = vpop.f32.mrf.mxu1  ;;  %1952 = vmatpush.bf16.msra.mxu1 %v5820_v4  ;;  %v4587_v46 = vld [vmem:[#allocation5 + $0x220] sm:$0xf0]  ;;  %v5097_v32 = vld [vmem:[#allocation5 + $0x3a4] sm:$0xf0] }
  0xba   : > { %1966 = vmatpush.bf16.msra.mxu2 %v5822_v13  ;;  %1980 = vmatpush.bf16.msra.mxu3 %v5827_v23  ;;  %8238 = vst [vmem:[#allocation39_spill] sm:$0xff] %v5847_v25  ;;  %v4980_v23 = vld [vmem:[#allocation5 + $0x4] sm:$0xf] }
  0xbb   : > { %8240 = vst [vmem:[#allocation41_spill] sm:$0xff] %v5860_v29  ;;  %v5862_v4 = vor.u32 %v4980_v23, %v4331_v19  ;;  %v5044_v13 = vld [vmem:[#allocation5 + $0x204] sm:$0xf]  ;;  %v4563_v19 = vld [vmem:[#allocation5 + $0x1e8] sm:$0xf0] }
  0xbc   : > { %1939 = vmatpush.bf16.msra.mxu0 %v5836_v55  ;;  %v5105_v55 = vld [vmem:[#allocation5 + $0x3e4] sm:$0xf0]  ;;  %8246 = vst [vmem:[#allocation47_spill] sm:$0xff] %v5873_v48 }
  0xbd   : > { %1953 = vmatpush.bf16.msra.mxu1 %v5840_v47  ;;  %8241 = vst [vmem:[#allocation42_spill] sm:$0xff] %v5862_v4  ;;  %v5875_v23 = vor.u32 %v5105_v55, %v4817_v1  ;;  %v4785_v55 = vld [vmem:[#allocation5 + $0x388] sm:$0xf]  ;;  %v5029_v1 = vld [vmem:[#allocation5 + $0x18c] sm:$0xf] }
  0xbe   : > { %1967 = vmatpush.bf16.msra.mxu2 %v5842_v62  ;;  %1981 = vmatpush.bf16.msra.mxu3 %v5847_v25  ;;  %v5101_v62 = vld [vmem:[#allocation5 + $0x3cc] sm:$0xf]  ;;  %v4529_v25 = vld [vmem:[#allocation5 + $0x188] sm:$0xf] }
  0xbf   : > { %v5705_v5 = vpop.f32.mrf.mxu2  ;;  %8247 = vst [vmem:[#allocation48_spill] sm:$0xff] %v5875_v23 }
  0xc0   : > { %v5710_v7 = vpop.f32.mrf.mxu3  ;;  %v5712_v8 = vpop.f32.mrf.mxu0  ;;  %1940 = vmatpush.bf16.msra.mxu0 %v5856_v50  ;;  %v5021_v50 = vld [vmem:[#allocation5 + $0x14c] sm:$0xf] }
  0xc1   : > { %v5714_v9 = vpop.f32.mrf.mxu1  ;;  %1954 = vmatpush.bf16.msra.mxu1 %v5860_v29  ;;  %v5892_v29 = vor.u32 %v5097_v32, %v4785_v55  ;;  %v4755_v32 = vld [vmem:[#allocation5 + $0x368] sm:$0xf0] }
  0xc2   : > { %1968 = vmatpush.bf16.msra.mxu2 %v5862_v4  ;;  %v5025_v4 = vld [vmem:[#allocation5 + $0x164] sm:$0xf0] }
  0xc3   : > { %4297 = vmatmul.msk.bf16.gmra.mxu0 %vm433_vm0, %v5708_v6  ;;  %4301 = vmatmul.msk.bf16.gmra.mxu1 %vm433_vm0, %v5708_v6  ;;  %8252 = vst [vmem:[#allocation53_spill] sm:$0xff] %v5892_v29 }
  0xc4   : > { %4305 = vmatmul.msk.bf16.gmra.mxu2 %vm433_vm0, %v5708_v6 }
  0xc5   : > { %4309 = vmatmul.msk.bf16.gmra.mxu3 %vm433_vm0, %v5708_v6 }
  0xc7   : > { %v5724_v10 = vpop.f32.mrf.mxu2 }
  0xc8   : > { %v5726_v11 = vpop.f32.mrf.mxu3  ;;  %v5728_v12 = vpop.f32.mrf.mxu0 }
  0xc9   : > { %v5730_v16 = vpop.f32.mrf.mxu1 }
  0xcf   : > { %v5752_v38 = vpop.f32.mrf.mxu2 }
  0xd0   : > { %v5758_v40 = vpop.f32.mrf.mxu3  ;;  %v5760_v53 = vpop.f32.mrf.mxu0 }
  0xd1   : > { %v5764_v57 = vpop.f32.mrf.mxu1 }
  0xd3   : > { %4298 = vmatmul.msk.bf16.gmra.mxu0 %vm433_vm0, %v5755_v39  ;;  %4302 = vmatmul.msk.bf16.gmra.mxu1 %vm433_vm0, %v5755_v39 }
  0xd4   : > { %4306 = vmatmul.msk.bf16.gmra.mxu2 %vm433_vm0, %v5755_v39 }
  0xd5   : > { %4310 = vmatmul.msk.bf16.gmra.mxu3 %vm433_vm0, %v5755_v39 }
  0xd7   : > { %v5792_v33 = vpop.f32.mrf.mxu2 }
  0xd8   : > { %v5797_v36 = vpop.f32.mrf.mxu3  ;;  %v5799_v54 = vpop.f32.mrf.mxu0 }
  0xd9   : > { %v5801_v63 = vpop.f32.mrf.mxu1 }
  0xdf   : > { %v5824_v15 = vpop.f32.mrf.mxu2 }
  0xe0   : > { %v5829_v24 = vpop.f32.mrf.mxu3  ;;  %v5831_v34 = vpop.f32.mrf.mxu0 }
  0xe1   : > { %v5833_v18 = vpop.f32.mrf.mxu1 }
  0xe3   : > { %4311 = vmatmul.msk.bf16.vlgmr.msrb.gmra.mxu0 %vm433_vm0, %v5632_v41  ;;  %4315 = vmatmul.msk.bf16.vlgmr.msrb.gmra.mxu1 %vm433_vm0, %v5632_v41 }
  0xe4   : > { %4319 = vmatmul.msk.bf16.vlgmr.msrb.gmra.mxu2 %vm433_vm0, %v5632_v41  ;;  %1989 = vmatpush.bf16.msrb.mxu0 %v5873_v48  ;;  %v4753_v48 = vld [vmem:[#allocation5 + $0x348] sm:$0xf] }
  0xe5   : > { %4323 = vmatmul.msk.bf16.vlgmr.msrb.gmra.mxu3 %vm433_vm0, %v5632_v41  ;;  %v5867_v41 = vor.u32 %v5044_v13, %v4587_v46  ;;  %v5880_v46 = vor.u32 %v5037_v56, %v4563_v19  ;;  %v4819_v13 = vld [vmem:[#allocation5 + $0x3e8] sm:$0xf0]  ;;  %2003 = vmatpush.bf16.msrb.mxu1 %v5875_v23 }
  0xe6   : > { %v5884_v27 = vor.u32 %v5101_v62, %v4819_v13  ;;  %v4531_v56 = vld [vmem:[#allocation5 + $0x1a8] sm:$0xf0] }
  0xe7   : > { %v5864_v28 = vpop.f32.mrf.mxu2  ;;  %8243 = vst [vmem:[#allocation44_spill] sm:$0xff] %v5867_v41  ;;  %1982 = vmatpush.bf16.msra.mxu3 %v5867_v41  ;;  %v5093_v19 = vld [vmem:[#allocation5 + $0x38c] sm:$0xf]  ;;  %2017 = vmatpush.bf16.msrb.mxu2 %v5880_v46  ;;  %v5894_v62 = vor.u32 %v5029_v1, %v4531_v56  ;;  %v4497_v41 = vld [vmem:[#allocation5 + $0x148] sm:$0xf] }
  0xe8   : > { %8242 = vst [vmem:[#allocation43_spill] sm:$0xff] %v5864_v28  ;;  %v5869_v14 = vpop.f32.mrf.mxu3  ;;  %v5871_v47 = vpop.f32.mrf.mxu0  ;;  %v4499_v23 = vld [vmem:[#allocation5 + $0x168] sm:$0xf0]  ;;  %v5911_v56 = vor.u32 %v5025_v4, %v4497_v41  ;;  %v4507_v28 = vld [vmem:[#allocation5 + $0x170] sm:$0xf0] }
  0xe9   : > { %8244 = vst [vmem:[#allocation45_spill] sm:$0xff] %v5869_v14  ;;  %v5877_v20 = vpop.f32.mrf.mxu1  ;;  %2004 = vmatpush.bf16.msrb.mxu1 %v5892_v29  ;;  %v5077_v4 = vld [vmem:[#allocation5 + $0x30c] sm:$0xf] }
  0xea   : > { %8245 = vst [vmem:[#allocation46_spill] sm:$0xff] %v5871_v47  ;;  %v4787_v47 = vld [vmem:[#allocation5 + $0x3a8] sm:$0xf0] }
  0xeb   : > { %8248 = vst [vmem:[#allocation49_spill] sm:$0xff] %v5877_v20  ;;  %v5888_v20 = vor.u32 %v5033_v2, %v4529_v25  ;;  %2031 = vmatpush.bf16.msrb.mxu3 %v5884_v27  ;;  %v5897_v13 = vor.u32 %v5093_v19, %v4787_v47  ;;  %v5089_v25 = vld [vmem:[#allocation5 + $0x364] sm:$0xf0]  ;;  %2018 = vmatpush.bf16.msrb.mxu2 %v5894_v62  ;;  %v5085_v47 = vld [vmem:[#allocation5 + $0x34c] sm:$0xf] }
  0xec   : > { %8249 = vst [vmem:[#allocation50_spill] sm:$0xff] %v5880_v46  ;;  %v5913_v19 = vor.u32 %v5089_v25, %v4753_v48  ;;  %v5919_v29 = vor.u32 %v5085_v47, %v4755_v32  ;;  %v5013_v46 = vld [vmem:[#allocation5 + $0x10c] sm:$0xf]  ;;  %v4433_v25 = vld [vmem:[#allocation5 + $0xc8] sm:$0xf] }
  0xed   : > { %8250 = vst [vmem:[#allocation51_spill] sm:$0xff] %v5884_v27  ;;  %1990 = vmatpush.bf16.msrb.mxu0 %v5888_v20  ;;  %v4465_v27 = vld [vmem:[#allocation5 + $0x108] sm:$0xf] }
  0xee   : > { %8251 = vst [vmem:[#allocation52_spill] sm:$0xff] %v5888_v20  ;;  %v4721_v20 = vld [vmem:[#allocation5 + $0x308] sm:$0xf]  ;;  %2005 = vmatpush.bf16.msrb.mxu1 %v5913_v19 }
  0xef   : > { %8253 = vst [vmem:[#allocation54_spill] sm:$0xff] %v5894_v62  ;;  %v5899_v2 = vpop.f32.mrf.mxu2  ;;  %2032 = vmatpush.bf16.msrb.mxu3 %v5897_v13  ;;  %v5081_v62 = vld [vmem:[#allocation5 + $0x324] sm:$0xf0] }
  0xf0   : > { %8254 = vst [vmem:[#allocation55_spill] sm:$0xff] %v5897_v13  ;;  %v5902_v3 = vpop.f32.mrf.mxu3  ;;  %v5904_v55 = vpop.f32.mrf.mxu0  ;;  %v5932_v48 = vor.u32 %v5081_v62, %v4721_v20  ;;  %v5009_v47 = vld [vmem:[#allocation5 + $0xe4] sm:$0xf0]  ;;  %v5069_v20 = vld [vmem:[#allocation5 + $0x2cc] sm:$0xf] }
  0xf1   : > { %8255 = vst [vmem:[#allocation56_spill] sm:$0xff] %v5899_v2  ;;  %v5908_v1 = vpop.f32.mrf.mxu1  ;;  %v5915_v2 = vor.u32 %v5021_v50, %v4499_v23  ;;  %v4723_v50 = vld [vmem:[#allocation5 + $0x328] sm:$0xf0]  ;;  %1991 = vmatpush.bf16.msrb.mxu0 %v5911_v56  ;;  %v4689_v32 = vld [vmem:[#allocation5 + $0x2c8] sm:$0xf] }
  0xf2   : > { %8256 = vst [vmem:[#allocation57_spill] sm:$0xff] %v5902_v3  ;;  %v5017_v3 = vld [vmem:[#allocation5 + $0x124] sm:$0xf0]  ;;  %v4691_v62 = vld [vmem:[#allocation5 + $0x2e8] sm:$0xf0]  ;;  %2006 = vmatpush.bf16.msrb.mxu1 %v5932_v48 }
  0xf3   : > { %8257 = vst [vmem:[#allocation58_spill] sm:$0xff] %v5904_v55  ;;  %4312 = vmatmul.msk.bf16.gmra.mxu0 %vm433_vm0, %v5657_v49  ;;  %v4467_v55 = vld [vmem:[#allocation5 + $0x128] sm:$0xf0]  ;;  %4316 = vmatmul.msk.bf16.gmra.mxu1 %vm433_vm0, %v5657_v49  ;;  %v5928_v41 = vor.u32 %v5017_v3, %v4465_v27 }
  0xf4   : > { %8258 = vst [vmem:[#allocation59_spill] sm:$0xff] %v5908_v1  ;;  %4320 = vmatmul.msk.bf16.gmra.mxu2 %vm433_vm0, %v5657_v49  ;;  %v5934_v23 = vor.u32 %v5013_v46, %v4467_v55  ;;  %2033 = vmatpush.bf16.msrb.mxu3 %v5919_v29  ;;  %v5005_v3 = vld [vmem:[#allocation5 + $0xcc] sm:$0xf]  ;;  %v5948_v55 = vor.u32 %v5009_v47, %v4433_v25 }
  0xf5   : > { %8259 = vst [vmem:[#allocation60_spill] sm:$0xff] %v5911_v56  ;;  %4324 = vmatmul.msk.bf16.gmra.mxu3 %vm433_vm0, %v5657_v49  ;;  %2019 = vmatpush.bf16.msrb.mxu2 %v5915_v2  ;;  %v5939_v49 = vor.u32 %v5077_v4, %v4723_v50  ;;  %v5073_v56 = vld [vmem:[#allocation5 + $0x2e4] sm:$0xf0]  ;;  %v4435_v27 = vld [vmem:[#allocation5 + $0xe8] sm:$0xf0] }
  0xf6   : > { %8260 = vst [vmem:[#allocation61_spill] sm:$0xff] %v5913_v19  ;;  %1992 = vmatpush.bf16.msrb.mxu0 %v5928_v41  ;;  %v5952_v4 = vor.u32 %v5073_v56, %v4689_v32  ;;  %v5954_v50 = vor.u32 %v5005_v3, %v4435_v27  ;;  %v5061_v25 = vld [vmem:[#allocation5 + $0x28c] sm:$0xf]  ;;  %v4369_v3 = vld [vmem:[#allocation5 + $0x48] sm:$0xf] }
  0xf7   : > { %8261 = vst [vmem:[#allocation62_spill] sm:$0xff] %v5915_v2  ;;  %v5936_v13 = vpop.f32.mrf.mxu2  ;;  %v5001_v2 = vld [vmem:[#allocation5 + $0xa4] sm:$0xf0]  ;;  %v4659_v47 = vld [vmem:[#allocation5 + $0x2a8] sm:$0xf0] }
  0xf8   : > { %8262 = vst [vmem:[#allocation63_spill] sm:$0xff] %v5919_v29  ;;  %v5941_v1 = vpop.f32.mrf.mxu3  ;;  %v5943_v19 = vpop.f32.mrf.mxu0  ;;  %v4401_v29 = vld [vmem:[#allocation5 + $0x88] sm:$0xf]  ;;  %2034 = vmatpush.bf16.msrb.mxu3 %v5939_v49  ;;  %2007 = vmatpush.bf16.msrb.mxu1 %v5952_v4 }
  0xf9   : > { %8263 = vst [vmem:[#allocation64_spill] sm:$0xff] %v5928_v41  ;;  %v5945_v46 = vpop.f32.mrf.mxu1  ;;  %2020 = vmatpush.bf16.msrb.mxu2 %v5934_v23  ;;  %v4403_v41 = vld [vmem:[#allocation5 + $0xa8] sm:$0xf0]  ;;  %v4993_v27 = vld [vmem:[#allocation5 + $0x64] sm:$0xf0] }
  0xfa   : > { %8264 = vst [vmem:[#allocation65_spill] sm:$0xff] %v5932_v48  ;;  %1993 = vmatpush.bf16.msrb.mxu0 %v5948_v55  ;;  %v5960_v48 = vor.u32 %v5001_v2, %v4401_v29  ;;  %v4989_v29 = vld [vmem:[#allocation5 + $0x4c] sm:$0xf] }
  0xfb   : > { %8265 = vst [vmem:[#allocation66_spill] sm:$0xff] %v5934_v23  ;;  %v4371_v2 = vld [vmem:[#allocation5 + $0x68] sm:$0xf0] }
  0xfc   : > { %8266 = vst [vmem:[#allocation67_spill] sm:$0xff] %v5936_v13  ;;  %v4997_v13 = vld [vmem:[#allocation5 + $0x8c] sm:$0xf] }
  0xfd   : > { %8267 = vst [vmem:[#allocation68_spill] sm:$0xff] %v5939_v49  ;;  %2021 = vmatpush.bf16.msrb.mxu2 %v5954_v50  ;;  %v5966_v32 = vor.u32 %v4997_v13, %v4403_v41  ;;  %v5971_v49 = vor.u32 %v5061_v25, %v4659_v47  ;;  %v5980_v41 = vor.u32 %v4993_v27, %v4369_v3  ;;  %v5049_v3 = vld [vmem:[#allocation5 + $0x224] sm:$0xf0]  ;;  %v4981_v27 = vld [vmem:[#allocation5 + $0xc] sm:$0xf] }
  0xfe   : > { %8268 = vst [vmem:[#allocation69_spill] sm:$0xff] %v5941_v1  ;;  %v4657_v1 = vld [vmem:[#allocation5 + $0x288] sm:$0xf]  ;;  %1994 = vmatpush.bf16.msrb.mxu0 %v5960_v48  ;;  %v5986_v47 = vor.u32 %v4989_v29, %v4371_v2 }
  0xff   : > { %8269 = vst [vmem:[#allocation70_spill] sm:$0xff] %v5943_v19  ;;  %v5957_v19 = vor.u32 %v5069_v20, %v4691_v62  ;;  %v4625_v20 = vld [vmem:[#allocation5 + $0x248] sm:$0xf]  ;;  %v5968_v62 = vpop.f32.mrf.mxu2 }
 0x100   : > { %8270 = vst [vmem:[#allocation71_spill] sm:$0xff] %v5945_v46  ;;  %v5065_v46 = vld [vmem:[#allocation5 + $0x2a4] sm:$0xf0]  ;;  %v5973_v23 = vpop.f32.mrf.mxu3 }
 0x101   : > { %8271 = vst [vmem:[#allocation72_spill] sm:$0xff] %v5948_v55  ;;  %v5964_v56 = vor.u32 %v5065_v46, %v4657_v1  ;;  %2035 = vmatpush.bf16.msrb.mxu3 %v5957_v19  ;;  %v5057_v55 = vld [vmem:[#allocation5 + $0x264] sm:$0xf0]  ;;  %v5053_v1 = vld [vmem:[#allocation5 + $0x24c] sm:$0xf]  ;;  %v5977_v13 = vpop.f32.mrf.mxu1  ;;  %2022 = vmatpush.bf16.msrb.mxu2 %v5966_v32 }
 0x102   : > { %8272 = vst [vmem:[#allocation73_spill] sm:$0xff] %v5952_v4  ;;  %v5975_v4 = vpop.f32.mrf.mxu0  ;;  %v4627_v46 = vld [vmem:[#allocation5 + $0x268] sm:$0xf0]  ;;  %v5984_v25 = vor.u32 %v5057_v55, %v4625_v20  ;;  %1995 = vmatpush.bf16.msrb.mxu0 %v5980_v41 }
 0x103   : > { %8273 = vst [vmem:[#allocation74_spill] sm:$0xff] %v5954_v50  ;;  %2008 = vmatpush.bf16.msrb.mxu1 %v5964_v56  ;;  %v4985_v50 = vld [vmem:[#allocation5 + $0x24] sm:$0xf0]  ;;  %4313 = vmatmul.msk.bf16.gmra.mxu0 %vm433_vm0, %v5708_v6  ;;  %v5045_v55 = vld [vmem:[#allocation5 + $0x20c] sm:$0xf] }
 0x104   : > { %8274 = vst [vmem:[#allocation75_spill] sm:$0xff] %v5957_v19  ;;  %v4337_v19 = vld [vmem:[#allocation5 + $0x8] sm:$0xf]  ;;  %4317 = vmatmul.msk.bf16.gmra.mxu1 %vm433_vm0, %v5708_v6  ;;  %4321 = vmatmul.msk.bf16.gmra.mxu2 %vm433_vm0, %v5708_v6  ;;  %v4595_v20 = vld [vmem:[#allocation5 + $0x228] sm:$0xf0] }
 0x105   : > { %8275 = vst [vmem:[#allocation76_spill] sm:$0xff] %v5960_v48  ;;  %2036 = vmatpush.bf16.msrb.mxu3 %v5971_v49  ;;  %v4339_v48 = vld [vmem:[#allocation5 + $0x28] sm:$0xf0]  ;;  %v6000_v29 = vor.u32 %v4985_v50, %v4337_v19  ;;  %2023 = vmatpush.bf16.msrb.mxu2 %v5986_v47 }
 0x106   : > { %8276 = vst [vmem:[#allocation77_spill] sm:$0xff] %v5964_v56  ;;  %4325 = vmatmul.msk.bf16.gmra.mxu3 %vm433_vm0, %v5708_v6 }
 0x107   : > { %8277 = vst [vmem:[#allocation78_spill] sm:$0xff] %v5966_v32  ;;  %2009 = vmatpush.bf16.msrb.mxu1 %v5984_v25  ;;  %1996 = vmatpush.bf16.msrb.mxu0 %v6000_v29  ;;  %v5038_v32 = vld [vmem:[#allocation5 + $0x1d4] sm:$0xf] }
 0x108   : > { %8278 = vst [vmem:[#allocation79_spill] sm:$0xff] %v5968_v62  ;;  %v6013_v56 = vpop.f32.mrf.mxu3 }
 0x109   : > { %8279 = vst [vmem:[#allocation80_spill] sm:$0xff] %v5971_v49  ;;  %v6011_v49 = vor.u32 %v5045_v55, %v4595_v20  ;;  %v6017_v19 = vpop.f32.mrf.mxu1 }
 0x10a   : > { %8280 = vst [vmem:[#allocation81_spill] sm:$0xff] %v5973_v23  ;;  %v4593_v23 = vld [vmem:[#allocation5 + $0x208] sm:$0xf]  ;;  %v6015_v6 = vpop.f32.mrf.mxu0 }
 0x10b   : > { %8281 = vst [vmem:[#allocation82_spill] sm:$0xff] %v5975_v4  ;;  %v6004_v2 = vor.u32 %v5049_v3, %v4593_v23 }
 0x10c   : > { %8282 = vst [vmem:[#allocation83_spill] sm:$0xff] %v5977_v13  ;;  %v5991_v13 = vor.u32 %v5053_v1, %v4627_v46  ;;  %v6006_v1 = vor.u32 %v4981_v27, %v4339_v48  ;;  %v6008_v46 = vpop.f32.mrf.mxu2 }
 0x10d   : > { %8283 = vst [vmem:[#allocation84_spill] sm:$0xff] %v5980_v41  ;;  %2010 = vmatpush.bf16.msrb.mxu1 %v6004_v2  ;;  %v4825_v41 = vld [vmem:[#allocation5 + $0x3d0] sm:$0xf] }
 0x10e   : > { %8284 = vst [vmem:[#allocation85_spill] sm:$0xff] %v5984_v25  ;;  %2037 = vmatpush.bf16.msrb.mxu3 %v5991_v13  ;;  %2024 = vmatpush.bf16.msrb.mxu2 %v6006_v1  ;;  %v1257_v25 = vld [vmem:[#allocation2] sm:$0xff] }
 0x10f   : > { %8285 = vst [vmem:[#allocation86_spill] sm:$0xff] %v5986_v47  ;;  %v4569_v47 = vld [vmem:[#allocation5 + $0x1d0] sm:$0xf] }
 0x110   : > { %8286 = vst [vmem:[#allocation87_spill] sm:$0xff] %v5991_v13  ;;  %v6025_v23 = vpop.f32.mrf.mxu3  ;;  %v1258_v13 = vld [vmem:[#allocation2 + $0x18] sm:$0xff] }
 0x111   : > { %8287 = vst [vmem:[#allocation88_spill] sm:$0xff] %v6000_v29  ;;  %v6029_v3 = vpop.f32.mrf.mxu1 }
 0x112   : > { %8288 = vst [vmem:[#allocation89_spill] sm:$0xff] %v6004_v2  ;;  %2038 = vmatpush.bf16.msrb.mxu3 %v6011_v49  ;;  %v6027_v50 = vpop.f32.mrf.mxu0  ;;  %v6050_v2 = vld [vmem:[%s7920_s5] sm:$0xff] }
 0x113   : > { %8289 = vst [vmem:[#allocation90_spill] sm:$0xff] %v6006_v1  ;;  %4314 = vmatmul.msk.bf16.gmra.mxu0 %vm433_vm0, %v5755_v39  ;;  %v1256_v1 = vld [vmem:[#allocation2 + $0x10] sm:$0xff]  ;;  %v6053_v29 = vperm.slane %v6050_v2, 0 }
 0x114   : > { %8290 = vst [vmem:[#allocation91_spill] sm:$0xff] %v6008_v46  ;;  %v6023_v48 = vpop.f32.mrf.mxu2  ;;  %4318 = vmatmul.msk.bf16.gmra.mxu1 %vm433_vm0, %v5755_v39  ;;  %4322 = vmatmul.msk.bf16.gmra.mxu2 %vm433_vm0, %v5755_v39 }
 0x115   : > { %8291 = vst [vmem:[#allocation92_spill] sm:$0xff] %v6011_v49 }
 0x116   : > { %8292 = vst [vmem:[#allocation93_spill] sm:$0xff] %v6013_v56  ;;  %4326 = vmatmul.msk.bf16.gmra.mxu3 %vm433_vm0, %v5755_v39  ;;  %v1259_v39 = vld [vmem:[#allocation2 + $0x8] sm:$0xff]  ;;  %v4827_v56 = vld [vmem:[#allocation5 + $0x3f0] sm:$0xf0] }
 0x117   : > { %8293 = vst [vmem:[#allocation94_spill] sm:$0xff] %v6015_v6  ;;  %v5102_v6 = vld [vmem:[#allocation5 + $0x3d4] sm:$0xf] }
 0x118   : > { %8294 = vst [vmem:[#allocation95_spill] sm:$0xff] %v6017_v19  ;;  %v6041_v55 = vpop.f32.mrf.mxu3  ;;  %v6064_v19 = vpack.c.bf16 %v1259_v39, %v1257_v25  ;;  %v6076_v25 = vor.u32 %v5102_v6, %v4827_v56  ;;  %v5098_v39 = vld [vmem:[#allocation5 + $0x3ac] sm:$0xf0]  ;;  %v6087_v56 = vperm.slane %v6050_v2, 3 }
 0x119   : > { %8295 = vst [vmem:[#allocation96_spill] sm:$0xff] %v6023_v48  ;;  %v6045_v49 = vpop.f32.mrf.mxu1  ;;  %v6062_v48 = vperm.slane %v6050_v2, 1  ;;  %v4505_v6 = vld [vmem:[#allocation5 + $0x150] sm:$0xf] }
 0x11a   : > { %8296 = vst [vmem:[#allocation97_spill] sm:$0xff] %v6025_v23  ;;  %v6043_v20 = vpop.f32.mrf.mxu0 }
 0x11b   : > { %8297 = vst [vmem:[#allocation98_spill] sm:$0xff] %v6027_v50 }
 0x11c   : > { %8298 = vst [vmem:[#allocation99_spill] sm:$0xff] %v6029_v3  ;;  %v6039_v27 = vpop.f32.mrf.mxu2  ;;  %v4571_v3 = vld [vmem:[#allocation5 + $0x1f0] sm:$0xf0] }
 0x11d   : > { %8299 = vst [vmem:[#allocation100_spill] sm:$0xff] %v6039_v27  ;;  %v5042_v27 = vld [vmem:[#allocation5 + $0x1ec] sm:$0xf0] }
 0x11e   : > { %8300 = vst [vmem:[#allocation101_spill] sm:$0xff] %v6041_v55  ;;  %v6067_v62 = vor.u32 %v5042_v27, %v4569_v47  ;;  %v4761_v27 = vld [vmem:[#allocation5 + $0x350] sm:$0xf] }
 0x11f   : > { %8301 = vst [vmem:[#allocation102_spill] sm:$0xff] %v6043_v20  ;;  %v6057_v20 = vpack.c.bf16 %v1258_v13, %v1256_v1 }
 0x120   : > { %8302 = vst [vmem:[#allocation103_spill] sm:$0xff] %v6045_v49  ;;  %v5106_v49 = vld [vmem:[#allocation5 + $0x3ec] sm:$0xf0]  ;;  %v6059_v50 = vpop.f32.mrf.mxu3 }
 0x121   : > { %8304 = vst [vmem:[#allocation105_spill] sm:$0xff] %v6059_v50  ;;  %v788_v4 = vpop.f32.mrf.mxu1  ;;  %v6070_v1 = vor.u32 %v5106_v49, %v4825_v41  ;;  %v4537_v50 = vld [vmem:[#allocation5 + $0x190] sm:$0xf]  ;;  %v4795_v49 = vld [vmem:[#allocation5 + $0x3b0] sm:$0xf0]  ;;  %v6093_v41 = vor.u32 %v5098_v39, %v4793_v59 }
 0x122   : > { %v759_v23 = vpop.f32.mrf.mxu0  ;;  %8305 = vst [vmem:[#allocation106_spill] sm:$0xff] %v6067_v62  ;;  %v789_v13 = vadd.f32 %v788_v4, %v5636_v43  ;;  %v5094_v43 = vld [vmem:[#allocation5 + $0x394] sm:$0xf]  ;;  %v6084_v4 = vperm.slane %v6050_v2, 2 }
 0x123   : > { %v760_v46 = vadd.f32 %v759_v23, %v5634_v42  ;;  %8306 = vst [vmem:[#allocation107_spill] sm:$0xff] %v6070_v1  ;;  %1941 = vmatmul.bf16.vlgmr.msra.gmra.mxu0 %v6057_v20  ;;  %v5030_v42 = vld [vmem:[#allocation5 + $0x194] sm:$0xf]  ;;  %v6100_v31 = vor.u32 %v5094_v43, %v4795_v49  ;;  %v4473_v49 = vld [vmem:[#allocation5 + $0x110] sm:$0xf] }
 0x124   : > { %v6055_v55 = vpop.f32.mrf.mxu2  ;;  %8308 = vst [vmem:[#allocation109_spill] sm:$0xff] %v6076_v25  ;;  %v4539_v23 = vld [vmem:[#allocation5 + $0x1b0] sm:$0xf0]  ;;  %v1001_v47 = vadd.f32 %v6062_v48, %v789_v13  ;;  %1955 = vmatmul.bf16.vlgmr.msra.gmra.mxu1 %v6064_v19  ;;  %1969 = vmatmul.bf16.vlgmr.msra.gmra.mxu2 %v6057_v20 }
 0x125   : > { %8303 = vst [vmem:[#allocation104_spill] sm:$0xff] %v6055_v55  ;;  %v6072_v55 = vor.u32 %v5038_v32, %v4571_v3  ;;  %v1000_v14 = vadd.f32 %v6053_v29, %v760_v46  ;;  %2045 = vmatpush.bf16.msra.mxu0 %v6067_v62  ;;  %v6089_v32 = vor.u32 %v5034_v37, %v4537_v50  ;;  %v5026_v3 = vld [vmem:[#allocation5 + $0x16c] sm:$0xf0]  ;;  %v5022_v50 = vld [vmem:[#allocation5 + $0x154] sm:$0xf] }
 0x126   : > { %1983 = vmatmul.bf16.vlgmr.msra.gmra.mxu3 %v6064_v19  ;;  %2059 = vmatpush.bf16.msra.mxu1 %v6070_v1  ;;  %8310 = vst [vmem:[#allocation111_spill] sm:$0xff] %v6093_v41  ;;  %v6095_v46 = vor.u32 %v5030_v42, %v4539_v23  ;;  %v5090_v37 = vld [vmem:[#allocation5 + $0x36c] sm:$0xf0]  ;;  %v5086_v39 = vld [vmem:[#allocation5 + $0x354] sm:$0xf] }
 0x127   : > { %8307 = vst [vmem:[#allocation108_spill] sm:$0xff] %v6072_v55  ;;  %2073 = vmatpush.bf16.msra.mxu2 %v6072_v55  ;;  %v6097_v13 = vpack.c.bf16 %v1001_v47, %v1000_v14  ;;  %2087 = vmatpush.bf16.msra.mxu3 %v6076_v25  ;;  %v4763_v42 = vld [vmem:[#allocation5 + $0x370] sm:$0xf0]  ;;  %v6109_v47 = vor.u32 %v5026_v3, %v4505_v6  ;;  %v5018_v25 = vld [vmem:[#allocation5 + $0x12c] sm:$0xf0] }
 0x128   : > { %8309 = vst [vmem:[#allocation110_spill] sm:$0xff] %v6089_v32  ;;  %v846_v55 = vpop.f32.mrf.mxu3  ;;  %v5082_v6 = vld [vmem:[#allocation5 + $0x32c] sm:$0xf0]  ;;  %v5014_v3 = vld [vmem:[#allocation5 + $0x114] sm:$0xf] }
 0x129   : > { %8311 = vst [vmem:[#allocation112_spill] sm:$0xff] %v6095_v46  ;;  %v847_v23 = vadd.f32 %v846_v55, %v5648_v45  ;;  %2046 = vmatpush.bf16.msra.mxu0 %v6089_v32  ;;  %v6107_v14 = vpop.f32.mrf.mxu1  ;;  %v6120_v55 = vor.u32 %v5086_v39, %v4763_v42  ;;  %v5078_v32 = vld [vmem:[#allocation5 + $0x314] sm:$0xf]  ;;  %v4441_v39 = vld [vmem:[#allocation5 + $0xd0] sm:$0xf] }
 0x12a   : > { %8312 = vst [vmem:[#allocation113_spill] sm:$0xff] %v6100_v31  ;;  %v6103_v59 = vpop.f32.mrf.mxu0  ;;  %2060 = vmatpush.bf16.msra.mxu1 %v6093_v41  ;;  %v4731_v41 = vld [vmem:[#allocation5 + $0x330] sm:$0xf0]  ;;  %v5010_v42 = vld [vmem:[#allocation5 + $0xec] sm:$0xf0] }
 0x12b   : > { %8313 = vst [vmem:[#allocation114_spill] sm:$0xff] %v6103_v59  ;;  %2074 = vmatpush.bf16.msra.mxu2 %v6095_v46  ;;  %v4729_v59 = vld [vmem:[#allocation5 + $0x310] sm:$0xf]  ;;  %v1003_v45 = vadd.f32 %v6087_v56, %v847_v23  ;;  %2088 = vmatpush.bf16.msra.mxu3 %v6100_v31 }
 0x12c   : > { %v817_v62 = vpop.f32.mrf.mxu2  ;;  %8314 = vst [vmem:[#allocation115_spill] sm:$0xff] %v6109_v47  ;;  %v4697_v23 = vld [vmem:[#allocation5 + $0x2d0] sm:$0xf] }
 0x12d   : > { %v818_v1 = vadd.f32 %v817_v62, %v5646_v44  ;;  %v6114_v44 = vor.u32 %v5090_v37, %v4761_v27  ;;  %v6116_v62 = vor.u32 %v5022_v50, %v4507_v28  ;;  %8317 = vst [vmem:[#allocation118_spill] sm:$0xff] %v6120_v55  ;;  %2047 = vmatpush.bf16.msra.mxu0 %v6109_v47  ;;  %v4409_v46 = vld [vmem:[#allocation5 + $0x90] sm:$0xf] }
 0x12e   : > { %v6123_v27 = vor.u32 %v5018_v25, %v4473_v49  ;;  %v6129_v37 = vor.u32 %v5082_v6, %v4729_v59  ;;  %v6136_v47 = vor.u32 %v5078_v32, %v4731_v41  ;;  %v5074_v25 = vld [vmem:[#allocation5 + $0x2ec] sm:$0xf0]  ;;  %v4443_v49 = vld [vmem:[#allocation5 + $0xf0] sm:$0xf0] }
 0x12f   : > { %v1002_v43 = vadd.f32 %v6084_v4, %v818_v1  ;;  %8315 = vst [vmem:[#allocation116_spill] sm:$0xff] %v6114_v44  ;;  %v4475_v1 = vld [vmem:[#allocation5 + $0x130] sm:$0xf0]  ;;  %2061 = vmatpush.bf16.msra.mxu1 %v6114_v44  ;;  %2075 = vmatpush.bf16.msra.mxu2 %v6116_v62  ;;  %v6147_v41 = vor.u32 %v5074_v25, %v4697_v23 }
 0x130   : > { %8316 = vst [vmem:[#allocation117_spill] sm:$0xff] %v6116_v62  ;;  %v6131_v50 = vor.u32 %v5014_v3, %v4475_v1  ;;  %2089 = vmatpush.bf16.msra.mxu3 %v6120_v55  ;;  %v5070_v62 = vld [vmem:[#allocation5 + $0x2d4] sm:$0xf]  ;;  %v6142_v1 = vor.u32 %v5010_v42, %v4441_v39  ;;  %v5066_v39 = vld [vmem:[#allocation5 + $0x2ac] sm:$0xf0] }
 0x131   : > { %8318 = vst [vmem:[#allocation119_spill] sm:$0xff] %v6123_v27  ;;  %v6125_v28 = vpack.c.bf16 %v1003_v45, %v1002_v43  ;;  %v5006_v43 = vld [vmem:[#allocation5 + $0xd4] sm:$0xf]  ;;  %v6138_v45 = vpop.f32.mrf.mxu3  ;;  %2048 = vmatpush.bf16.msra.mxu0 %v6123_v27  ;;  %v793_v3 = vpop.f32.mrf.mxu1 }
 0x132   : > { %8320 = vst [vmem:[#allocation121_spill] sm:$0xff] %v6129_v37  ;;  %v764_v44 = vpop.f32.mrf.mxu0  ;;  %v4699_v59 = vld [vmem:[#allocation5 + $0x2f0] sm:$0xf0]  ;;  %v794_v32 = vadd.f32 %v793_v3, %v5663_v52  ;;  %v6149_v55 = vor.u32 %v5006_v43, %v4443_v49  ;;  %v4377_v49 = vld [vmem:[#allocation5 + $0x50] sm:$0xf] }
 0x133   : > { %8319 = vst [vmem:[#allocation120_spill] sm:$0xff] %v6125_v28  ;;  %v765_v6 = vadd.f32 %v764_v44, %v5661_v51  ;;  %2062 = vmatpush.bf16.msra.mxu1 %v6129_v37  ;;  %2076 = vmatpush.bf16.msra.mxu2 %v6131_v50  ;;  %v6154_v44 = vor.u32 %v5070_v62, %v4699_v59  ;;  %v4998_v42 = vld [vmem:[#allocation5 + $0x94] sm:$0xf]  ;;  %v4633_v3 = vld [vmem:[#allocation5 + $0x250] sm:$0xf] }
 0x134   : > { %8321 = vst [vmem:[#allocation122_spill] sm:$0xff] %v6131_v50  ;;  %v6134_v31 = vpop.f32.mrf.mxu2  ;;  %2090 = vmatpush.bf16.msra.mxu3 %v6136_v47  ;;  %1997 = vmatmul.bf16.vlgmr.msrb.gmra.mxu0 %v6057_v20  ;;  %v4411_v37 = vld [vmem:[#allocation5 + $0xb0] sm:$0xf0]  ;;  %v1017_v52 = vadd.f32 %v6062_v48, %v794_v32  ;;  %v5058_v32 = vld [vmem:[#allocation5 + $0x26c] sm:$0xf0] }
 0x135   : > { %8322 = vst [vmem:[#allocation123_spill] sm:$0xff] %v6134_v31  ;;  %v4665_v31 = vld [vmem:[#allocation5 + $0x290] sm:$0xf]  ;;  %v1016_v51 = vadd.f32 %v6053_v29, %v765_v6  ;;  %2025 = vmatmul.bf16.vlgmr.msrb.gmra.mxu2 %v6057_v20  ;;  %2011 = vmatmul.bf16.vlgmr.msrb.gmra.mxu1 %v6064_v19  ;;  %v5062_v23 = vld [vmem:[#allocation5 + $0x294] sm:$0xf]  ;;  %v6167_v59 = vor.u32 %v4998_v42, %v4411_v37 }
 0x136   : > { %8323 = vst [vmem:[#allocation124_spill] sm:$0xff] %v6136_v47  ;;  %v4667_v25 = vld [vmem:[#allocation5 + $0x2b0] sm:$0xf0]  ;;  %2049 = vmatpush.bf16.msra.mxu0 %v6142_v1  ;;  %2039 = vmatmul.bf16.vlgmr.msrb.gmra.mxu3 %v6064_v19  ;;  %v6165_v62 = vor.u32 %v5066_v39, %v4665_v31  ;;  %v4994_v6 = vld [vmem:[#allocation5 + $0x6c] sm:$0xf0] }
 0x137   : > { %8324 = vst [vmem:[#allocation125_spill] sm:$0xff] %v6138_v45  ;;  %v5002_v45 = vld [vmem:[#allocation5 + $0xac] sm:$0xf0]  ;;  %2063 = vmatpush.bf16.msra.mxu1 %v6147_v41  ;;  %2077 = vmatpush.bf16.msra.mxu2 %v6149_v55  ;;  %v6169_v47 = vpack.c.bf16 %v1017_v52, %v1016_v51  ;;  %v6172_v50 = vor.u32 %v5062_v23, %v4667_v25  ;;  %v5054_v31 = vld [vmem:[#allocation5 + $0x254] sm:$0xf] }
 0x138   : > { %8325 = vst [vmem:[#allocation126_spill] sm:$0xff] %v6142_v1  ;;  %v6161_v43 = vor.u32 %v5002_v45, %v4409_v46  ;;  %2091 = vmatpush.bf16.msra.mxu3 %v6154_v44  ;;  %v4990_v46 = vld [vmem:[#allocation5 + $0x54] sm:$0xf]  ;;  %v6178_v52 = vor.u32 %v4994_v6, %v4377_v49  ;;  %v4345_v23 = vld [vmem:[#allocation5 + $0x10] sm:$0xf] }
 0x139   : > { %8326 = vst [vmem:[#allocation127_spill] sm:$0xff] %v6147_v41  ;;  %v4379_v45 = vld [vmem:[#allocation5 + $0x70] sm:$0xf0]  ;;  %v851_v27 = vpop.f32.mrf.mxu3  ;;  %v795_v42 = vpop.f32.mrf.mxu1  ;;  %v4986_v25 = vld [vmem:[#allocation5 + $0x2c] sm:$0xf0] }
 0x13a   : > { %8327 = vst [vmem:[#allocation128_spill] sm:$0xff] %v6149_v55  ;;  %v766_v55 = vpop.f32.mrf.mxu0  ;;  %v4635_v39 = vld [vmem:[#allocation5 + $0x270] sm:$0xf0]  ;;  %v852_v37 = vadd.f32 %v851_v27, %v5687_v60  ;;  %2050 = vmatpush.bf16.msra.mxu0 %v6161_v43  ;;  %v6186_v60 = vor.u32 %v4990_v46, %v4379_v45  ;;  %v4601_v27 = vld [vmem:[#allocation5 + $0x210] sm:$0xf]  ;;  %v6195_v45 = vor.u32 %v4986_v25, %v4345_v23 }
 0x13b   : > { %8328 = vst [vmem:[#allocation129_spill] sm:$0xff] %v6154_v44  ;;  %v767_v51 = vadd.f32 %v766_v55, %v5689_v61  ;;  %2064 = vmatpush.bf16.msra.mxu1 %v6165_v62  ;;  %2078 = vmatpush.bf16.msra.mxu2 %v6167_v59  ;;  %v4982_v61 = vld [vmem:[#allocation5 + $0x14] sm:$0xf]  ;;  %v6191_v6 = vor.u32 %v5054_v31, %v4635_v39  ;;  %v4833_v46 = vld [vmem:[#allocation5 + $0x3d8] sm:$0xf] }
 0x13c   : > { %8329 = vst [vmem:[#allocation130_spill] sm:$0xff] %v6161_v43  ;;  %v822_v1 = vpop.f32.mrf.mxu2  ;;  %v1019_v55 = vadd.f32 %v6087_v56, %v852_v37  ;;  %2092 = vmatpush.bf16.msra.mxu3 %v6172_v50  ;;  %v5039_v37 = vld [vmem:[#allocation5 + $0x1dc] sm:$0xf] }
 0x13d   : > { %8330 = vst [vmem:[#allocation131_spill] sm:$0xff] %v6165_v62  ;;  %v823_v41 = vadd.f32 %v822_v1, %v5685_v58  ;;  %v796_v58 = vadd.f32 %v795_v42, %v5697_v0  ;;  %v5050_v1 = vld [vmem:[#allocation5 + $0x22c] sm:$0xf0]  ;;  %v1024_v49 = vadd.f32 %v6053_v29, %v767_v51  ;;  %v5043_v0 = vld [vmem:[#allocation5 + $0x1f4] sm:$0xf0] }
 0x13e   : > { %8331 = vst [vmem:[#allocation132_spill] sm:$0xff] %v6167_v59  ;;  %v4577_v59 = vld [vmem:[#allocation5 + $0x1d8] sm:$0xf]  ;;  %2051 = vmatpush.bf16.msra.mxu0 %v6178_v52  ;;  %v4579_v43 = vld [vmem:[#allocation5 + $0x1f8] sm:$0xf0]  ;;  %v6201_v31 = vor.u32 %v5050_v1, %v4601_v27 }
 0x13f   : > { %8332 = vst [vmem:[#allocation133_spill] sm:$0xff] %v6169_v47  ;;  %v6180_v47 = vor.u32 %v5058_v32, %v4633_v3  ;;  %v1018_v44 = vadd.f32 %v6084_v4, %v823_v41  ;;  %v4347_v41 = vld [vmem:[#allocation5 + $0x30] sm:$0xf0]  ;;  %v1025_v62 = vadd.f32 %v6062_v48, %v796_v58  ;;  %v5107_v42 = vld [vmem:[#allocation5 + $0x3f4] sm:$0xf0]  ;;  %2079 = vmatpush.bf16.msra.mxu2 %v6186_v60 }
 0x140   : > { %8333 = vst [vmem:[#allocation134_spill] sm:$0xff] %v6172_v50  ;;  %v5046_v3 = vld [vmem:[#allocation5 + $0x214] sm:$0xf]  ;;  %v6203_v39 = vor.u32 %v4982_v61, %v4347_v41  ;;  %v5103_v51 = vld [vmem:[#allocation5 + $0x3dc] sm:$0xf]  ;;  %2093 = vmatpush.bf16.msra.mxu3 %v6191_v6  ;;  %v6215_v27 = vor.u32 %v5039_v37, %v4579_v43 }
 0x141   : > { %8334 = vst [vmem:[#allocation135_spill] sm:$0xff] %v6178_v52  ;;  %v4603_v32 = vld [vmem:[#allocation5 + $0x230] sm:$0xf0]  ;;  %v6197_v50 = vpack.c.bf16 %v1019_v55, %v1018_v44  ;;  %2065 = vmatpush.bf16.msra.mxu1 %v6180_v47  ;;  %v4835_v58 = vld [vmem:[#allocation5 + $0x3f8] sm:$0xf0]  ;;  %v6205_v28 = vpack.c.bf16 %v1025_v62, %v1024_v49  ;;  %v6210_v52 = vor.u32 %v5043_v0, %v4577_v59  ;;  %v853_v55 = vpop.f32.mrf.mxu3 }
 0x142   : > { %8335 = vst [vmem:[#allocation136_spill] sm:$0xff] %v6180_v47  ;;  %v6208_v25 = vor.u32 %v5046_v3, %v4603_v32  ;;  %v6213_v47 = vor.u32 %v5107_v42, %v4833_v46  ;;  %v4545_v1 = vld [vmem:[#allocation5 + $0x198] sm:$0xf]  ;;  %v854_v62 = vadd.f32 %v853_v55, %v5710_v7  ;;  %2052 = vmatpush.bf16.msra.mxu0 %v6195_v45  ;;  %v798_v3 = vpop.f32.mrf.mxu1  ;;  %v4547_v0 = vld [vmem:[#allocation5 + $0x1b8] sm:$0xf0] }
 0x143   : > { %8336 = vst [vmem:[#allocation137_spill] sm:$0xff] %v6186_v60  ;;  %v5035_v61 = vld [vmem:[#allocation5 + $0x1b4] sm:$0xf0]  ;;  %v6220_v59 = vor.u32 %v5103_v51, %v4835_v58  ;;  %2080 = vmatpush.bf16.msra.mxu2 %v6203_v39  ;;  %v799_v43 = vadd.f32 %v798_v3, %v5714_v9  ;;  %v5095_v42 = vld [vmem:[#allocation5 + $0x39c] sm:$0xf] }
 0x144   : > { %8337 = vst [vmem:[#allocation138_spill] sm:$0xff] %v6191_v6  ;;  %v824_v23 = vpop.f32.mrf.mxu2  ;;  %v4801_v41 = vld [vmem:[#allocation5 + $0x398] sm:$0xf]  ;;  %v4803_v7 = vld [vmem:[#allocation5 + $0x3b8] sm:$0xf0]  ;;  %v1027_v37 = vadd.f32 %v6087_v56, %v854_v62  ;;  %2094 = vmatpush.bf16.msra.mxu3 %v6208_v25 }
 0x145   : > { %8338 = vst [vmem:[#allocation139_spill] sm:$0xff] %v6195_v45  ;;  %v825_v44 = vadd.f32 %v824_v23, %v5705_v5  ;;  %v5099_v32 = vld [vmem:[#allocation5 + $0x3b4] sm:$0xf0]  ;;  %v5031_v5 = vld [vmem:[#allocation5 + $0x19c] sm:$0xf]  ;;  %2066 = vmatpush.bf16.msra.mxu1 %v6201_v31  ;;  %v1033_v51 = vadd.f32 %v6062_v48, %v799_v43  ;;  %2053 = vmatmul.bf16.vlgmr.msra.gmra.mxu0 %v6057_v20 }
 0x146   : > { %8339 = vst [vmem:[#allocation140_spill] sm:$0xff] %v6197_v50  ;;  %v769_v50 = vpop.f32.mrf.mxu0  ;;  %2101 = vmatpush.bf16.msrb.mxu0 %v6210_v52  ;;  %v6235_v58 = vor.u32 %v5099_v32, %v4801_v41  ;;  %v6237_v9 = vor.u32 %v5031_v5, %v4547_v0  ;;  %v4513_v23 = vld [vmem:[#allocation5 + $0x158] sm:$0xf]  ;;  %v6241_v62 = vor.u32 %v5095_v42, %v4803_v7  ;;  %v5087_v41 = vld [vmem:[#allocation5 + $0x35c] sm:$0xf] }
 0x147   : > { %8340 = vst [vmem:[#allocation141_spill] sm:$0xff] %v6201_v31  ;;  %v770_v49 = vadd.f32 %v769_v50, %v5712_v8  ;;  %v1026_v46 = vadd.f32 %v6084_v4, %v825_v44  ;;  %v6230_v50 = vor.u32 %v5035_v61, %v4545_v1  ;;  %2129 = vmatpush.bf16.msrb.mxu2 %v6215_v27  ;;  %v5027_v44 = vld [vmem:[#allocation5 + $0x174] sm:$0xf0]  ;;  %v5023_v61 = vld [vmem:[#allocation5 + $0x15c] sm:$0xf] }
 0x148   : > { %8341 = vst [vmem:[#allocation142_spill] sm:$0xff] %v6203_v39  ;;  %v4769_v55 = vld [vmem:[#allocation5 + $0x358] sm:$0xf]  ;;  %2143 = vmatpush.bf16.msrb.mxu3 %v6220_v59  ;;  %2081 = vmatmul.bf16.vlgmr.msra.gmra.mxu2 %v6057_v20  ;;  %v4771_v32 = vld [vmem:[#allocation5 + $0x378] sm:$0xf0]  ;;  %v6251_v43 = vor.u32 %v5027_v44, %v4513_v23 }
 0x149   : > { %8342 = vst [vmem:[#allocation143_spill] sm:$0xff] %v6205_v28  ;;  %v1032_v8 = vadd.f32 %v6053_v29, %v770_v49  ;;  %2115 = vmatpush.bf16.msrb.mxu1 %v6213_v47  ;;  %v5091_v1 = vld [vmem:[#allocation5 + $0x374] sm:$0xf0]  ;;  %v4515_v49 = vld [vmem:[#allocation5 + $0x178] sm:$0xf0]  ;;  %v6243_v3 = vpack.c.bf16 %v1027_v37, %v1026_v46  ;;  %2095 = vmatmul.bf16.vlgmr.msra.gmra.mxu3 %v6064_v19  ;;  %v856_v42 = vpop.f32.mrf.mxu3 }
 0x14a   : > { %8343 = vst [vmem:[#allocation144_spill] sm:$0xff] %v6208_v25  ;;  %2067 = vmatmul.bf16.vlgmr.msra.gmra.mxu1 %v6064_v19  ;;  %2102 = vmatpush.bf16.msrb.mxu0 %v6230_v50  ;;  %v6256_v37 = vor.u32 %v5091_v1, %v4769_v55  ;;  %v857_v23 = vadd.f32 %v856_v42, %v5726_v11  ;;  %v800_v28 = vpop.f32.mrf.mxu1 }
 0x14b   : > { %8344 = vst [vmem:[#allocation145_spill] sm:$0xff] %v6210_v52  ;;  %v6247_v5 = vpack.c.bf16 %v1033_v51, %v1032_v8  ;;  %2130 = vmatpush.bf16.msrb.mxu2 %v6237_v9  ;;  %v4481_v8 = vld [vmem:[#allocation5 + $0x118] sm:$0xf]  ;;  %v801_v1 = vadd.f32 %v800_v28, %v5730_v16 }
 0x14c   : > { %8345 = vst [vmem:[#allocation146_spill] sm:$0xff] %v6213_v47  ;;  %v827_v0 = vpop.f32.mrf.mxu2  ;;  %v5019_v51 = vld [vmem:[#allocation5 + $0x134] sm:$0xf0]  ;;  %2144 = vmatpush.bf16.msrb.mxu3 %v6241_v62  ;;  %v1035_v47 = vadd.f32 %v6087_v56, %v857_v23 }
 0x14d   : > { %8346 = vst [vmem:[#allocation147_spill] sm:$0xff] %v6215_v27  ;;  %2116 = vmatpush.bf16.msrb.mxu1 %v6235_v58  ;;  %v828_v46 = vadd.f32 %v827_v0, %v5724_v10  ;;  %v5015_v10 = vld [vmem:[#allocation5 + $0x11c] sm:$0xf]  ;;  %v6270_v11 = vor.u32 %v5019_v51, %v4481_v8  ;;  %v4449_v16 = vld [vmem:[#allocation5 + $0xd8] sm:$0xf] }
 0x14e   : > { %8347 = vst [vmem:[#allocation148_spill] sm:$0xff] %v6220_v59  ;;  %v771_v7 = vpop.f32.mrf.mxu0  ;;  %v5083_v59 = vld [vmem:[#allocation5 + $0x334] sm:$0xf0]  ;;  %v4483_v0 = vld [vmem:[#allocation5 + $0x138] sm:$0xf0]  ;;  %2103 = vmatpush.bf16.msrb.mxu0 %v6251_v43 }
 0x14f   : > { %8348 = vst [vmem:[#allocation149_spill] sm:$0xff] %v6230_v50  ;;  %v772_v44 = vadd.f32 %v771_v7, %v5728_v12  ;;  %v1034_v55 = vadd.f32 %v6084_v4, %v828_v46  ;;  %v1041_v12 = vadd.f32 %v6062_v48, %v801_v1  ;;  %v5011_v28 = vld [vmem:[#allocation5 + $0xf4] sm:$0xf0]  ;;  %v5007_v8 = vld [vmem:[#allocation5 + $0xdc] sm:$0xf] }
 0x150   : > { %8349 = vst [vmem:[#allocation150_spill] sm:$0xff] %v6235_v58  ;;  %v6263_v58 = vor.u32 %v5087_v41, %v4771_v32  ;;  %v6277_v32 = vor.u32 %v5015_v10, %v4483_v0  ;;  %v4705_v46 = vld [vmem:[#allocation5 + $0x2d8] sm:$0xf]  ;;  %v4451_v51 = vld [vmem:[#allocation5 + $0xf8] sm:$0xf0] }
 0x151   : > { %8350 = vst [vmem:[#allocation151_spill] sm:$0xff] %v6237_v9  ;;  %2117 = vmatpush.bf16.msrb.mxu1 %v6256_v37  ;;  %v5075_v7 = vld [vmem:[#allocation5 + $0x2f4] sm:$0xf0]  ;;  %v6282_v23 = vpack.c.bf16 %v1035_v47, %v1034_v55  ;;  %v4707_v1 = vld [vmem:[#allocation5 + $0x2f8] sm:$0xf0]  ;;  %v858_v0 = vpop.f32.mrf.mxu3  ;;  %v6294_v47 = vor.u32 %v5007_v8, %v4451_v51 }
 0x152   : > { %8351 = vst [vmem:[#allocation152_spill] sm:$0xff] %v6241_v62  ;;  %v1040_v62 = vadd.f32 %v6053_v29, %v772_v44  ;;  %2145 = vmatpush.bf16.msrb.mxu3 %v6263_v58  ;;  %v5071_v44 = vld [vmem:[#allocation5 + $0x2dc] sm:$0xf]  ;;  %2104 = vmatpush.bf16.msrb.mxu0 %v6270_v11  ;;  %v4417_v55 = vld [vmem:[#allocation5 + $0x98] sm:$0xf] }
 0x153   : > { %8352 = vst [vmem:[#allocation153_spill] sm:$0xff] %v6243_v3  ;;  %v6258_v3 = vor.u32 %v5023_v61, %v4515_v49  ;;  %v5079_v61 = vld [vmem:[#allocation5 + $0x31c] sm:$0xf] }
 0x154   : > { %8353 = vst [vmem:[#allocation154_spill] sm:$0xff] %v6247_v5  ;;  %v4737_v5 = vld [vmem:[#allocation5 + $0x318] sm:$0xf]  ;;  %v4739_v49 = vld [vmem:[#allocation5 + $0x338] sm:$0xf0] }
 0x155   : > { %8354 = vst [vmem:[#allocation155_spill] sm:$0xff] %v6251_v43  ;;  %2131 = vmatpush.bf16.msrb.mxu2 %v6258_v3  ;;  %v6275_v41 = vor.u32 %v5083_v59, %v4737_v5  ;;  %v6280_v42 = vor.u32 %v5079_v61, %v4739_v49  ;;  %v829_v59 = vpop.f32.mrf.mxu2  ;;  %v6287_v5 = vor.u32 %v5011_v28, %v4449_v16  ;;  %v5063_v8 = vld [vmem:[#allocation5 + $0x29c] sm:$0xf] }
 0x156   : > { %8355 = vst [vmem:[#allocation156_spill] sm:$0xff] %v6256_v37  ;;  %v6284_v37 = vpack.c.bf16 %v1041_v12, %v1040_v62  ;;  %v830_v10 = vadd.f32 %v829_v59, %v5752_v38  ;;  %v774_v61 = vpop.f32.mrf.mxu0  ;;  %v6292_v49 = vor.u32 %v5075_v7, %v4705_v46  ;;  %v5003_v62 = vld [vmem:[#allocation5 + $0xb4] sm:$0xf0]  ;;  %v859_v16 = vadd.f32 %v858_v0, %v5758_v40  ;;  %v4999_v38 = vld [vmem:[#allocation5 + $0x9c] sm:$0xf] }
 0x157   : > { %8356 = vst [vmem:[#allocation157_spill] sm:$0xff] %v6258_v3  ;;  %2118 = vmatpush.bf16.msrb.mxu1 %v6275_v41  ;;  %v4673_v12 = vld [vmem:[#allocation5 + $0x298] sm:$0xf]  ;;  %2146 = vmatpush.bf16.msrb.mxu3 %v6280_v42  ;;  %v775_v28 = vadd.f32 %v774_v61, %v5760_v53  ;;  %v4419_v59 = vld [vmem:[#allocation5 + $0xb8] sm:$0xf0]  ;;  %v6306_v40 = vor.u32 %v5003_v62, %v4417_v55 }
 0x158   : > { %8357 = vst [vmem:[#allocation158_spill] sm:$0xff] %v6263_v58  ;;  %v1042_v46 = vadd.f32 %v6084_v4, %v830_v10  ;;  %v4675_v51 = vld [vmem:[#allocation5 + $0x2b8] sm:$0xf0]  ;;  %v1043_v58 = vadd.f32 %v6087_v56, %v859_v16  ;;  %2105 = vmatpush.bf16.msrb.mxu0 %v6287_v5  ;;  %v4641_v10 = vld [vmem:[#allocation5 + $0x258] sm:$0xf] }
 0x159   : > { %8358 = vst [vmem:[#allocation159_spill] sm:$0xff] %v6270_v11  ;;  %2132 = vmatpush.bf16.msrb.mxu2 %v6277_v32  ;;  %v6316_v0 = vor.u32 %v5063_v8, %v4675_v51  ;;  %v5059_v61 = vld [vmem:[#allocation5 + $0x274] sm:$0xf0]  ;;  %v4991_v55 = vld [vmem:[#allocation5 + $0x5c] sm:$0xf] }
 0x15a   : > { %8359 = vst [vmem:[#allocation160_spill] sm:$0xff] %v6275_v41  ;;  %v5067_v41 = vld [vmem:[#allocation5 + $0x2b4] sm:$0xf0]  ;;  %v4387_v62 = vld [vmem:[#allocation5 + $0x78] sm:$0xf0]  ;;  %v6318_v16 = vpack.c.bf16 %v1043_v58, %v1042_v46  ;;  %v6328_v51 = vor.u32 %v5059_v61, %v4641_v10 }
 0x15b   : > { %8360 = vst [vmem:[#allocation161_spill] sm:$0xff] %v6277_v32  ;;  %2119 = vmatpush.bf16.msrb.mxu1 %v6292_v49  ;;  %v6330_v58 = vor.u32 %v4991_v55, %v4387_v62  ;;  %v4353_v46 = vld [vmem:[#allocation5 + $0x18] sm:$0xf]  ;;  %v5047_v55 = vld [vmem:[#allocation5 + $0x21c] sm:$0xf] }
 0x15c   : > { %8361 = vst [vmem:[#allocation162_spill] sm:$0xff] %v6280_v42  ;;  %v1048_v42 = vadd.f32 %v6053_v29, %v775_v28  ;;  %v5055_v28 = vld [vmem:[#allocation5 + $0x25c] sm:$0xf]  ;;  %2106 = vmatpush.bf16.msrb.mxu0 %v6306_v40 }
 0x15d   : > { %8362 = vst [vmem:[#allocation163_spill] sm:$0xff] %v6282_v23  ;;  %v803_v23 = vpop.f32.mrf.mxu1  ;;  %2133 = vmatpush.bf16.msrb.mxu2 %v6294_v47  ;;  %v4611_v62 = vld [vmem:[#allocation5 + $0x238] sm:$0xf0] }
 0x15e   : > { %8363 = vst [vmem:[#allocation164_spill] sm:$0xff] %v6284_v37  ;;  %v6299_v37 = vor.u32 %v5071_v44, %v4707_v1  ;;  %v804_v7 = vadd.f32 %v803_v23, %v5764_v57  ;;  %v6311_v44 = vor.u32 %v5067_v41, %v4673_v12  ;;  %v6313_v1 = vor.u32 %v4999_v38, %v4419_v59  ;;  %v4385_v57 = vld [vmem:[#allocation5 + $0x58] sm:$0xf]  ;;  %v832_v41 = vpop.f32.mrf.mxu2  ;;  %v861_v59 = vpop.f32.mrf.mxu3 }
 0x15f   : > { %8364 = vst [vmem:[#allocation165_spill] sm:$0xff] %v6287_v5  ;;  %v4995_v23 = vld [vmem:[#allocation5 + $0x74] sm:$0xf0]  ;;  %v833_v38 = vadd.f32 %v832_v41, %v5792_v33  ;;  %v776_v8 = vpop.f32.mrf.mxu0  ;;  %v4983_v33 = vld [vmem:[#allocation5 + $0x1c] sm:$0xf] }
 0x160   : > { %8365 = vst [vmem:[#allocation166_spill] sm:$0xff] %v6292_v49  ;;  %v1049_v53 = vadd.f32 %v6062_v48, %v804_v7  ;;  %2147 = vmatpush.bf16.msrb.mxu3 %v6299_v37  ;;  %v4643_v7 = vld [vmem:[#allocation5 + $0x278] sm:$0xf0]  ;;  %v6323_v12 = vor.u32 %v4995_v23, %v4385_v57  ;;  %2120 = vmatpush.bf16.msrb.mxu1 %v6311_v44 }
 0x161   : > { %8366 = vst [vmem:[#allocation167_spill] sm:$0xff] %v6294_v47  ;;  %2134 = vmatpush.bf16.msrb.mxu2 %v6313_v1  ;;  %v862_v57 = vadd.f32 %v861_v59, %v5797_v36  ;;  %v777_v23 = vadd.f32 %v776_v8, %v5799_v54  ;;  %v4355_v41 = vld [vmem:[#allocation5 + $0x38] sm:$0xf0]  ;;  %v1050_v10 = vadd.f32 %v6084_v4, %v833_v38  ;;  %v6360_v8 = vperm.slane %v6050_v2, 4 }
 0x162   : > { %8367 = vst [vmem:[#allocation168_spill] sm:$0xff] %v6299_v37  ;;  %v6320_v49 = vpack.c.bf16 %v1049_v53, %v1048_v42  ;;  %v4987_v42 = vld [vmem:[#allocation5 + $0x34] sm:$0xf0]  ;;  %2107 = vmatpush.bf16.msrb.mxu0 %v6323_v12 }
 0x163   : > { %8368 = vst [vmem:[#allocation169_spill] sm:$0xff] %v6306_v40  ;;  %v4609_v53 = vld [vmem:[#allocation5 + $0x218] sm:$0xf]  ;;  %v1051_v37 = vadd.f32 %v6087_v56, %v862_v57  ;;  %v6342_v36 = vor.u32 %v4987_v42, %v4353_v46 }
 0x164   : > { %8369 = vst [vmem:[#allocation170_spill] sm:$0xff] %v6311_v44  ;;  %2148 = vmatpush.bf16.msrb.mxu3 %v6316_v0  ;;  %v5051_v44 = vld [vmem:[#allocation5 + $0x234] sm:$0xf0]  ;;  %2121 = vmatpush.bf16.msrb.mxu1 %v6328_v51 }
 0x165   : > { %8370 = vst [vmem:[#allocation171_spill] sm:$0xff] %v6313_v1  ;;  %2135 = vmatpush.bf16.msrb.mxu2 %v6330_v58 }
 0x166   : > { %8371 = vst [vmem:[#allocation172_spill] sm:$0xff] %v6316_v0  ;;  %v1056_v0 = vadd.f32 %v6053_v29, %v777_v23  ;;  %2108 = vmatpush.bf16.msrb.mxu0 %v6342_v36  ;;  %v834_v59 = vpop.f32.mrf.mxu2  ;;  %v863_v46 = vpop.f32.mrf.mxu3 }
 0x167   : > { %8372 = vst [vmem:[#allocation173_spill] sm:$0xff] %v6318_v16  ;;  %v6335_v16 = vor.u32 %v5055_v28, %v4643_v7  ;;  %v6347_v28 = vor.u32 %v5051_v44, %v4609_v53  ;;  %v6349_v7 = vor.u32 %v4983_v33, %v4355_v41  ;;  %v835_v44 = vadd.f32 %v834_v59, %v5824_v15  ;;  %v875_v42 = vpop.f32.mrf.mxu0  ;;  %v8386_v59 = vld [vmem:[#allocation17_spill] sm:$0xff] }
 0x168   : > { %8373 = vst [vmem:[#allocation174_spill] sm:$0xff] %v6320_v49  ;;  %v805_v49 = vpop.f32.mrf.mxu1  ;;  %v6366_v53 = vperm.slane %v6050_v2, 5  ;;  %v6388_v41 = vperm.slane %v6050_v2, 6 }
 0x169   : > { %8374 = vst [vmem:[#allocation175_spill] sm:$0xff] %v6323_v12  ;;  %v806_v61 = vadd.f32 %v805_v49, %v5801_v63  ;;  %2149 = vmatpush.bf16.msrb.mxu3 %v6335_v16  ;;  %v6352_v63 = vor.u32 %v5047_v55, %v4611_v62  ;;  %v6354_v49 = vpack.c.bf16 %v1051_v37, %v1050_v10 }
 0x16a   : > { %8375 = vst [vmem:[#allocation176_spill] sm:$0xff] %v6328_v51  ;;  %2122 = vmatpush.bf16.msrb.mxu1 %v6347_v28  ;;  %2136 = vmatpush.bf16.msrb.mxu2 %v6349_v7  ;;  %v864_v37 = vadd.f32 %v863_v46, %v5829_v24  ;;  %v1058_v23 = vadd.f32 %v6084_v4, %v835_v44  ;;  %v8387_v44 = vld [vmem:[#allocation45_spill] sm:$0xff] }
 0x16b   : > { %8376 = vst [vmem:[#allocation177_spill] sm:$0xff] %v6330_v58  ;;  %v1057_v54 = vadd.f32 %v6062_v48, %v806_v61  ;;  %2438 = vmatpush.bf16.msra.mxu0 %v5732_v17  ;;  %v8385_v61 = vld [vmem:[#allocation43_spill] sm:$0xff] }
 0x16c   : > { %8377 = vst [vmem:[#allocation178_spill] sm:$0xff] %v6335_v16  ;;  %2109 = vmatmul.bf16.vlgmr.msrb.gmra.mxu0 %v6057_v20  ;;  %v1059_v33 = vadd.f32 %v6087_v56, %v864_v37  ;;  %v8388_v37 = vld [vmem:[#allocation20_spill] sm:$0xff] }
 0x16d   : > { %8378 = vst [vmem:[#allocation179_spill] sm:$0xff] %v6342_v36  ;;  %v6356_v38 = vpack.c.bf16 %v1057_v54, %v1056_v0  ;;  %2150 = vmatpush.bf16.msrb.mxu3 %v6352_v63  ;;  %v876_v0 = vadd.f32 %v875_v42, %v5831_v34  ;;  %2123 = vmatmul.bf16.vlgmr.msrb.gmra.mxu1 %v6064_v19 }
 0x16e   : > { %8379 = vst [vmem:[#allocation180_spill] sm:$0xff] %v6347_v28  ;;  %2466 = vmatpush.bf16.msra.mxu2 %v5736_v22  ;;  %2452 = vmatpush.bf16.msra.mxu1 %v5734_v21  ;;  %v962_v62 = vpop.f32.mrf.mxu3  ;;  %v8410_v21 = vld [vmem:[#allocation36_spill] sm:$0xff] }
 0x16f   : > { %8380 = vst [vmem:[#allocation181_spill] sm:$0xff] %v6349_v7  ;;  %2137 = vmatmul.bf16.vlgmr.msrb.gmra.mxu2 %v6057_v20  ;;  %v1004_v24 = vadd.f32 %v6360_v8, %v876_v0  ;;  %2439 = vmatpush.bf16.msra.mxu0 %v5743_v30  ;;  %v933_v20 = vpop.f32.mrf.mxu2  ;;  %v6397_v54 = vpop.f32.mrf.mxu0  ;;  %v963_v46 = vadd.f32 %v962_v62, %v8387_v44  ;;  %v8389_v0 = vld [vmem:[#allocation19_spill] sm:$0xff] }
 0x170   : > { %8381 = vst [vmem:[#allocation182_spill] sm:$0xff] %v6352_v63  ;;  %v904_v57 = vpop.f32.mrf.mxu1  ;;  %2151 = vmatmul.bf16.vlgmr.msrb.gmra.mxu3 %v6064_v19  ;;  %v6394_v19 = vperm.slane %v6050_v2, 7  ;;  %v934_v55 = vadd.f32 %v933_v20, %v8385_v61  ;;  %v8394_v20 = vld [vmem:[#allocation26_spill] sm:$0xff] }
 0x171   : > { %8382 = vst [vmem:[#allocation183_spill] sm:$0xff] %v6354_v49  ;;  %v905_v15 = vadd.f32 %v904_v57, %v5833_v18  ;;  %2480 = vmatpush.bf16.msra.mxu3 %v5739_v26  ;;  %v6385_v18 = vpack.c.bf16 %v1059_v33, %v1058_v23  ;;  %v8390_v23 = vld [vmem:[#allocation22_spill] sm:$0xff]  ;;  %v8392_v33 = vld [vmem:[#allocation24_spill] sm:$0xff] }
 0x172   : > { %8383 = vst [vmem:[#allocation184_spill] sm:$0xff] %v6356_v38  ;;  %2467 = vmatpush.bf16.msra.mxu2 %v5748_v35  ;;  %2453 = vmatpush.bf16.msra.mxu1 %v8386_v59  ;;  %v1006_v57 = vadd.f32 %v6388_v41, %v934_v55  ;;  %v1007_v2 = vadd.f32 %v6394_v19, %v963_v46  ;;  %v8395_v55 = vld [vmem:[#allocation25_spill] sm:$0xff]  ;;  %v8397_v38 = vld [vmem:[#allocation28_spill] sm:$0xff] }
 0x173   : > { %v1005_v34 = vadd.f32 %v6366_v53, %v905_v15  ;;  %8384 = vst [vmem:[#allocation185_spill] sm:$0xff] %v6385_v18  ;;  %2440 = vmatpush.bf16.msra.mxu0 %v8388_v37  ;;  %v8391_v15 = vld [vmem:[#allocation21_spill] sm:$0xff]  ;;  %v8396_v18 = vld [vmem:[#allocation58_spill] sm:$0xff]  ;;  %v8402_v59 = vld [vmem:[#allocation32_spill] sm:$0xff] }
 0x175   : > { %v6390_v10 = vpack.c.bf16 %v1005_v34, %v1004_v24  ;;  %2481 = vmatpush.bf16.msra.mxu3 %v8389_v0  ;;  %v6410_v24 = vpack.c.bf16 %v1007_v2, %v1006_v57  ;;  %v8393_v34 = vld [vmem:[#allocation23_spill] sm:$0xff]  ;;  %v8401_v0 = vld [vmem:[#allocation29_spill] sm:$0xff] }
 0x176   : > { %2468 = vmatpush.bf16.msra.mxu2 %v8390_v23  ;;  %2454 = vmatpush.bf16.msra.mxu1 %v8391_v15  ;;  %v6416_v62 = vpop.f32.mrf.mxu3  ;;  %v8398_v15 = vld [vmem:[#allocation27_spill] sm:$0xff] }
 0x177   : > { %2441 = vmatpush.bf16.msra.mxu0 %v8392_v33  ;;  %v6414_v61 = vpop.f32.mrf.mxu2  ;;  %v880_v44 = vpop.f32.mrf.mxu0  ;;  %v8399_v57 = vld [vmem:[#allocation59_spill] sm:$0xff]  ;;  %v8400_v33 = vld [vmem:[#allocation30_spill] sm:$0xff] }
 0x178   : > { %v6401_v42 = vpop.f32.mrf.mxu1  ;;  %v881_v49 = vadd.f32 %v880_v44, %v8396_v18  ;;  %v8404_v18 = vld [vmem:[#allocation34_spill] sm:$0xff] }
 0x179   : > { %2482 = vmatpush.bf16.msra.mxu3 %v8393_v34 }
 0x17a   : > { %2469 = vmatpush.bf16.msra.mxu2 %v8394_v20  ;;  %2455 = vmatpush.bf16.msra.mxu1 %v8395_v55  ;;  %v1020_v34 = vadd.f32 %v6360_v8, %v881_v49  ;;  %v8403_v55 = vld [vmem:[#allocation31_spill] sm:$0xff]  ;;  %v8408_v49 = vld [vmem:[#allocation69_spill] sm:$0xff] }
 0x17b   : > { %2442 = vmatpush.bf16.msra.mxu0 %v8397_v38 }
 0x17d   : > { %2483 = vmatpush.bf16.msra.mxu3 %v8398_v15  ;;  %v8406_v15 = vld [vmem:[#allocation67_spill] sm:$0xff] }
 0x17e   : > { %2470 = vmatpush.bf16.msra.mxu2 %v8400_v33  ;;  %2456 = vmatpush.bf16.msra.mxu1 %v8401_v0  ;;  %v8407_v33 = vld [vmem:[#allocation33_spill] sm:$0xff] }
 0x17f   : > { %2443 = vmatpush.bf16.msra.mxu0 %v8402_v59  ;;  %v938_v38 = vpop.f32.mrf.mxu2  ;;  %v8411_v59 = vld [vmem:[#allocation35_spill] sm:$0xff] }
 0x180   : > { %v909_v46 = vpop.f32.mrf.mxu1  ;;  %v939_v23 = vadd.f32 %v938_v38, %v8406_v15 }
 0x181   : > { %v910_v2 = vadd.f32 %v909_v46, %v8399_v57  ;;  %2484 = vmatpush.bf16.msra.mxu3 %v8403_v55  ;;  %v967_v46 = vpop.f32.mrf.mxu3  ;;  %v882_v57 = vpop.f32.mrf.mxu0 }
 0x182   : > { %2471 = vmatpush.bf16.msra.mxu2 %v8404_v18  ;;  %2457 = vmatpush.bf16.msra.mxu1 %v8407_v33  ;;  %v968_v37 = vadd.f32 %v967_v46, %v8408_v49  ;;  %v1022_v55 = vadd.f32 %v6388_v41, %v939_v23  ;;  %v8414_v46 = vld [vmem:[#allocation37_spill] sm:$0xff]  ;;  %v8416_v49 = vld [vmem:[#allocation39_spill] sm:$0xff] }
 0x183   : > { %v1021_v20 = vadd.f32 %v6366_v53, %v910_v2  ;;  %v8409_v2 = vld [vmem:[#allocation70_spill] sm:$0xff]  ;;  %2444 = vmatpush.bf16.msra.mxu0 %v8410_v21  ;;  %v8419_v23 = vld [vmem:[#allocation47_spill] sm:$0xff] }
 0x184   : > { %v883_v26 = vadd.f32 %v882_v57, %v8409_v2  ;;  %v1023_v38 = vadd.f32 %v6394_v19, %v968_v37  ;;  %v8415_v57 = vld [vmem:[#allocation40_spill] sm:$0xff]  ;;  %v8421_v37 = vld [vmem:[#allocation50_spill] sm:$0xff] }
 0x185   : > { %v6430_v44 = vpack.c.bf16 %v1021_v20, %v1020_v34  ;;  %2485 = vmatpush.bf16.msra.mxu3 %v8411_v59  ;;  %v8412_v34 = vld [vmem:[#allocation71_spill] sm:$0xff]  ;;  %v8418_v59 = vld [vmem:[#allocation42_spill] sm:$0xff] }
 0x186   : > { %v1028_v15 = vadd.f32 %v6360_v8, %v883_v26  ;;  %2458 = vmatpush.bf16.msra.mxu1 %v8414_v46  ;;  %v6447_v2 = vpack.c.bf16 %v1023_v38, %v1022_v55  ;;  %v8422_v26 = vld [vmem:[#allocation79_spill] sm:$0xff]  ;;  %v8423_v46 = vld [vmem:[#allocation41_spill] sm:$0xff] }
 0x187   : > { %8405 = vst [vmem:[#allocation43_spill] sm:$0xff] %v6430_v44  ;;  %v8413_v44 = vld [vmem:[#allocation38_spill] sm:$0xff]  ;;  %2445 = vmatpush.bf16.msra.mxu0 %v8415_v57  ;;  %v8424_v57 = vld [vmem:[#allocation81_spill] sm:$0xff] }
 0x188   : > { %v911_v0 = vpop.f32.mrf.mxu1  ;;  %2472 = vmatpush.bf16.msra.mxu2 %v8413_v44  ;;  %8417 = vst [vmem:[#allocation45_spill] sm:$0xff] %v6447_v2  ;;  %v8426_v2 = vld [vmem:[#allocation44_spill] sm:$0xff] }
 0x189   : > { %v912_v20 = vadd.f32 %v911_v0, %v8412_v34  ;;  %2486 = vmatpush.bf16.msra.mxu3 %v8416_v49  ;;  %v940_v34 = vpop.f32.mrf.mxu2  ;;  %v885_v21 = vpop.f32.mrf.mxu0  ;;  %v8425_v49 = vld [vmem:[#allocation82_spill] sm:$0xff] }
 0x18a   : > { %v941_v44 = vadd.f32 %v940_v34, %v8422_v26  ;;  %2459 = vmatpush.bf16.msra.mxu1 %v8423_v46  ;;  %v886_v55 = vadd.f32 %v885_v21, %v8425_v49  ;;  %v8430_v34 = vld [vmem:[#allocation51_spill] sm:$0xff]  ;;  %v8432_v49 = vld [vmem:[#allocation53_spill] sm:$0xff] }
 0x18b   : > { %v1029_v33 = vadd.f32 %v6366_v53, %v912_v20  ;;  %2494 = vmatpush.bf16.msrb.mxu0 %v8419_v23  ;;  %v969_v20 = vpop.f32.mrf.mxu3 }
 0x18c   : > { %2473 = vmatpush.bf16.msra.mxu2 %v8418_v59  ;;  %v970_v18 = vadd.f32 %v969_v20, %v8424_v57  ;;  %v8427_v59 = vld [vmem:[#allocation48_spill] sm:$0xff]  ;;  %v1036_v46 = vadd.f32 %v6360_v8, %v886_v55  ;;  %v8431_v57 = vld [vmem:[#allocation54_spill] sm:$0xff] }
 0x18d   : > { %v6451_v0 = vpack.c.bf16 %v1029_v33, %v1028_v15  ;;  %2487 = vmatpush.bf16.msra.mxu3 %v8426_v2  ;;  %v1030_v33 = vadd.f32 %v6388_v41, %v941_v44  ;;  %v8428_v15 = vld [vmem:[#allocation83_spill] sm:$0xff] }
 0x18e   : > { %2508 = vmatpush.bf16.msrb.mxu1 %v8427_v59  ;;  %v1031_v26 = vadd.f32 %v6394_v19, %v970_v18  ;;  %v8434_v59 = vld [vmem:[#allocation60_spill] sm:$0xff]  ;;  %v8435_v44 = vld [vmem:[#allocation55_spill] sm:$0xff] }
 0x18f   : > { %8420 = vst [vmem:[#allocation58_spill] sm:$0xff] %v6451_v0  ;;  %v8438_v18 = vld [vmem:[#allocation91_spill] sm:$0xff] }
 0x190   : > { %2522 = vmatpush.bf16.msrb.mxu2 %v8421_v37  ;;  %v914_v38 = vpop.f32.mrf.mxu1  ;;  %v8429_v37 = vld [vmem:[#allocation52_spill] sm:$0xff]  ;;  %v6469_v20 = vpack.c.bf16 %v1031_v26, %v1030_v33  ;;  %v8441_v33 = vld [vmem:[#allocation61_spill] sm:$0xff] }
 0x191   : > { %v915_v0 = vadd.f32 %v914_v38, %v8428_v15  ;;  %2495 = vmatpush.bf16.msrb.mxu0 %v8429_v37  ;;  %2536 = vmatpush.bf16.msrb.mxu3 %v8430_v34  ;;  %v943_v15 = vpop.f32.mrf.mxu2  ;;  %v8437_v34 = vld [vmem:[#allocation62_spill] sm:$0xff]  ;;  %v887_v37 = vpop.f32.mrf.mxu0 }
 0x192   : > { %2509 = vmatpush.bf16.msrb.mxu1 %v8432_v49  ;;  %8433 = vst [vmem:[#allocation59_spill] sm:$0xff] %v6469_v20  ;;  %v944_v2 = vadd.f32 %v943_v15, %v8438_v18  ;;  %v8442_v20 = vld [vmem:[#allocation95_spill] sm:$0xff]  ;;  %v8445_v18 = vld [vmem:[#allocation66_spill] sm:$0xff] }
 0x193   : > { %v1037_v21 = vadd.f32 %v6366_v53, %v915_v0  ;;  %v972_v55 = vpop.f32.mrf.mxu3  ;;  %v8440_v0 = vld [vmem:[#allocation94_spill] sm:$0xff] }
 0x194   : > { %2523 = vmatpush.bf16.msrb.mxu2 %v8431_v57  ;;  %v8439_v57 = vld [vmem:[#allocation93_spill] sm:$0xff]  ;;  %v888_v63 = vadd.f32 %v887_v37, %v8440_v0  ;;  %v1038_v26 = vadd.f32 %v6388_v41, %v944_v2  ;;  %v8448_v0 = vld [vmem:[#allocation72_spill] sm:$0xff] }
 0x195   : > { %2496 = vmatpush.bf16.msrb.mxu0 %v8434_v59  ;;  %2537 = vmatpush.bf16.msrb.mxu3 %v8435_v44  ;;  %v6473_v38 = vpack.c.bf16 %v1037_v21, %v1036_v46  ;;  %v973_v23 = vadd.f32 %v972_v55, %v8439_v57  ;;  %v8443_v46 = vld [vmem:[#allocation64_spill] sm:$0xff]  ;;  %v8444_v21 = vld [vmem:[#allocation63_spill] sm:$0xff]  ;;  %v8446_v37 = vld [vmem:[#allocation65_spill] sm:$0xff] }
 0x196   : > { %2510 = vmatpush.bf16.msrb.mxu1 %v8441_v33  ;;  %v1044_v15 = vadd.f32 %v6360_v8, %v888_v63  ;;  %v8449_v2 = vld [vmem:[#allocation68_spill] sm:$0xff] }
 0x197   : > { %8436 = vst [vmem:[#allocation67_spill] sm:$0xff] %v6473_v38  ;;  %v1039_v38 = vadd.f32 %v6394_v19, %v973_v23  ;;  %v8452_v23 = vld [vmem:[#allocation96_spill] sm:$0xff] }
 0x198   : > { %2524 = vmatpush.bf16.msrb.mxu2 %v8437_v34  ;;  %v916_v49 = vpop.f32.mrf.mxu1 }
 0x199   : > { %v917_v44 = vadd.f32 %v916_v49, %v8442_v20  ;;  %2497 = vmatpush.bf16.msrb.mxu0 %v8443_v46  ;;  %2538 = vmatpush.bf16.msrb.mxu3 %v8444_v21  ;;  %v6489_v55 = vpack.c.bf16 %v1039_v38, %v1038_v26  ;;  %v945_v20 = vpop.f32.mrf.mxu2  ;;  %v8451_v21 = vld [vmem:[#allocation74_spill] sm:$0xff]  ;;  %v890_v46 = vpop.f32.mrf.mxu0  ;;  %v8455_v38 = vld [vmem:[#allocation73_spill] sm:$0xff] }
 0x19a   : > { %2511 = vmatpush.bf16.msrb.mxu1 %v8446_v37  ;;  %v946_v33 = vadd.f32 %v945_v20, %v8452_v23  ;;  %v8459_v23 = vld [vmem:[#allocation78_spill] sm:$0xff] }
 0x19b   : > { %v1045_v57 = vadd.f32 %v6366_v53, %v917_v44  ;;  %8447 = vst [vmem:[#allocation69_spill] sm:$0xff] %v6489_v55  ;;  %v974_v63 = vpop.f32.mrf.mxu3  ;;  %v8454_v44 = vld [vmem:[#allocation98_spill] sm:$0xff]  ;;  %v8456_v55 = vld [vmem:[#allocation99_spill] sm:$0xff] }
 0x19c   : > { %2525 = vmatpush.bf16.msrb.mxu2 %v8445_v18  ;;  %v8453_v18 = vld [vmem:[#allocation97_spill] sm:$0xff]  ;;  %v891_v59 = vadd.f32 %v890_v46, %v8454_v44  ;;  %v1046_v26 = vadd.f32 %v6388_v41, %v946_v33  ;;  %v8462_v44 = vld [vmem:[#allocation84_spill] sm:$0xff] }
 0x19d   : > { %2498 = vmatpush.bf16.msrb.mxu0 %v8448_v0  ;;  %2539 = vmatpush.bf16.msrb.mxu3 %v8449_v2  ;;  %v6493_v49 = vpack.c.bf16 %v1045_v57, %v1044_v15  ;;  %v975_v34 = vadd.f32 %v974_v63, %v8453_v18  ;;  %v8457_v15 = vld [vmem:[#allocation76_spill] sm:$0xff]  ;;  %v8458_v57 = vld [vmem:[#allocation75_spill] sm:$0xff]  ;;  %v8460_v46 = vld [vmem:[#allocation77_spill] sm:$0xff] }
 0x19e   : > { %2512 = vmatpush.bf16.msrb.mxu1 %v8455_v38  ;;  %v1052_v20 = vadd.f32 %v6360_v8, %v891_v59  ;;  %v8463_v33 = vld [vmem:[#allocation80_spill] sm:$0xff] }
 0x19f   : > { %8450 = vst [vmem:[#allocation70_spill] sm:$0xff] %v6493_v49  ;;  %v1047_v49 = vadd.f32 %v6394_v19, %v975_v34  ;;  %v8466_v34 = vld [vmem:[#allocation100_spill] sm:$0xff] }
 0x1a0   : > { %2526 = vmatpush.bf16.msrb.mxu2 %v8451_v21  ;;  %v919_v37 = vpop.f32.mrf.mxu1 }
 0x1a1   : > { %v920_v2 = vadd.f32 %v919_v37, %v8456_v55  ;;  %2499 = vmatpush.bf16.msrb.mxu0 %v8457_v15  ;;  %2540 = vmatpush.bf16.msrb.mxu3 %v8458_v57  ;;  %v6509_v63 = vpack.c.bf16 %v1047_v49, %v1046_v26  ;;  %v948_v55 = vpop.f32.mrf.mxu2  ;;  %v8465_v57 = vld [vmem:[#allocation86_spill] sm:$0xff]  ;;  %v892_v15 = vpop.f32.mrf.mxu0  ;;  %v8469_v49 = vld [vmem:[#allocation85_spill] sm:$0xff] }
 0x1a2   : > { %2513 = vmatpush.bf16.msrb.mxu1 %v8460_v46  ;;  %v949_v38 = vadd.f32 %v948_v55, %v8466_v34  ;;  %v8473_v34 = vld [vmem:[#allocation90_spill] sm:$0xff] }
 0x1a3   : > { %v1053_v18 = vadd.f32 %v6366_v53, %v920_v2  ;;  %8461 = vst [vmem:[#allocation71_spill] sm:$0xff] %v6509_v63  ;;  %v977_v59 = vpop.f32.mrf.mxu3  ;;  %v8468_v2 = vld [vmem:[#allocation102_spill] sm:$0xff]  ;;  %v8470_v63 = vld [vmem:[#allocation103_spill] sm:$0xff] }
 0x1a4   : > { %2527 = vmatpush.bf16.msrb.mxu2 %v8459_v23  ;;  %v8467_v23 = vld [vmem:[#allocation101_spill] sm:$0xff]  ;;  %v893_v0 = vadd.f32 %v892_v15, %v8468_v2  ;;  %v1054_v26 = vadd.f32 %v6388_v41, %v949_v38  ;;  %v8476_v2 = vld [vmem:[#allocation92_spill] sm:$0xff] }
 0x1a5   : > { %2500 = vmatpush.bf16.msrb.mxu0 %v8462_v44  ;;  %2541 = vmatpush.bf16.msrb.mxu3 %v8463_v33  ;;  %v6513_v37 = vpack.c.bf16 %v1053_v18, %v1052_v20  ;;  %v978_v21 = vadd.f32 %v977_v59, %v8467_v23  ;;  %v8471_v20 = vld [vmem:[#allocation88_spill] sm:$0xff]  ;;  %v8472_v18 = vld [vmem:[#allocation87_spill] sm:$0xff]  ;;  %v8474_v15 = vld [vmem:[#allocation89_spill] sm:$0xff] }
 0x1a6   : > { %2514 = vmatpush.bf16.msrb.mxu1 %v8469_v49  ;;  %v1060_v55 = vadd.f32 %v6360_v8, %v893_v0  ;;  %v8479_v0 = vld [vmem:[#allocation105_spill] sm:$0xff] }
 0x1a7   : > { %8464 = vst [vmem:[#allocation79_spill] sm:$0xff] %v6513_v37  ;;  %v1055_v37 = vadd.f32 %v6394_v19, %v978_v21 }
 0x1a8   : > { %2528 = vmatpush.bf16.msrb.mxu2 %v8465_v57  ;;  %v921_v46 = vpop.f32.mrf.mxu1 }
 0x1a9   : > { %v922_v33 = vadd.f32 %v921_v46, %v8470_v63  ;;  %2501 = vmatpush.bf16.msrb.mxu0 %v8471_v20  ;;  %2542 = vmatpush.bf16.msrb.mxu3 %v8472_v18  ;;  %v6529_v59 = vpack.c.bf16 %v1055_v37, %v1054_v26  ;;  %v950_v46 = vpop.f32.mrf.mxu2  ;;  %v1275_v63 = vunpack.c.l.bf16 %v6097_v13  ;;  %v8478_v18 = vld [vmem:[#allocation104_spill] sm:$0xff]  ;;  %v1942_v20 = vpop.f32.mrf.mxu0 }
 0x1aa   : > { %2515 = vmatpush.bf16.msrb.mxu1 %v8474_v15  ;;  %v951_v49 = vadd.f32 %v950_v46, %v8478_v18 }
 0x1ab   : > { %v1061_v23 = vadd.f32 %v6366_v53, %v922_v33  ;;  %8475 = vst [vmem:[#allocation81_spill] sm:$0xff] %v6529_v59  ;;  %v979_v21 = vpop.f32.mrf.mxu3 }
 0x1ac   : > { %2529 = vmatpush.bf16.msrb.mxu2 %v8473_v34  ;;  %v980_v57 = vadd.f32 %v979_v21, %v8479_v0  ;;  %v1943_v34 = vadd.f32 %v1942_v20, %v1275_v63  ;;  %v1062_v33 = vadd.f32 %v6388_v41, %v951_v49  ;;  %v8481_v63 = vld [vmem:[#allocation8_spill] sm:$0xff]  ;;  %v8482_v49 = vld [vmem:[#allocation114_spill] sm:$0xff] }
 0x1ad   : > { %2543 = vmatpush.bf16.msrb.mxu3 %v8476_v2  ;;  %v6532_v38 = vpack.c.bf16 %v1061_v23, %v1060_v55  ;;  %v1276_v55 = vunpack.c.h.bf16 %v6097_v13  ;;  %v762_v0 = vadd.f32 %v8482_v49, %v8481_v63  ;;  %v8484_v13 = vld [vmem:[#allocation120_spill] sm:$0xff] }
 0x1ae   : > { %v1063_v37 = vadd.f32 %v6394_v19, %v980_v57  ;;  %v8483_v57 = vld [vmem:[#allocation9_spill] sm:$0xff] }
 0x1af   : > { %8477 = vst [vmem:[#allocation82_spill] sm:$0xff] %v6532_v38  ;;  %v1008_v63 = vadd.f32 %v6053_v29, %v762_v0 }
 0x1b0   : > { %v1956_v44 = vpop.f32.mrf.mxu1  ;;  %v6539_v2 = vpack.c.bf16 %v1063_v37, %v1062_v33 }
 0x1b1   : > { %v1957_v26 = vadd.f32 %v1956_v44, %v1943_v34  ;;  %v1970_v23 = vpop.f32.mrf.mxu2  ;;  %v1944_v46 = vpop.f32.mrf.mxu0  ;;  %v791_v44 = vadd.f32 %v6107_v14, %v8483_v57 }
 0x1b2   : > { %8480 = vst [vmem:[#allocation83_spill] sm:$0xff] %v6539_v2  ;;  %v1971_v38 = vadd.f32 %v1970_v23, %v1276_v55  ;;  %v8485_v55 = vld [vmem:[#allocation10_spill] sm:$0xff]  ;;  %v8486_v23 = vld [vmem:[#allocation123_spill] sm:$0xff] }
 0x1b3   : > { %v4839_v59 = vmul.f32 -1.442695, %v1957_v26  ;;  %v1984_v18 = vpop.f32.mrf.mxu3  ;;  %v820_v2 = vadd.f32 %v8486_v23, %v8485_v55  ;;  %v1009_v49 = vadd.f32 %v6062_v48, %v791_v44  ;;  %v1278_v23 = vunpack.c.h.bf16 %v8484_v13 }
 0x1b4   : > { %v1985_v28 = vadd.f32 %v1984_v18, %v1971_v38  ;;  %v8487_v38 = vld [vmem:[#allocation11_spill] sm:$0xff] }
 0x1b5   : > { %5146 = vpow2.f32 %v4839_v59  ;;  %v1277_v59 = vunpack.c.l.bf16 %v8484_v13  ;;  %v1010_v57 = vadd.f32 %v6084_v4, %v820_v2 }
 0x1b6   : > { %v4840_v21 = vmul.f32 -1.442695, %v1985_v28  ;;  %v8488_v28 = vld [vmem:[#allocation125_spill] sm:$0xff] }
 0x1b7   : > { %v849_v18 = vadd.f32 %v8488_v28, %v8487_v38  ;;  %v1068_v38 = vpack.c.bf16 %v1009_v49, %v1008_v63 }
 0x1b8   : > { %v1958_v15 = vpop.f32.mrf.mxu1  ;;  %5148 = vpow2.f32 %v4840_v21 }
 0x1b9   : > { %v1972_v33 = vpop.f32.mrf.mxu2  ;;  %v1998_v26 = vpop.f32.mrf.mxu0  ;;  %v1011_v30 = vadd.f32 %v6087_v56, %v849_v18  ;;  %v1283_v2 = vunpack.c.l.bf16 %v1068_v38 }
 0x1ba   : > { %v1999_v21 = vadd.f32 %v1998_v26, %v1277_v59 }
 0x1bb   : > { %v5147_v20 = vpop.eup %5146  ;;  %v1986_v37 = vpop.f32.mrf.mxu3  ;;  %v1945_v18 = vadd.f32 %v1944_v46, %v1283_v2 }
 0x1bc   : > { %v6546_v34 = vadd.f32 1.0, %v5147_v20 }
 0x1be   : > { %5150 = vrcp.f32 %v6546_v34  ;;  %v5149_v20 = vpop.eup %5148  ;;  %vm2178_vm2 = vweird.f32 %v6546_v34 }
 0x1bf   : > { %v6558_v16 = vadd.f32 1.0, %v5149_v20 }
 0x1c0   : > { %v2012_v35 = vpop.f32.mrf.mxu1 }
 0x1c1   : > { %v2013_v14 = vadd.f32 %v2012_v35, %v1999_v21  ;;  %v2026_v59 = vpop.f32.mrf.mxu2  ;;  %5152 = vrcp.f32 %v6558_v16  ;;  %v2000_v0 = vpop.f32.mrf.mxu0  ;;  %v1069_v35 = vpack.c.bf16 %v1011_v30, %v1010_v57  ;;  %vm2193_vm7 = vweird.f32 %v6558_v16 }
 0x1c2   : > { %v2027_v29 = vadd.f32 %v2026_v59, %v1278_v23  ;;  %v1284_v23 = vunpack.c.h.bf16 %v1068_v38 }
 0x1c3   : > { %v4843_v55 = vmul.f32 -1.442695, %v2013_v14  ;;  %v2040_v48 = vpop.f32.mrf.mxu3  ;;  %v1285_v13 = vunpack.c.l.bf16 %v1069_v35  ;;  %v1286_v17 = vunpack.c.h.bf16 %v1069_v35 }
 0x1c4   : > { %v6562_v44 = vpop.eup %5150  ;;  %v2041_v4 = vadd.f32 %v2040_v48, %v2027_v29  ;;  %v1279_v29 = vunpack.c.l.bf16 %v6390_v10  ;;  %v1973_v48 = vadd.f32 %v1972_v33, %v1284_v23  ;;  %v2184_v33 = vand.u32 2147483648, %v6546_v34 }
 0x1c5   : > { %5154 = vpow2.f32 %v4843_v55  ;;  %v2174_v56 = vmul.f32 %v6562_v44, %v6546_v34  ;;  %v2001_v49 = vadd.f32 %v2000_v0, %v1285_v13  ;;  %v1959_v55 = vadd.f32 %v1958_v15, %v1945_v18 }
 0x1c6   : > { %v4844_v28 = vmul.f32 -1.442695, %v2041_v4  ;;  %v1987_v22 = vadd.f32 %v1986_v37, %v1973_v48  ;;  %v2182_v15 = vand.u32 2147483647, %v6546_v34  ;;  %vm2179_vm1 = vweird.f32 %v6562_v44 }
 0x1c7   : > { %v6566_v21 = vpop.eup %5152  ;;  %v2175_v20 = vsub.f32 1.0, %v2174_v56  ;;  %v4841_v13 = vmul.f32 -1.442695, %v1959_v55  ;;  %vm6590_vm4 = vmor %vm2178_vm2, %vm2179_vm1  ;;  %v2199_v34 = vand.u32 2147483648, %v6558_v16 }
 0x1c8   : > { %v2014_v26 = vpop.f32.mrf.mxu1  ;;  %5156 = vpow2.f32 %v4844_v28  ;;  %v2189_v57 = vmul.f32 %v6566_v21, %v6558_v16  ;;  %v4842_v55 = vmul.f32 -1.442695, %v1987_v22  ;;  %vm6586_vm3 = vcmp.eq.f32.partialorder %v2182_v15, 8.507059e+37 }
 0x1c9   : > { %v2028_v14 = vpop.f32.mrf.mxu2  ;;  %v2054_v46 = vpop.f32.mrf.mxu0  ;;  %v2015_v4 = vadd.f32 %v2014_v26, %v2001_v49  ;;  %v2176_v56 = vmul.f32 %v6562_v44, %v2175_v20  ;;  %v1280_v26 = vunpack.c.h.bf16 %v6390_v10  ;;  %v2185_v10 = vor.u32 1.1754944e-38, %v2184_v33 }
 0x1ca   : > { %v2055_v2 = vadd.f32 %v2054_v46, %v1279_v29  ;;  %v2190_v38 = vsub.f32 1.0, %v2189_v57  ;;  %v2029_v23 = vadd.f32 %v2028_v14, %v1286_v17  ;;  %vm2194_vm5 = vweird.f32 %v6566_v21 }
 0x1cb   : > { %v5155_v63 = vpop.eup %5154  ;;  %v2042_v30 = vpop.f32.mrf.mxu3  ;;  %v4845_v18 = vmul.f32 -1.442695, %v2015_v4  ;;  %v2177_v20 = vadd.f32 %v6562_v44, %v2176_v56  ;;  %v2197_v33 = vand.u32 2147483647, %v6558_v16  ;;  %vm6610_vm9 = vmor %vm2193_vm7, %vm2194_vm5  ;;  %v1260_v16 = vld [vmem:[#allocation3] sm:$0xff] }
 0x1cc   : > { %v6568_v59 = vadd.f32 1.0, %v5155_v63  ;;  %v2191_v57 = vmul.f32 %v6566_v21, %v2190_v38  ;;  %v2043_v22 = vadd.f32 %v2042_v30, %v2029_v23  ;;  %v2200_v23 = vor.u32 1.1754944e-38, %v2199_v34 }
 0x1cd   : > { %v2181_v4 = vsel %vm6590_vm4, %v6562_v44, %v2177_v20  ;;  %vm2198_vm13 = vcmp.eq.f32.partialorder %v2197_v33, 8.507059e+37 }
 0x1ce   : > { %5158 = vrcp.f32 %v6568_v59  ;;  %v5157_v0 = vpop.eup %5156  ;;  %v2260_v46 = vand.u32 2147483648, %v6568_v59  ;;  %v2258_v56 = vand.u32 2147483647, %v6568_v59  ;;  %v2192_v38 = vadd.f32 %v6566_v21, %v2191_v57 }
 0x1cf   : > { %v6575_v63 = vadd.f32 1.0, %v5157_v0  ;;  %vm2254_vm8 = vweird.f32 %v6568_v59  ;;  %v2186_v44 = vsel %vm6586_vm3, %v2185_v10, %v2181_v4 }
 0x1d0   : > { %v2068_v28 = vpop.f32.mrf.mxu1  ;;  %v2261_v20 = vor.u32 1.1754944e-38, %v2260_v46  ;;  %vm2259_vm11 = vcmp.eq.f32.partialorder %v2258_v56, 8.507059e+37  ;;  %v2196_v29 = vsel %vm6610_vm9, %v6566_v21, %v2192_v38  ;;  %v1261_v21 = vld [vmem:[#allocation3 + $0x18] sm:$0xff] }
 0x1d1   : > { %v2069_v51 = vadd.f32 %v2068_v28, %v2055_v2  ;;  %5160 = vrcp.f32 %v6575_v63  ;;  %v2082_v35 = vpop.f32.mrf.mxu2  ;;  %vm2269_vm14 = vweird.f32 %v6575_v63  ;;  %v2201_v4 = vsel %vm2198_vm13, %v2200_v23, %v2196_v29 }
 0x1d2   : > { %v2083_v17 = vadd.f32 %v2082_v35, %v1280_v26  ;;  %v4846_v35 = vmul.f32 -1.442695, %v2043_v22  ;;  %v8496_v26 = vld [vmem:[#allocation49_spill] sm:$0xff] }
 0x1d3   : > { %5162 = vtanh.f32 %v2069_v51  ;;  %v2096_v14 = vpop.f32.mrf.mxu3  ;;  %v2273_v51 = vand.u32 2147483647, %v6575_v63  ;;  %v907_v23 = vadd.f32 %v6401_v42, %v8496_v26 }
 0x1d4   : > { %v5159_v49 = vpop.eup %5158  ;;  %5164 = vpow2.f32 %v4841_v13  ;;  %v2097_v2 = vadd.f32 %v2096_v14, %v2083_v17 }
 0x1d5   : > { %v2250_v37 = vmul.f32 %v5159_v49, %v6568_v59  ;;  %5166 = vpow2.f32 %v4845_v18  ;;  %vm2255_vm6 = vweird.f32 %v5159_v49  ;;  %v2275_v59 = vand.u32 2147483648, %v6575_v63 }
 0x1d6   : > { %5168 = vtanh.f32 %v2097_v2  ;;  %vm2256_vm10 = vmor %vm2254_vm8, %vm2255_vm6  ;;  %vm2274_vm0 = vcmp.eq.f32.partialorder %v2273_v51, 8.507059e+37 }
 0x1d7   : > { %v2251_v48 = vsub.f32 1.0, %v2250_v37  ;;  %v5161_v28 = vpop.eup %5160  ;;  %5170 = vpow2.f32 %v4842_v55 }
 0x1d8   : > { %v2265_v15 = vmul.f32 %v5161_v28, %v6575_v63  ;;  %vm2270_vm12 = vweird.f32 %v5161_v28  ;;  %5172 = vpow2.f32 %v4846_v35 }
 0x1d9   : > { %v2252_v0 = vmul.f32 %v5159_v49, %v2251_v48  ;;  %v5163_v13 = vpop.eup %5162  ;;  %vm2271_vm15 = vmor %vm2269_vm14, %vm2270_vm12  ;;  %v6646_v29 = vpop.f32.mrf.mxu2 }
 0x1da   : > { %v5165_v30 = vpop.eup %5164  ;;  %v2266_v37 = vsub.f32 1.0, %v2265_v15  ;;  %v2393_v57 = vmul.f32 %v5163_v13, %v2186_v44  ;;  %v2056_v15 = vpop.f32.mrf.mxu0 }
 0x1db   : > { %v2253_v18 = vadd.f32 %v5159_v49, %v2252_v0  ;;  %v5167_v17 = vpop.eup %5166  ;;  %v6624_v38 = vadd.f32 1.0, %v5165_v30  ;;  %v2070_v44 = vpop.f32.mrf.mxu1  ;;  %v8498_v30 = vld [vmem:[#allocation57_spill] sm:$0xff] }
 0x1dc   : > { %v2267_v10 = vmul.f32 %v5161_v28, %v2266_v37  ;;  %v5169_v46 = vpop.eup %5168  ;;  %v6620_v22 = vadd.f32 1.0, %v5167_v17  ;;  %v965_v35 = vadd.f32 %v6416_v62, %v8498_v30  ;;  %v1281_v62 = vunpack.c.l.bf16 %v6410_v24 }
 0x1dd   : > { %v2257_v14 = vsel %vm2256_vm10, %v5159_v49, %v2253_v18  ;;  %v2276_v49 = vor.u32 1.1754944e-38, %v2275_v59  ;;  %v2394_v56 = vmul.f32 %v5169_v46, %v2201_v4  ;;  %v8495_v18 = vld [vmem:[#allocation46_spill] sm:$0xff]  ;;  %v1013_v59 = vadd.f32 %v6366_v53, %v907_v23 }
 0x1de   : > { %v2262_v48 = vsel %vm2259_vm11, %v2261_v20, %v2257_v14  ;;  %v2268_v2 = vadd.f32 %v5161_v28, %v2267_v10  ;;  %5174 = vrcp.f32 %v6620_v22  ;;  %v878_v55 = vadd.f32 %v6397_v54, %v8495_v18  ;;  %v8497_v20 = vld [vmem:[#allocation56_spill] sm:$0xff] }
 0x1df   : > { %v2389_v34 = vmul.f32 %v2262_v48, %v1260_v16  ;;  %v936_v37 = vadd.f32 %v6414_v61, %v8497_v20  ;;  %5176 = vrcp.f32 %v6624_v38  ;;  %v5171_v16 = vpop.eup %5170  ;;  %v1015_v14 = vadd.f32 %v6394_v19, %v965_v35  ;;  %v6651_v48 = vpop.f32.mrf.mxu3 }
 0x1e0   : > { %v2272_v13 = vsel %vm2271_vm15, %v5161_v28, %v2268_v2  ;;  %v1012_v17 = vadd.f32 %v6360_v8, %v878_v55  ;;  %v6644_v61 = vadd.f32 1.0, %v5171_v16  ;;  %vm2284_vm3 = vweird.f32 %v6620_v22 }
 0x1e1   : > { %v6622_v0 = vadd.f32 %v2393_v57, %v2389_v34  ;;  %v2277_v33 = vsel %vm2274_vm0, %v2276_v49, %v2272_v13  ;;  %v5173_v57 = vpop.eup %5172  ;;  %v1014_v42 = vadd.f32 %v6388_v41, %v936_v37  ;;  %vm2208_vm5 = vweird.f32 %v6624_v38 }
 0x1e2   : > { %v2390_v63 = vmul.f32 %v2277_v33, %v1261_v21  ;;  %v6649_v10 = vadd.f32 1.0, %v5173_v57  ;;  %5178 = vrcp.f32 %v6644_v61  ;;  %v1070_v19 = vpack.c.bf16 %v1013_v59, %v1012_v17 }
 0x1e3   : > { %v1071_v4 = vpack.c.bf16 %v1015_v14, %v1014_v42  ;;  %vm2223_vm13 = vweird.f32 %v6644_v61 }
 0x1e4   : > { %v6636_v28 = vadd.f32 %v2394_v56, %v2390_v63  ;;  %v6640_v54 = vpop.eup %5174  ;;  %5180 = vrcp.f32 %v6649_v10  ;;  %v1282_v56 = vunpack.c.h.bf16 %v6410_v24  ;;  %v1287_v13 = vunpack.c.l.bf16 %v1070_v19 }
 0x1e5   : > { %v6653_v8 = vpop.eup %5176  ;;  %v2280_v41 = vmul.f32 %v6640_v54, %v6620_v22  ;;  %v1289_v63 = vunpack.c.l.bf16 %v1071_v4  ;;  %vm2285_vm1 = vweird.f32 %v6640_v54  ;;  %vm2299_vm11 = vweird.f32 %v6649_v10 }
 0x1e6   : > { %v2204_v2 = vmul.f32 %v6653_v8, %v6624_v38  ;;  %v2057_v37 = vadd.f32 %v2056_v15, %v1287_v13  ;;  %vm2209_vm2 = vweird.f32 %v6653_v8  ;;  %vm6682_vm4 = vmor %vm2284_vm3, %vm2285_vm1 }
 0x1e7   : > { %v2281_v21 = vsub.f32 1.0, %v2280_v41  ;;  %vm6693_vm6 = vmor %vm2208_vm5, %vm2209_vm2 }
 0x1e8   : > { %v2205_v18 = vsub.f32 1.0, %v2204_v2  ;;  %v6662_v20 = vpop.eup %5178  ;;  %v1290_v2 = vunpack.c.h.bf16 %v1071_v4  ;;  %v2214_v4 = vand.u32 2147483648, %v6624_v38 }
 0x1e9   : > { %v2110_v51 = vpop.f32.mrf.mxu0  ;;  %v2282_v16 = vmul.f32 %v6640_v54, %v2281_v21  ;;  %vm2224_vm9 = vweird.f32 %v6662_v20 }
 0x1ea   : > { %v2111_v53 = vadd.f32 %v2110_v51, %v1281_v62  ;;  %v2124_v34 = vpop.f32.mrf.mxu1  ;;  %v6664_v35 = vpop.eup %5180  ;;  %v2206_v24 = vmul.f32 %v6653_v8, %v2205_v18  ;;  %v2219_v62 = vmul.f32 %v6662_v20, %v6644_v61  ;;  %vm6734_vm14 = vmor %vm2223_vm13, %vm2224_vm9 }
 0x1eb   : > { %v2295_v51 = vmul.f32 %v6664_v35, %v6649_v10  ;;  %vm2300_vm10 = vweird.f32 %v6664_v35 }
 0x1ec   : > { %v2125_v46 = vadd.f32 %v2124_v34, %v2111_v53  ;;  %v2071_v53 = vadd.f32 %v2070_v44, %v2057_v37  ;;  %v2283_v34 = vadd.f32 %v6640_v54, %v2282_v16  ;;  %v2207_v21 = vadd.f32 %v6653_v8, %v2206_v24  ;;  %vm6723_vm12 = vmor %vm2299_vm11, %vm2300_vm10 }
 0x1ed   : > { %v2288_v44 = vand.u32 2147483647, %v6620_v22  ;;  %v2296_v13 = vsub.f32 1.0, %v2295_v51  ;;  %v2220_v18 = vsub.f32 1.0, %v2219_v62 }
 0x1ee   : > { %v4847_v49 = vmul.f32 -1.442695, %v2125_v46  ;;  %v2290_v46 = vand.u32 2147483648, %v6620_v22  ;;  %v2211_v16 = vsel %vm6693_vm6, %v6653_v8, %v2207_v21  ;;  %v2305_v21 = vand.u32 2147483648, %v6649_v10 }
 0x1ef   : > { %vm2289_vm7 = vcmp.eq.f32.partialorder %v2288_v44, 8.507059e+37  ;;  %v2221_v51 = vmul.f32 %v6662_v20, %v2220_v18 }
 0x1f0   : > { %5182 = vpow2.f32 %v4847_v49 }
 0x1f1   : > { %v2112_v23 = vpop.f32.mrf.mxu0 }
 0x1f2   : > { %v2138_v33 = vpop.f32.mrf.mxu2  ;;  %v2113_v30 = vadd.f32 %v2112_v23, %v1289_v63  ;;  %v2126_v17 = vpop.f32.mrf.mxu1  ;;  %v2306_v23 = vor.u32 1.1754944e-38, %v2305_v21 }
 0x1f3   : > { %v2139_v55 = vadd.f32 %v2138_v33, %v1282_v56  ;;  %v2152_v26 = vpop.f32.mrf.mxu3  ;;  %v1288_v33 = vunpack.c.h.bf16 %v1070_v19  ;;  %v2212_v19 = vand.u32 2147483647, %v6624_v38  ;;  %v2215_v38 = vor.u32 1.1754944e-38, %v2214_v4 }
 0x1f4   : > { %v2127_v59 = vadd.f32 %v2126_v17, %v2113_v30  ;;  %v2297_v17 = vmul.f32 %v6664_v35, %v2296_v13  ;;  %v2222_v56 = vadd.f32 %v6662_v20, %v2221_v51  ;;  %v2303_v13 = vand.u32 2147483647, %v6649_v10 }
 0x1f5   : > { %v2153_v57 = vadd.f32 %v2152_v26, %v2139_v55  ;;  %v2287_v55 = vsel %vm6682_vm4, %v6640_v54, %v2283_v34  ;;  %v2291_v26 = vor.u32 1.1754944e-38, %v2290_v46  ;;  %vm2213_vm8 = vcmp.eq.f32.partialorder %v2212_v19, 8.507059e+37 }
 0x1f6   : > { %v5183_v14 = vpop.eup %5182  ;;  %v4849_v15 = vmul.f32 -1.442695, %v2127_v59  ;;  %v1262_v59 = vld [vmem:[#allocation3 + $0x8] sm:$0xff]  ;;  %v2216_v8 = vsel %vm2213_vm8, %v2215_v38, %v2211_v16  ;;  %v2227_v10 = vand.u32 2147483647, %v6644_v61  ;;  %v2226_v19 = vsel %vm6734_vm14, %v6662_v20, %v2222_v56  ;;  %v1263_v20 = vld [vmem:[#allocation3 + $0x10] sm:$0xff] }
 0x1f7   : > { %v4848_v42 = vmul.f32 -1.442695, %v2153_v57  ;;  %v6674_v41 = vadd.f32 1.0, %v5183_v14  ;;  %v2085_v57 = vadd.f32 %v6646_v29, %v1288_v33  ;;  %v2292_v24 = vsel %vm2289_vm7, %v2291_v26, %v2287_v55 }
 0x1f8   : > { %v2391_v34 = vmul.f32 %v2292_v24, %v1262_v59  ;;  %v2229_v55 = vand.u32 2147483648, %v6644_v61  ;;  %vm2304_vm15 = vcmp.eq.f32.partialorder %v2303_v13, 8.507059e+37  ;;  %vm2228_vm2 = vcmp.eq.f32.partialorder %v2227_v10, 8.507059e+37 }
 0x1f9   : > { %5184 = vpow2.f32 %v4848_v42  ;;  %v2099_v46 = vadd.f32 %v6651_v48, %v2085_v57  ;;  %v2340_v57 = vand.u32 2147483648, %v6674_v41  ;;  %vm2334_vm1 = vweird.f32 %v6674_v41 }
 0x1fa   : > { %5186 = vpow2.f32 %v4849_v15  ;;  %v2140_v49 = vpop.f32.mrf.mxu2 }
 0x1fb   : > { %5188 = vrcp.f32 %v6674_v41  ;;  %v2141_v63 = vadd.f32 %v2140_v49, %v1290_v2  ;;  %v2154_v22 = vpop.f32.mrf.mxu3  ;;  %v2298_v2 = vadd.f32 %v6664_v35, %v2297_v17  ;;  %v2338_v17 = vand.u32 2147483647, %v6674_v41 }
 0x1fc   : > { %5190 = vtanh.f32 %v2071_v53 }
 0x1fd   : > { %v2155_v37 = vadd.f32 %v2154_v22, %v2141_v63  ;;  %v2302_v22 = vsel %vm6723_vm12, %v6664_v35, %v2298_v2  ;;  %v2341_v2 = vor.u32 1.1754944e-38, %v2340_v57  ;;  %vm2339_vm5 = vcmp.eq.f32.partialorder %v2338_v17, 8.507059e+37 }
 0x1fe   : > { %v2307_v16 = vsel %vm2304_vm15, %v2306_v23, %v2302_v22 }
 0x1ff   : > { %v5185_v30 = vpop.eup %5184  ;;  %v4850_v14 = vmul.f32 -1.442695, %v2155_v37 }
 0x200   : > { %v5187_v54 = vpop.eup %5186  ;;  %v6703_v42 = vadd.f32 1.0, %v5185_v30 }
 0x201   : > { %v6705_v62 = vpop.eup %5188  ;;  %v6708_v53 = vadd.f32 1.0, %v5187_v54 }
 0x202   : > { %v5191_v15 = vpop.eup %5190  ;;  %v2330_v29 = vmul.f32 %v6705_v62, %v6674_v41  ;;  %5192 = vrcp.f32 %v6703_v42  ;;  %vm2335_vm0 = vweird.f32 %v6705_v62  ;;  %vm2349_vm10 = vweird.f32 %v6703_v42 }
 0x203   : > { %5194 = vrcp.f32 %v6708_v53  ;;  %v2395_v44 = vmul.f32 %v5191_v15, %v2216_v8  ;;  %vm6758_vm3 = vmor %vm2334_vm1, %vm2335_vm0  ;;  %v2370_v51 = vand.u32 2147483648, %v6708_v53  ;;  %v2368_v41 = vand.u32 2147483647, %v6708_v53 }
 0x204   : > { %v2331_v49 = vsub.f32 1.0, %v2330_v29  ;;  %5196 = vpow2.f32 %v4850_v14  ;;  %v2230_v14 = vor.u32 1.1754944e-38, %v2229_v55  ;;  %vm2364_vm6 = vweird.f32 %v6708_v53 }
 0x205   : > { %v6727_v63 = vadd.f32 %v2395_v44, %v2391_v34  ;;  %5198 = vtanh.f32 %v2099_v46  ;;  %v2392_v46 = vmul.f32 %v2307_v16, %v1263_v20  ;;  %v2371_v48 = vor.u32 1.1754944e-38, %v2370_v51 }
 0x206   : > { %v2332_v33 = vmul.f32 %v6705_v62, %v2331_v49  ;;  %5200 = vtanh.f32 %v6622_v0  ;;  %v2231_v34 = vsel %vm2228_vm2, %v2230_v14, %v2226_v19  ;;  %vm2369_vm8 = vcmp.eq.f32.partialorder %v2368_v41, 8.507059e+37  ;;  %v8513_v41 = vld [vmem:[#allocation110_spill] sm:$0xff] }
 0x207   : > { %5202 = vtanh.f32 %v6727_v63 }
 0x208   : > { %v6730_v18 = vpop.eup %5192  ;;  %v2333_v61 = vadd.f32 %v6705_v62, %v2332_v33 }
 0x209   : > { %v5195_v26 = vpop.eup %5194  ;;  %v2345_v37 = vmul.f32 %v6730_v18, %v6703_v42  ;;  %vm2350_vm9 = vweird.f32 %v6730_v18 }
 0x20a   : > { %v5197_v30 = vpop.eup %5196  ;;  %v2360_v35 = vmul.f32 %v5195_v26, %v6708_v53  ;;  %v2337_v29 = vsel %vm6758_vm3, %v6705_v62, %v2333_v61  ;;  %vm2365_vm4 = vweird.f32 %v5195_v26  ;;  %v2355_v53 = vand.u32 2147483648, %v6703_v42  ;;  %vm6782_vm11 = vmor %vm2349_vm10, %vm2350_vm9 }
 0x20b   : > { %v6754_v54 = vadd.f32 1.0, %v5197_v30  ;;  %v2346_v59 = vsub.f32 1.0, %v2345_v37  ;;  %v5199_v15 = vpop.eup %5198  ;;  %v2342_v33 = vsel %vm2339_vm5, %v2341_v2, %v2337_v29  ;;  %vm2366_vm7 = vmor %vm2364_vm6, %vm2365_vm4 }
 0x20c   : > { %v2361_v24 = vsub.f32 1.0, %v2360_v35  ;;  %v5201_v49 = vpop.eup %5200  ;;  %v2396_v13 = vmul.f32 %v5199_v15, %v2231_v34  ;;  %v8514_v34 = vld [vmem:[#allocation112_spill] sm:$0xff]  ;;  %v8532_v35 = vld [vmem:[#allocation127_spill] sm:$0xff] }
 0x20d   : > { %5204 = vrcp.f32 %v6754_v54  ;;  %v2347_v21 = vmul.f32 %v6730_v18, %v2346_v59  ;;  %v5203_v56 = vpop.eup %5202  ;;  %v2405_v22 = vmul.f32 %v5201_v49, %v2342_v33  ;;  %v2385_v16 = vand.u32 2147483648, %v6754_v54  ;;  %v8511_v59 = vld [vmem:[#allocation106_spill] sm:$0xff] }
 0x20e   : > { %v2362_v8 = vmul.f32 %v5195_v26, %v2361_v24  ;;  %v6770_v10 = vadd.f32 %v2396_v13, %v2392_v46  ;;  %5206 = vtanh.f32 %v6636_v28  ;;  %v2383_v17 = vand.u32 2147483647, %v6754_v54  ;;  %v8512_v24 = vld [vmem:[#allocation108_spill] sm:$0xff]  ;;  %v8519_v13 = vld [vmem:[#allocation119_spill] sm:$0xff]  ;;  %v8520_v33 = vld [vmem:[#allocation122_spill] sm:$0xff] }
 0x20f   : > { %v2348_v23 = vadd.f32 %v6730_v18, %v2347_v21  ;;  %vm2379_vm14 = vweird.f32 %v6754_v54  ;;  %v8515_v21 = vld [vmem:[#allocation115_spill] sm:$0xff] }
 0x210   : > { %v2363_v44 = vadd.f32 %v5195_v26, %v2362_v8  ;;  %5208 = vtanh.f32 %v6770_v10  ;;  %vm2384_vm0 = vcmp.eq.f32.partialorder %v2383_v17, 8.507059e+37  ;;  %v8536_v17 = vld [vmem:[#allocation136_spill] sm:$0xff] }
 0x211   : > { %v2352_v57 = vsel %vm6782_vm11, %v6730_v18, %v2348_v23  ;;  %v2386_v18 = vor.u32 1.1754944e-38, %v2385_v16  ;;  %v8526_v23 = vld [vmem:[#allocation118_spill] sm:$0xff]  ;;  %v8533_v16 = vld [vmem:[#allocation129_spill] sm:$0xff] }
 0x212   : > { %v2367_v62 = vsel %vm2366_vm7, %v5195_v26, %v2363_v44  ;;  %v2353_v26 = vand.u32 2147483647, %v6703_v42  ;;  %v2356_v42 = vor.u32 1.1754944e-38, %v2355_v53  ;;  %v8516_v44 = vld [vmem:[#allocation117_spill] sm:$0xff] }
 0x213   : > { %v5205_v4 = vpop.eup %5204  ;;  %v2372_v55 = vsel %vm2369_vm8, %v2371_v48, %v2367_v62  ;;  %v8521_v48 = vld [vmem:[#allocation111_spill] sm:$0xff]  ;;  %v8522_v62 = vld [vmem:[#allocation113_spill] sm:$0xff] }
 0x214   : > { %v2407_v19 = vmul.f32 %v5203_v56, %v2372_v55  ;;  %v2375_v37 = vmul.f32 %v5205_v4, %v6754_v54  ;;  %vm2380_vm12 = vweird.f32 %v5205_v4  ;;  %vm2354_vm13 = vcmp.eq.f32.partialorder %v2353_v26, 8.507059e+37  ;;  %v5207_v38 = vpop.eup %5206  ;;  %v8517_v54 = vld [vmem:[#allocation107_spill] sm:$0xff]  ;;  %v8518_v56 = vld [vmem:[#allocation109_spill] sm:$0xff]  ;;  %v8524_v55 = vld [vmem:[#allocation128_spill] sm:$0xff] }
 0x215   : > { %v2357_v51 = vsel %vm2354_vm13, %v2356_v42, %v2352_v57  ;;  %vm2381_vm15 = vmor %vm2379_vm14, %vm2380_vm12  ;;  %v8529_v53 = vld [vmem:[#allocation121_spill] sm:$0xff]  ;;  %v8530_v26 = vld [vmem:[#allocation124_spill] sm:$0xff] }
 0x216   : > { %v6779_v30 = vpack.c.bf16 %v2407_v19, %v2405_v22  ;;  %v2376_v61 = vsub.f32 1.0, %v2375_v37  ;;  %v5209_v29 = vpop.eup %5208  ;;  %v2406_v46 = vmul.f32 %v5207_v38, %v2357_v51  ;;  %v8525_v22 = vld [vmem:[#allocation116_spill] sm:$0xff]  ;;  %v8527_v19 = vld [vmem:[#allocation130_spill] sm:$0xff]  ;;  %v8534_v57 = vld [vmem:[#allocation131_spill] sm:$0xff] }
 0x217   : > { %v8528_v37 = vld [vmem:[#allocation132_spill] sm:$0xff]  ;;  %v8537_v42 = vld [vmem:[#allocation146_spill] sm:$0xff] }
 0x218   : > { %v2377_v20 = vmul.f32 %v5205_v4, %v2376_v61  ;;  %2446 = vmatmul.bf16.vlgmr.msra.gmra.mxu0 %v6779_v30  ;;  %2474 = vmatmul.bf16.vlgmr.msra.gmra.mxu2 %v6779_v30  ;;  %v8531_v61 = vld [vmem:[#allocation135_spill] sm:$0xff]  ;;  %v8539_v38 = vld [vmem:[#allocation150_spill] sm:$0xff]  ;;  %v8540_v51 = vld [vmem:[#allocation152_spill] sm:$0xff] }
 0x219   : > { %2550 = vmatpush.bf16.msra.mxu0 %v8511_v59  ;;  %2578 = vmatpush.bf16.msra.mxu2 %v8512_v24 }
 0x21a   : > { %v2378_v14 = vadd.f32 %v5205_v4, %v2377_v20  ;;  %v8535_v20 = vld [vmem:[#allocation134_spill] sm:$0xff] }
 0x21c   : > { %v2382_v15 = vsel %vm2381_vm15, %v5205_v4, %v2378_v14  ;;  %v8523_v4 = vld [vmem:[#allocation126_spill] sm:$0xff]  ;;  %v8538_v14 = vld [vmem:[#allocation148_spill] sm:$0xff] }
 0x21d   : > { %v2387_v8 = vsel %vm2384_vm0, %v2386_v18, %v2382_v15  ;;  %2551 = vmatpush.bf16.msra.mxu0 %v8513_v41  ;;  %2579 = vmatpush.bf16.msra.mxu2 %v8514_v34  ;;  %v8541_v18 = vld [vmem:[#allocation156_spill] sm:$0xff]  ;;  %v8542_v15 = vld [vmem:[#allocation158_spill] sm:$0xff] }
 0x21e   : > { %v2408_v2 = vmul.f32 %v5209_v29, %v2387_v8  ;;  %v8543_v29 = vld [vmem:[#allocation160_spill] sm:$0xff]  ;;  %v8544_v8 = vld [vmem:[#allocation162_spill] sm:$0xff] }
 0x220   : > { %v6798_v49 = vpack.c.bf16 %v2408_v2, %v2406_v46  ;;  %v8545_v46 = vld [vmem:[#allocation166_spill] sm:$0xff]  ;;  %v8546_v2 = vld [vmem:[#allocation168_spill] sm:$0xff] }
 0x221   : > { %2552 = vmatpush.bf16.msra.mxu0 %v8515_v21  ;;  %2580 = vmatpush.bf16.msra.mxu2 %v8516_v44 }
 0x222   : > { %2460 = vmatmul.bf16.vlgmr.msra.gmra.mxu1 %v6798_v49  ;;  %2488 = vmatmul.bf16.vlgmr.msra.gmra.mxu3 %v6798_v49 }
 0x223   : > { %2564 = vmatpush.bf16.msra.mxu1 %v8517_v54  ;;  %2592 = vmatpush.bf16.msra.mxu3 %v8518_v56 }
 0x225   : > { %2553 = vmatpush.bf16.msra.mxu0 %v8519_v13  ;;  %2581 = vmatpush.bf16.msra.mxu2 %v8520_v33 }
 0x227   : > { %2565 = vmatpush.bf16.msra.mxu1 %v8521_v48  ;;  %2593 = vmatpush.bf16.msra.mxu3 %v8522_v62 }
 0x228   : > { %2502 = vmatmul.bf16.vlgmr.msrb.gmra.mxu0 %v6779_v30  ;;  %2530 = vmatmul.bf16.vlgmr.msrb.gmra.mxu2 %v6779_v30 }
 0x229   : > { %2554 = vmatpush.bf16.msra.mxu0 %v8523_v4  ;;  %2582 = vmatpush.bf16.msra.mxu2 %v8524_v55 }
 0x22b   : > { %2566 = vmatpush.bf16.msra.mxu1 %v8525_v22  ;;  %2594 = vmatpush.bf16.msra.mxu3 %v8526_v23 }
 0x22d   : > { %2555 = vmatpush.bf16.msra.mxu0 %v8527_v19  ;;  %2583 = vmatpush.bf16.msra.mxu2 %v8528_v37 }
 0x22f   : > { %2567 = vmatpush.bf16.msra.mxu1 %v8529_v53  ;;  %2595 = vmatpush.bf16.msra.mxu3 %v8530_v26 }
 0x231   : > { %2556 = vmatpush.bf16.msra.mxu0 %v8531_v61  ;;  %2584 = vmatpush.bf16.msra.mxu2 %v6186_v60 }
 0x232   : > { %2516 = vmatmul.bf16.vlgmr.msrb.gmra.mxu1 %v6798_v49  ;;  %2544 = vmatmul.bf16.vlgmr.msrb.gmra.mxu3 %v6798_v49 }
 0x233   : > { %2568 = vmatpush.bf16.msra.mxu1 %v8532_v35  ;;  %2596 = vmatpush.bf16.msra.mxu3 %v8533_v16 }
 0x235   : > { %2557 = vmatpush.bf16.msra.mxu0 %v6195_v45  ;;  %2585 = vmatpush.bf16.msra.mxu2 %v6203_v39 }
 0x237   : > { %2569 = vmatpush.bf16.msra.mxu1 %v8534_v57  ;;  %2597 = vmatpush.bf16.msra.mxu3 %v8535_v20 }
 0x238   : > { %2558 = vmatmul.bf16.vlgmr.msra.gmra.mxu0 %v6779_v30  ;;  %2586 = vmatmul.bf16.vlgmr.msra.gmra.mxu2 %v6779_v30 }
 0x239   : > { %2606 = vmatpush.bf16.msrb.mxu0 %v6210_v52  ;;  %2634 = vmatpush.bf16.msrb.mxu2 %v6215_v27 }
 0x23b   : > { %2570 = vmatpush.bf16.msra.mxu1 %v8536_v17  ;;  %2598 = vmatpush.bf16.msra.mxu3 %v6191_v6 }
 0x23d   : > { %2607 = vmatpush.bf16.msrb.mxu0 %v6230_v50  ;;  %2635 = vmatpush.bf16.msrb.mxu2 %v6237_v9 }
 0x23f   : > { %2571 = vmatpush.bf16.msra.mxu1 %v6201_v31  ;;  %2599 = vmatpush.bf16.msra.mxu3 %v6208_v25 }
 0x241   : > { %2608 = vmatpush.bf16.msrb.mxu0 %v6251_v43  ;;  %2636 = vmatpush.bf16.msrb.mxu2 %v6258_v3 }
 0x242   : > { %2572 = vmatmul.bf16.vlgmr.msra.gmra.mxu1 %v6798_v49  ;;  %2600 = vmatmul.bf16.vlgmr.msra.gmra.mxu3 %v6798_v49 }
 0x243   : > { %2620 = vmatpush.bf16.msrb.mxu1 %v8537_v42  ;;  %2648 = vmatpush.bf16.msrb.mxu3 %v8538_v14  ;;  %v8621_v14 = vld [vmem:[#allocation43_spill] sm:$0xff] }
 0x244   : > { %v2424_v42 = vunpack.c.l.bf16 %v8621_v14  ;;  %v2425_v31 = vunpack.c.h.bf16 %v8621_v14 }
 0x245   : > { %2609 = vmatpush.bf16.msrb.mxu0 %v6270_v11  ;;  %2637 = vmatpush.bf16.msrb.mxu2 %v6277_v32 }
 0x247   : > { %2621 = vmatpush.bf16.msrb.mxu1 %v8539_v38  ;;  %2649 = vmatpush.bf16.msrb.mxu3 %v8540_v51 }
 0x249   : > { %2610 = vmatpush.bf16.msrb.mxu0 %v6287_v5  ;;  %2638 = vmatpush.bf16.msrb.mxu2 %v6294_v47  ;;  %v8547_v47 = vld [vmem:[#allocation170_spill] sm:$0xff] }
 0x24b   : > { %2622 = vmatpush.bf16.msrb.mxu1 %v8541_v18  ;;  %2650 = vmatpush.bf16.msrb.mxu3 %v8542_v15  ;;  %v8618_v18 = vld [vmem:[#allocation143_spill] sm:$0xff] }
 0x24d   : > { %2611 = vmatpush.bf16.msrb.mxu0 %v6306_v40  ;;  %2639 = vmatpush.bf16.msrb.mxu2 %v6313_v1  ;;  %v8548_v40 = vld [vmem:[#allocation172_spill] sm:$0xff] }
 0x24e   : > { %v8549_v1 = vld [vmem:[#allocation12_spill] sm:$0xff] }
 0x24f   : > { %2623 = vmatpush.bf16.msrb.mxu1 %v8543_v29  ;;  %2651 = vmatpush.bf16.msrb.mxu3 %v8544_v8  ;;  %v8550_v29 = vld [vmem:[#allocation14_spill] sm:$0xff] }
 0x251   : > { %2612 = vmatpush.bf16.msrb.mxu0 %v6323_v12  ;;  %2640 = vmatpush.bf16.msrb.mxu2 %v6330_v58  ;;  %v8551_v58 = vld [vmem:[#allocation176_spill] sm:$0xff]  ;;  %v8552_v12 = vld [vmem:[#allocation178_spill] sm:$0xff] }
 0x253   : > { %2624 = vmatpush.bf16.msrb.mxu1 %v8545_v46  ;;  %2652 = vmatpush.bf16.msrb.mxu3 %v8546_v2  ;;  %v8553_v2 = vld [vmem:[#allocation16_spill] sm:$0xff]  ;;  %v8560_v46 = vld [vmem:[#allocation22_spill] sm:$0xff] }
 0x255   : > { %2613 = vmatpush.bf16.msrb.mxu0 %v6342_v36  ;;  %2641 = vmatpush.bf16.msrb.mxu2 %v6349_v7  ;;  %v8554_v36 = vld [vmem:[#allocation18_spill] sm:$0xff]  ;;  %v8555_v7 = vld [vmem:[#allocation180_spill] sm:$0xff] }
 0x257   : > { %2625 = vmatpush.bf16.msrb.mxu1 %v8547_v47  ;;  %2653 = vmatpush.bf16.msrb.mxu3 %v8548_v40  ;;  %v8556_v47 = vld [vmem:[#allocation182_spill] sm:$0xff]  ;;  %v8557_v40 = vld [vmem:[#allocation13_spill] sm:$0xff] }
 0x258   : > { %2614 = vmatmul.bf16.vlgmr.msrb.gmra.mxu0 %v6779_v30  ;;  %2642 = vmatmul.bf16.vlgmr.msrb.gmra.mxu2 %v6779_v30  ;;  %v8561_v30 = vld [vmem:[#allocation17_spill] sm:$0xff] }
 0x259   : > { %2943 = vmatpush.bf16.msra.mxu0 %v8549_v1  ;;  %2971 = vmatpush.bf16.msra.mxu2 %v8550_v29  ;;  %v8558_v1 = vld [vmem:[#allocation15_spill] sm:$0xff]  ;;  %v8559_v29 = vld [vmem:[#allocation20_spill] sm:$0xff] }
 0x25b   : > { %2626 = vmatpush.bf16.msrb.mxu1 %v8551_v58  ;;  %2654 = vmatpush.bf16.msrb.mxu3 %v8552_v12  ;;  %v8570_v12 = vld [vmem:[#allocation27_spill] sm:$0xff]  ;;  %v8617_v58 = vld [vmem:[#allocation133_spill] sm:$0xff] }
 0x25d   : > { %2944 = vmatpush.bf16.msra.mxu0 %v8553_v2  ;;  %2972 = vmatpush.bf16.msra.mxu2 %v8554_v36  ;;  %v8562_v2 = vld [vmem:[#allocation19_spill] sm:$0xff]  ;;  %v8563_v36 = vld [vmem:[#allocation24_spill] sm:$0xff] }
 0x25f   : > { %2627 = vmatpush.bf16.msrb.mxu1 %v8555_v7  ;;  %2655 = vmatpush.bf16.msrb.mxu3 %v8556_v47  ;;  %v8564_v7 = vld [vmem:[#allocation26_spill] sm:$0xff]  ;;  %v8565_v47 = vld [vmem:[#allocation21_spill] sm:$0xff] }
 0x261   : > { %2945 = vmatpush.bf16.msra.mxu0 %v8559_v29  ;;  %2973 = vmatpush.bf16.msra.mxu2 %v8560_v46  ;;  %v8568_v29 = vld [vmem:[#allocation30_spill] sm:$0xff]  ;;  %v8569_v46 = vld [vmem:[#allocation25_spill] sm:$0xff] }
 0x262   : > { %2628 = vmatmul.bf16.vlgmr.msrb.gmra.mxu1 %v6798_v49  ;;  %2656 = vmatmul.bf16.vlgmr.msrb.gmra.mxu3 %v6798_v49  ;;  %v8571_v49 = vld [vmem:[#allocation32_spill] sm:$0xff] }
 0x263   : > { %2957 = vmatpush.bf16.msra.mxu1 %v8557_v40  ;;  %2985 = vmatpush.bf16.msra.mxu3 %v8558_v1  ;;  %v8566_v40 = vld [vmem:[#allocation23_spill] sm:$0xff]  ;;  %v8567_v1 = vld [vmem:[#allocation28_spill] sm:$0xff] }
 0x265   : > { %2946 = vmatpush.bf16.msra.mxu0 %v8563_v36  ;;  %2974 = vmatpush.bf16.msra.mxu2 %v8564_v7  ;;  %v8574_v36 = vld [vmem:[#allocation31_spill] sm:$0xff]  ;;  %v8575_v7 = vld [vmem:[#allocation36_spill] sm:$0xff] }
 0x267   : > { %2958 = vmatpush.bf16.msra.mxu1 %v8561_v30  ;;  %2986 = vmatpush.bf16.msra.mxu3 %v8562_v2  ;;  %v8572_v30 = vld [vmem:[#allocation34_spill] sm:$0xff]  ;;  %v8573_v2 = vld [vmem:[#allocation29_spill] sm:$0xff] }
 0x269   : > { %2947 = vmatpush.bf16.msra.mxu0 %v8567_v1  ;;  %2975 = vmatpush.bf16.msra.mxu2 %v8568_v29  ;;  %v8578_v1 = vld [vmem:[#allocation35_spill] sm:$0xff]  ;;  %v8579_v29 = vld [vmem:[#allocation40_spill] sm:$0xff] }
 0x26b   : > { %2959 = vmatpush.bf16.msra.mxu1 %v8565_v47  ;;  %2987 = vmatpush.bf16.msra.mxu3 %v8566_v40  ;;  %v8576_v47 = vld [vmem:[#allocation38_spill] sm:$0xff]  ;;  %v8577_v40 = vld [vmem:[#allocation33_spill] sm:$0xff] }
 0x26d   : > { %2948 = vmatpush.bf16.msra.mxu0 %v8571_v49  ;;  %2976 = vmatpush.bf16.msra.mxu2 %v8572_v30  ;;  %v8582_v49 = vld [vmem:[#allocation50_spill] sm:$0xff]  ;;  %v8583_v30 = vld [vmem:[#allocation37_spill] sm:$0xff] }
 0x26f   : > { %2960 = vmatpush.bf16.msra.mxu1 %v8569_v46  ;;  %2988 = vmatpush.bf16.msra.mxu3 %v8570_v12  ;;  %v8580_v46 = vld [vmem:[#allocation42_spill] sm:$0xff]  ;;  %v8581_v12 = vld [vmem:[#allocation47_spill] sm:$0xff] }
 0x271   : > { %2949 = vmatpush.bf16.msra.mxu0 %v8575_v7  ;;  %2977 = vmatpush.bf16.msra.mxu2 %v8576_v47  ;;  %v8586_v7 = vld [vmem:[#allocation54_spill] sm:$0xff]  ;;  %v8587_v47 = vld [vmem:[#allocation41_spill] sm:$0xff] }
 0x273   : > { %2961 = vmatpush.bf16.msra.mxu1 %v8573_v2  ;;  %2989 = vmatpush.bf16.msra.mxu3 %v8574_v36  ;;  %v8584_v2 = vld [vmem:[#allocation39_spill] sm:$0xff]  ;;  %v8585_v36 = vld [vmem:[#allocation52_spill] sm:$0xff] }
 0x275   : > { %2950 = vmatpush.bf16.msra.mxu0 %v8579_v29  ;;  %2978 = vmatpush.bf16.msra.mxu2 %v8580_v46  ;;  %v8590_v29 = vld [vmem:[#allocation51_spill] sm:$0xff]  ;;  %v8591_v46 = vld [vmem:[#allocation60_spill] sm:$0xff] }
 0x277   : > { %2962 = vmatpush.bf16.msra.mxu1 %v8577_v40  ;;  %2990 = vmatpush.bf16.msra.mxu3 %v8578_v1  ;;  %v8588_v40 = vld [vmem:[#allocation44_spill] sm:$0xff] }
 0x278   : > { %v8589_v1 = vld [vmem:[#allocation48_spill] sm:$0xff] }
 0x279   : > { %2999 = vmatpush.bf16.msrb.mxu0 %v8581_v12  ;;  %3027 = vmatpush.bf16.msrb.mxu2 %v8582_v49  ;;  %v8592_v12 = vld [vmem:[#allocation62_spill] sm:$0xff]  ;;  %v8593_v49 = vld [vmem:[#allocation53_spill] sm:$0xff] }
 0x27b   : > { %2963 = vmatpush.bf16.msra.mxu1 %v8583_v30  ;;  %2991 = vmatpush.bf16.msra.mxu3 %v8584_v2  ;;  %v8594_v30 = vld [vmem:[#allocation55_spill] sm:$0xff]  ;;  %v8595_v2 = vld [vmem:[#allocation64_spill] sm:$0xff] }
 0x27d   : > { %3000 = vmatpush.bf16.msrb.mxu0 %v8585_v36  ;;  %3028 = vmatpush.bf16.msrb.mxu2 %v8586_v7  ;;  %v8596_v36 = vld [vmem:[#allocation66_spill] sm:$0xff]  ;;  %v8597_v7 = vld [vmem:[#allocation61_spill] sm:$0xff] }
 0x27f   : > { %2964 = vmatpush.bf16.msra.mxu1 %v8587_v47  ;;  %2992 = vmatpush.bf16.msra.mxu3 %v8588_v40  ;;  %v8598_v47 = vld [vmem:[#allocation63_spill] sm:$0xff]  ;;  %v8599_v40 = vld [vmem:[#allocation72_spill] sm:$0xff] }
 0x281   : > { %3001 = vmatpush.bf16.msrb.mxu0 %v8591_v46  ;;  %3029 = vmatpush.bf16.msrb.mxu2 %v8592_v12  ;;  %v8602_v46 = vld [vmem:[#allocation68_spill] sm:$0xff] }
 0x282   : > { %v8603_v12 = vld [vmem:[#allocation76_spill] sm:$0xff] }
 0x283   : > { %3013 = vmatpush.bf16.msrb.mxu1 %v8589_v1  ;;  %3041 = vmatpush.bf16.msrb.mxu3 %v8590_v29  ;;  %v8600_v1 = vld [vmem:[#allocation74_spill] sm:$0xff]  ;;  %v8601_v29 = vld [vmem:[#allocation65_spill] sm:$0xff] }
 0x285   : > { %3002 = vmatpush.bf16.msrb.mxu0 %v8595_v2  ;;  %3030 = vmatpush.bf16.msrb.mxu2 %v8596_v36  ;;  %v8606_v2 = vld [vmem:[#allocation75_spill] sm:$0xff]  ;;  %v8607_v36 = vld [vmem:[#allocation84_spill] sm:$0xff] }
 0x287   : > { %3014 = vmatpush.bf16.msrb.mxu1 %v8593_v49  ;;  %3042 = vmatpush.bf16.msrb.mxu3 %v8594_v30  ;;  %v8604_v49 = vld [vmem:[#allocation78_spill] sm:$0xff]  ;;  %v8605_v30 = vld [vmem:[#allocation73_spill] sm:$0xff] }
 0x289   : > { %3003 = vmatpush.bf16.msrb.mxu0 %v8599_v40  ;;  %3031 = vmatpush.bf16.msrb.mxu2 %v8600_v1  ;;  %v8610_v40 = vld [vmem:[#allocation80_spill] sm:$0xff] }
 0x28a   : > { %v8611_v1 = vld [vmem:[#allocation88_spill] sm:$0xff] }
 0x28b   : > { %3015 = vmatpush.bf16.msrb.mxu1 %v8597_v7  ;;  %3043 = vmatpush.bf16.msrb.mxu3 %v8598_v47  ;;  %v8608_v7 = vld [vmem:[#allocation86_spill] sm:$0xff]  ;;  %v8609_v47 = vld [vmem:[#allocation77_spill] sm:$0xff] }
 0x28d   : > { %3004 = vmatpush.bf16.msrb.mxu0 %v8603_v12  ;;  %3032 = vmatpush.bf16.msrb.mxu2 %v8604_v49  ;;  %v8614_v12 = vld [vmem:[#allocation87_spill] sm:$0xff] }
 0x28f   : > { %3016 = vmatpush.bf16.msrb.mxu1 %v8601_v29  ;;  %3044 = vmatpush.bf16.msrb.mxu3 %v8602_v46  ;;  %v8612_v29 = vld [vmem:[#allocation90_spill] sm:$0xff]  ;;  %v8613_v46 = vld [vmem:[#allocation85_spill] sm:$0xff] }
 0x291   : > { %3005 = vmatpush.bf16.msrb.mxu0 %v8607_v36  ;;  %3033 = vmatpush.bf16.msrb.mxu2 %v8608_v7  ;;  %v2420_v7 = vunpack.c.l.bf16 %v8617_v58 }
 0x293   : > { %3017 = vmatpush.bf16.msrb.mxu1 %v8605_v30  ;;  %3045 = vmatpush.bf16.msrb.mxu3 %v8606_v2  ;;  %v8615_v30 = vld [vmem:[#allocation89_spill] sm:$0xff]  ;;  %v8616_v2 = vld [vmem:[#allocation92_spill] sm:$0xff] }
 0x295   : > { %3006 = vmatpush.bf16.msrb.mxu0 %v8611_v1  ;;  %3034 = vmatpush.bf16.msrb.mxu2 %v8612_v29  ;;  %v2447_v49 = vpop.f32.mrf.mxu0  ;;  %v2421_v1 = vunpack.c.h.bf16 %v8617_v58 }
 0x297   : > { %3018 = vmatpush.bf16.msrb.mxu1 %v8609_v47  ;;  %3046 = vmatpush.bf16.msrb.mxu3 %v8610_v40  ;;  %v2448_v47 = vadd.f32 %v2447_v49, %v2420_v7 }
 0x29b   : > { %3019 = vmatpush.bf16.msrb.mxu1 %v8613_v46  ;;  %3047 = vmatpush.bf16.msrb.mxu3 %v8614_v12  ;;  %v2475_v36 = vpop.f32.mrf.mxu2  ;;  %v2428_v12 = vunpack.c.l.bf16 %v8618_v18 }
 0x29c   : > { %v2476_v46 = vadd.f32 %v2475_v36, %v2421_v1  ;;  %v8619_v1 = vld [vmem:[#allocation140_spill] sm:$0xff] }
 0x29d   : > { %v2449_v8 = vpop.f32.mrf.mxu0  ;;  %v2422_v36 = vunpack.c.l.bf16 %v8619_v1 }
 0x29f   : > { %3020 = vmatpush.bf16.msrb.mxu1 %v8615_v30  ;;  %3048 = vmatpush.bf16.msrb.mxu3 %v8616_v2  ;;  %v2461_v5 = vpop.f32.mrf.mxu1  ;;  %v2450_v30 = vadd.f32 %v2449_v8, %v2428_v12 }
 0x2a0   : > { %v2462_v40 = vadd.f32 %v2461_v5, %v2448_v47  ;;  %v2429_v5 = vunpack.c.h.bf16 %v8618_v18 }
 0x2a2   : > { %v4851_v15 = vmul.f32 -1.442695, %v2462_v40 }
 0x2a3   : > { %v2477_v29 = vpop.f32.mrf.mxu2 }
 0x2a4   : > { %5210 = vpow2.f32 %v4851_v15  ;;  %v2478_v58 = vadd.f32 %v2477_v29, %v2429_v5  ;;  %v8620_v5 = vld [vmem:[#allocation153_spill] sm:$0xff] }
 0x2a5   : > { %v2489_v32 = vpop.f32.mrf.mxu3  ;;  %v2503_v11 = vpop.f32.mrf.mxu0 }
 0x2a6   : > { %v2490_v51 = vadd.f32 %v2489_v32, %v2476_v46  ;;  %v2504_v12 = vadd.f32 %v2503_v11, %v2422_v36 }
 0x2a7   : > { %v2463_v2 = vpop.f32.mrf.mxu1 }
 0x2a8   : > { %v4852_v38 = vmul.f32 -1.442695, %v2490_v51  ;;  %v2464_v3 = vadd.f32 %v2463_v2, %v2450_v30  ;;  %v2423_v30 = vunpack.c.h.bf16 %v8619_v1 }
 0x2aa   : > { %v5211_v43 = vpop.eup %5210  ;;  %5212 = vpow2.f32 %v4852_v38  ;;  %v4853_v7 = vmul.f32 -1.442695, %v2464_v3 }
 0x2ab   : > { %v6942_v47 = vadd.f32 1.0, %v5211_v43  ;;  %v2531_v40 = vpop.f32.mrf.mxu2 }
 0x2ac   : > { %5214 = vpow2.f32 %v4853_v7  ;;  %v2532_v7 = vadd.f32 %v2531_v40, %v2423_v30 }
 0x2ad   : > { %5216 = vrcp.f32 %v6942_v47  ;;  %v2491_v15 = vpop.f32.mrf.mxu3  ;;  %v2505_v8 = vpop.f32.mrf.mxu0  ;;  %v2689_v14 = vand.u32 2147483648, %v6942_v47  ;;  %vm2683_vm2 = vweird.f32 %v6942_v47 }
 0x2ae   : > { %v2492_v32 = vadd.f32 %v2491_v15, %v2478_v58  ;;  %v2430_v58 = vunpack.c.l.bf16 %v8620_v5 }
 0x2af   : > { %v2517_v51 = vpop.f32.mrf.mxu1  ;;  %v2690_v17 = vor.u32 1.1754944e-38, %v2689_v14 }
 0x2b0   : > { %v5213_v46 = vpop.eup %5212  ;;  %v4854_v2 = vmul.f32 -1.442695, %v2492_v32  ;;  %v2518_v38 = vadd.f32 %v2517_v51, %v2504_v12  ;;  %v2506_v32 = vadd.f32 %v2505_v8, %v2430_v58 }
 0x2b1   : > { %v6946_v3 = vadd.f32 1.0, %v5213_v46  ;;  %v2431_v46 = vunpack.c.h.bf16 %v8620_v5 }
 0x2b2   : > { %v5215_v18 = vpop.eup %5214  ;;  %5218 = vpow2.f32 %v4854_v2  ;;  %v4855_v43 = vmul.f32 -1.442695, %v2518_v38 }
 0x2b3   : > { %v6949_v29 = vpop.eup %5216  ;;  %5220 = vrcp.f32 %v6946_v3  ;;  %v6952_v49 = vadd.f32 1.0, %v5215_v18  ;;  %v2533_v15 = vpop.f32.mrf.mxu2  ;;  %vm2698_vm5 = vweird.f32 %v6946_v3 }
 0x2b4   : > { %v2679_v11 = vmul.f32 %v6949_v29, %v6942_v47  ;;  %5222 = vpow2.f32 %v4855_v43  ;;  %vm2684_vm1 = vweird.f32 %v6949_v29 }
 0x2b5   : > { %5224 = vrcp.f32 %v6952_v49  ;;  %v2545_v36 = vpop.f32.mrf.mxu3  ;;  %v2559_v25 = vpop.f32.mrf.mxu0  ;;  %vm6989_vm4 = vmor %vm2683_vm2, %vm2684_vm1  ;;  %v2717_v52 = vand.u32 2147483647, %v6952_v49  ;;  %vm2713_vm7 = vweird.f32 %v6952_v49 }
 0x2b6   : > { %v2680_v12 = vsub.f32 1.0, %v2679_v11  ;;  %v2546_v1 = vadd.f32 %v2545_v36, %v2532_v7  ;;  %v8622_v11 = vld [vmem:[#allocation58_spill] sm:$0xff] }
 0x2b7   : > { %v2519_v51 = vpop.f32.mrf.mxu1  ;;  %v2432_v8 = vunpack.c.l.bf16 %v8622_v11  ;;  %vm7033_vm12 = vcmp.eq.f32.partialorder %v2717_v52, 8.507059e+37 }
 0x2b8   : > { %v5219_v2 = vpop.eup %5218  ;;  %v4856_v38 = vmul.f32 -1.442695, %v2546_v1  ;;  %v2520_v18 = vadd.f32 %v2519_v51, %v2506_v32  ;;  %v2681_v40 = vmul.f32 %v6949_v29, %v2680_v12  ;;  %v2687_v32 = vand.u32 2147483647, %v6942_v47 }
 0x2b9   : > { %v6961_v43 = vpop.eup %5220  ;;  %v6963_v30 = vadd.f32 1.0, %v5219_v2  ;;  %v2534_v51 = vadd.f32 %v2533_v15, %v2431_v46  ;;  %v2560_v46 = vadd.f32 %v2559_v25, %v2424_v42  ;;  %v2702_v47 = vand.u32 2147483647, %v6946_v3 }
 0x2ba   : > { %v5223_v58 = vpop.eup %5222  ;;  %v2694_v5 = vmul.f32 %v6961_v43, %v6946_v3  ;;  %5226 = vpow2.f32 %v4856_v38  ;;  %v4857_v36 = vmul.f32 -1.442695, %v2520_v18  ;;  %v2682_v7 = vadd.f32 %v6949_v29, %v2681_v40 }
 0x2bb   : > { %v6971_v1 = vpop.eup %5224  ;;  %5228 = vrcp.f32 %v6963_v30  ;;  %v6974_v12 = vadd.f32 1.0, %v5223_v58  ;;  %v2704_v18 = vand.u32 2147483648, %v6946_v3  ;;  %v2719_v58 = vand.u32 2147483648, %v6952_v49  ;;  %v2587_v27 = vpop.f32.mrf.mxu2 }
 0x2bc   : > { %v2709_v2 = vmul.f32 %v6971_v1, %v6952_v49  ;;  %5230 = vpow2.f32 %v4857_v36  ;;  %v2695_v15 = vsub.f32 1.0, %v2694_v5  ;;  %vm6985_vm3 = vcmp.eq.f32.partialorder %v2687_v32, 8.507059e+37 }
 0x2bd   : > { %5232 = vrcp.f32 %v6974_v12  ;;  %v2547_v38 = vpop.f32.mrf.mxu3  ;;  %v2765_v25 = vand.u32 2147483648, %v6974_v12  ;;  %v2686_v32 = vsel %vm6989_vm4, %v6949_v29, %v2682_v7  ;;  %vm2699_vm6 = vweird.f32 %v6961_v43  ;;  %v2561_v29 = vpop.f32.mrf.mxu0 }
 0x2be   : > { %v2548_v9 = vadd.f32 %v2547_v38, %v2534_v51  ;;  %v2710_v36 = vsub.f32 1.0, %v2709_v2  ;;  %v7005_v14 = vor.u32 1.1754944e-38, %v2704_v18  ;;  %v7008_v38 = vor.u32 1.1754944e-38, %v2719_v58  ;;  %vm7050_vm0 = vmor %vm2698_vm5, %vm2699_vm6 }
 0x2bf   : > { %v2573_v40 = vpop.f32.mrf.mxu1  ;;  %vm2759_vm8 = vweird.f32 %v6974_v12  ;;  %v2763_v6 = vand.u32 2147483647, %v6974_v12  ;;  %v2696_v7 = vmul.f32 %v6961_v43, %v2695_v15  ;;  %v2691_v18 = vsel %vm6985_vm3, %v2690_v17, %v2686_v32 }
 0x2c0   : > { %v5227_v39 = vpop.eup %5226  ;;  %v4858_v42 = vmul.f32 -1.442695, %v2548_v9  ;;  %v2574_v5 = vadd.f32 %v2573_v40, %v2560_v46  ;;  %v2711_v58 = vmul.f32 %v6971_v1, %v2710_v36  ;;  %v2766_v45 = vor.u32 1.1754944e-38, %v2765_v25 }
 0x2c1   : > { %v7000_v51 = vpop.eup %5228  ;;  %v7002_v2 = vadd.f32 1.0, %v5227_v39  ;;  %vm7020_vm9 = vcmp.eq.f32.partialorder %v2702_v47, 8.507059e+37  ;;  %vm2714_vm10 = vweird.f32 %v6971_v1  ;;  %vm7028_vm11 = vcmp.eq.f32.partialorder %v2763_v6, 8.507059e+37 }
 0x2c2   : > { %v5231_v9 = vpop.eup %5230  ;;  %5234 = vpow2.f32 %v4858_v42  ;;  %v2588_v42 = vadd.f32 %v2587_v27, %v2425_v31  ;;  %v2724_v15 = vmul.f32 %v7000_v51, %v6963_v30  ;;  %v2697_v31 = vadd.f32 %v6961_v43, %v2696_v7  ;;  %vm7063_vm2 = vmor %vm2713_vm7, %vm2714_vm10 }
 0x2c3   : > { %v5233_v46 = vpop.eup %5232  ;;  %5236 = vrcp.f32 %v7002_v2  ;;  %v7014_v39 = vadd.f32 1.0, %v5231_v9  ;;  %v2562_v9 = vadd.f32 %v2561_v29, %v2432_v8  ;;  %v2712_v25 = vadd.f32 %v6971_v1, %v2711_v58 }
 0x2c4   : > { %v2755_v40 = vmul.f32 %v5233_v46, %v6974_v12  ;;  %5238 = vtanh.f32 %v2574_v5  ;;  %vm2729_vm13 = vweird.f32 %v7000_v51  ;;  %vm2760_vm14 = vweird.f32 %v5233_v46 }
 0x2c5   : > { %5240 = vrcp.f32 %v7014_v39  ;;  %v2601_v57 = vpop.f32.mrf.mxu3  ;;  %vm2774_vm15 = vweird.f32 %v7002_v2  ;;  %v2725_v29 = vsub.f32 1.0, %v2724_v15  ;;  %v2780_v7 = vand.u32 2147483648, %v7002_v2  ;;  %vm2761_vm3 = vmor %vm2759_vm8, %vm2760_vm14 }
 0x2c6   : > { %v2756_v50 = vsub.f32 1.0, %v2755_v40  ;;  %v2602_v36 = vadd.f32 %v2601_v57, %v2588_v42  ;;  %v2795_v40 = vand.u32 2147483648, %v7014_v39  ;;  %vm2728_vm1 = vweird.f32 %v6963_v30 }
 0x2c7   : > { %v2575_v47 = vpop.f32.mrf.mxu1  ;;  %v2778_v42 = vand.u32 2147483647, %v7002_v2  ;;  %v2726_v60 = vmul.f32 %v7000_v51, %v2725_v29  ;;  %vm2789_vm6 = vweird.f32 %v7014_v39 }
 0x2c8   : > { %v5235_v32 = vpop.eup %5234  ;;  %v2757_v6 = vmul.f32 %v5233_v46, %v2756_v50  ;;  %5242 = vtanh.f32 %v2602_v36  ;;  %v2576_v57 = vadd.f32 %v2575_v47, %v2562_v9  ;;  %v2589_v50 = vpop.f32.mrf.mxu2  ;;  %v2701_v47 = vsel %vm7050_vm0, %v6961_v43, %v2697_v31 }
 0x2c9   : > { %v5237_v52 = vpop.eup %5236  ;;  %v7044_v58 = vadd.f32 1.0, %v5235_v32  ;;  %v2716_v43 = vsel %vm7063_vm2, %v6971_v1, %v2712_v25  ;;  %v2727_v17 = vadd.f32 %v7000_v51, %v2726_v60  ;;  %v2796_v27 = vor.u32 1.1754944e-38, %v2795_v40 }
 0x2ca   : > { %v5239_v9 = vpop.eup %5238  ;;  %v2770_v15 = vmul.f32 %v5237_v52, %v7002_v2  ;;  %v2758_v36 = vadd.f32 %v5233_v46, %v2757_v6  ;;  %5244 = vtanh.f32 %v2576_v57  ;;  %v8637_v57 = vunpack.c.h.bf16 %v8622_v11 }
 0x2cb   : > { %v5241_v32 = vpop.eup %5240  ;;  %5246 = vrcp.f32 %v7044_v58  ;;  %v2898_v6 = vmul.f32 %v5239_v9, %v2691_v18  ;;  %vm2775_vm4 = vweird.f32 %v5237_v52  ;;  %v2706_v18 = vsel %vm7020_vm9, %v7005_v14, %v2701_v47  ;;  %vm7101_vm9 = vmor %vm2728_vm1, %vm2729_vm13 }
 0x2cc   : > { %v2771_v49 = vsub.f32 1.0, %v2770_v15  ;;  %v2785_v31 = vmul.f32 %v5241_v32, %v7014_v39  ;;  %v2762_v8 = vsel %vm2761_vm3, %v5233_v46, %v2758_v36  ;;  %v2590_v5 = vadd.f32 %v2589_v50, %v8637_v57  ;;  %vm2776_vm5 = vmor %vm2774_vm15, %vm2775_vm4 }
 0x2cd   : > { %v2767_v12 = vsel %vm7028_vm11, %v2766_v45, %v2762_v8  ;;  %v2603_v9 = vpop.f32.mrf.mxu3  ;;  %v2721_v11 = vsel %vm7033_vm12, %v7008_v38, %v2716_v43  ;;  %v2793_v45 = vand.u32 2147483647, %v7014_v39  ;;  %vm2790_vm7 = vweird.f32 %v5241_v32 }
 0x2ce   : > { %v5243_v3 = vpop.eup %5242  ;;  %v2772_v1 = vmul.f32 %v5237_v52, %v2771_v49  ;;  %v2786_v25 = vsub.f32 1.0, %v2785_v31  ;;  %v2894_v15 = vmul.f32 %v2767_v12, %v6622_v0  ;;  %v2604_v46 = vadd.f32 %v2603_v9, %v2590_v5  ;;  %vm2791_vm11 = vmor %vm2789_vm6, %vm2790_vm7 }
 0x2cf   : > { %v2899_v36 = vmul.f32 %v5243_v3, %v2706_v18  ;;  %v2781_v0 = vor.u32 1.1754944e-38, %v2780_v7  ;;  %vm2779_vm8 = vcmp.eq.f32.partialorder %v2778_v42, 8.507059e+37  ;;  %vm2794_vm10 = vcmp.eq.f32.partialorder %v2793_v45, 8.507059e+37 }
 0x2d0   : > { %v5245_v20 = vpop.eup %5244  ;;  %v2787_v14 = vmul.f32 %v5241_v32, %v2786_v25  ;;  %v7090_v8 = vadd.f32 %v2898_v6, %v2894_v15  ;;  %v2773_v29 = vadd.f32 %v5237_v52, %v2772_v1  ;;  %5248 = vtanh.f32 %v2604_v46 }
 0x2d1   : > { %v5247_v50 = vpop.eup %5246  ;;  %v2900_v38 = vmul.f32 %v5245_v20, %v2721_v11  ;;  %v2731_v39 = vsel %vm7101_vm9, %v7000_v51, %v2727_v17  ;;  %v8640_v42 = vand.u32 2147483648, %v6963_v30  ;;  %v8641_v31 = vand.u32 2147483647, %v6963_v30  ;;  %v8642_v30 = vld [vmem:[#allocation45_spill] sm:$0xff] }
 0x2d2   : > { %v2800_v5 = vmul.f32 %v5247_v50, %v7044_v58  ;;  %v2777_v60 = vsel %vm2776_vm5, %v5237_v52, %v2773_v29  ;;  %v2788_v6 = vadd.f32 %v5241_v32, %v2787_v14  ;;  %v2810_v52 = vand.u32 2147483648, %v7044_v58 }
 0x2d3   : > { %v2782_v2 = vsel %vm2779_vm8, %v2781_v0, %v2777_v60  ;;  %v2735_v43 = vor.u32 1.1754944e-38, %v8640_v42  ;;  %vm2805_vm12 = vweird.f32 %v5247_v50  ;;  %vm2733_vm13 = vcmp.eq.f32.partialorder %v8641_v31, 8.507059e+37  ;;  %v8643_v60 = vld [vmem:[#allocation59_spill] sm:$0xff] }
 0x2d4   : > { %v2801_v7 = vsub.f32 1.0, %v2800_v5  ;;  %v2895_v40 = vmul.f32 %v2782_v2, %v6636_v28  ;;  %v2792_v49 = vsel %vm2791_vm11, %v5241_v32, %v2788_v6  ;;  %v2808_v57 = vand.u32 2147483647, %v7044_v58 }
 0x2d5   : > { %v2797_v51 = vsel %vm2794_vm10, %v2796_v27, %v2792_v49  ;;  %v2736_v3 = vsel %vm2733_vm13, %v2735_v43, %v2731_v39  ;;  %v2615_v1 = vpop.f32.mrf.mxu0  ;;  %vm2804_vm14 = vweird.f32 %v7044_v58  ;;  %v2811_v32 = vor.u32 1.1754944e-38, %v2810_v52 }
 0x2d6   : > { %v5249_v12 = vpop.eup %5248  ;;  %v2802_v18 = vmul.f32 %v5247_v50, %v2801_v7  ;;  %v7115_v9 = vadd.f32 %v2899_v36, %v2895_v40  ;;  %v2896_v25 = vmul.f32 %v2797_v51, %v6727_v63  ;;  %vm2806_vm15 = vmor %vm2804_vm14, %vm2805_vm12  ;;  %v2426_v11 = vunpack.c.l.bf16 %v8642_v30 }
 0x2d7   : > { %v2901_v28 = vmul.f32 %v5249_v12, %v2736_v3  ;;  %vm2809_vm0 = vcmp.eq.f32.partialorder %v2808_v57, 8.507059e+37  ;;  %v2427_v58 = vunpack.c.h.bf16 %v8642_v30  ;;  %v2434_v47 = vunpack.c.l.bf16 %v8643_v60 }
 0x2d8   : > { %v2803_v15 = vadd.f32 %v5247_v50, %v2802_v18  ;;  %v7119_v46 = vadd.f32 %v2900_v38, %v2896_v25  ;;  %v2616_v36 = vadd.f32 %v2615_v1, %v2426_v11  ;;  %v2435_v43 = vunpack.c.h.bf16 %v8643_v60 }
 0x2da   : > { %v2807_v45 = vsel %vm2806_vm15, %v5247_v50, %v2803_v15 }
 0x2db   : > { %v2812_v17 = vsel %vm2809_vm0, %v2811_v32, %v2807_v45  ;;  %v2643_v29 = vpop.f32.mrf.mxu2 }
 0x2dc   : > { %v2897_v20 = vmul.f32 %v2812_v17, %v6770_v10  ;;  %v2644_v38 = vadd.f32 %v2643_v29, %v2427_v58 }
 0x2dd   : > { %v2617_v5 = vpop.f32.mrf.mxu0 }
 0x2de   : > { %v7123_v63 = vadd.f32 %v2901_v28, %v2897_v20  ;;  %v2618_v50 = vadd.f32 %v2617_v5, %v2434_v47 }
 0x2df   : > { %v2629_v14 = vpop.f32.mrf.mxu1 }
 0x2e0   : > { %v2630_v0 = vadd.f32 %v2629_v14, %v2616_v36 }
 0x2e2   : > { %v4859_v27 = vmul.f32 -1.442695, %v2630_v0 }
 0x2e3   : > { %v2645_v10 = vpop.f32.mrf.mxu2 }
 0x2e4   : > { %5250 = vpow2.f32 %v4859_v27  ;;  %v2646_v31 = vadd.f32 %v2645_v10, %v2435_v43 }
 0x2e5   : > { %v2657_v2 = vpop.f32.mrf.mxu3 }
 0x2e6   : > { %v2658_v6 = vadd.f32 %v2657_v2, %v2644_v38 }
 0x2e7   : > { %v2631_v39 = vpop.f32.mrf.mxu1 }
 0x2e8   : > { %v4860_v7 = vmul.f32 -1.442695, %v2658_v6  ;;  %v2632_v52 = vadd.f32 %v2631_v39, %v2618_v50 }
 0x2ea   : > { %v5251_v40 = vpop.eup %5250  ;;  %5252 = vpow2.f32 %v4860_v7  ;;  %v4861_v42 = vmul.f32 -1.442695, %v2632_v52 }
 0x2eb   : > { %v2830_v49 = vadd.f32 1.0, %v5251_v40 }
 0x2ec   : > { %5254 = vpow2.f32 %v4861_v42 }
 0x2ed   : > { %5256 = vrcp.f32 %v2830_v49  ;;  %v2659_v57 = vpop.f32.mrf.mxu3  ;;  %v2843_v14 = vand.u32 2147483647, %v2830_v49  ;;  %v2845_v58 = vand.u32 2147483648, %v2830_v49  ;;  %vm2839_vm2 = vweird.f32 %v2830_v49 }
 0x2ee   : > { %v2660_v12 = vadd.f32 %v2659_v57, %v2646_v31 }
 0x2ef   : > { %vm7143_vm4 = vcmp.eq.f32.partialorder %v2843_v14, 8.507059e+37  ;;  %v2846_v52 = vor.u32 1.1754944e-38, %v2845_v58 }
 0x2f0   : > { %v5253_v18 = vpop.eup %5252  ;;  %v4862_v51 = vmul.f32 -1.442695, %v2660_v12 }
 0x2f1   : > { %v7128_v3 = vadd.f32 1.0, %v5253_v18 }
 0x2f2   : > { %v5255_v1 = vpop.eup %5254  ;;  %5258 = vpow2.f32 %v4862_v51 }
 0x2f3   : > { %v5257_v25 = vpop.eup %5256  ;;  %5260 = vrcp.f32 %v7128_v3  ;;  %v2832_v15 = vadd.f32 1.0, %v5255_v1  ;;  %vm2854_vm7 = vweird.f32 %v7128_v3  ;;  %v2860_v43 = vand.u32 2147483648, %v7128_v3 }
 0x2f4   : > { %v2835_v28 = vmul.f32 %v5257_v25, %v2830_v49  ;;  %vm2840_vm1 = vweird.f32 %v5257_v25  ;;  %v2858_v12 = vand.u32 2147483647, %v7128_v3 }
 0x2f5   : > { %5262 = vrcp.f32 %v2832_v15  ;;  %vm7139_vm3 = vmor %vm2839_vm2, %vm2840_vm1  ;;  %v2875_v2 = vand.u32 2147483648, %v2832_v15  ;;  %v2873_v7 = vand.u32 2147483647, %v2832_v15  ;;  %vm2869_vm8 = vweird.f32 %v2832_v15 }
 0x2f6   : > { %v2836_v32 = vsub.f32 1.0, %v2835_v28  ;;  %vm2859_vm13 = vcmp.eq.f32.partialorder %v2858_v12, 8.507059e+37  ;;  %v8663_v12 = vld [vmem:[#allocation146_spill] sm:$0xff] }
 0x2f7   : > { %v2876_v18 = vor.u32 1.1754944e-38, %v2875_v2  ;;  %vm2874_vm11 = vcmp.eq.f32.partialorder %v2873_v7, 8.507059e+37  ;;  %v8654_v7 = vld [vmem:[#allocation142_spill] sm:$0xff] }
 0x2f8   : > { %v5259_v30 = vpop.eup %5258  ;;  %v2837_v45 = vmul.f32 %v5257_v25, %v2836_v32 }
 0x2f9   : > { %v5261_v11 = vpop.eup %5260  ;;  %v7131_v17 = vadd.f32 1.0, %v5259_v30 }
 0x2fa   : > { %v2850_v36 = vmul.f32 %v5261_v11, %v7128_v3  ;;  %v2838_v0 = vadd.f32 %v5257_v25, %v2837_v45  ;;  %vm2855_vm6 = vweird.f32 %v5261_v11 }
 0x2fb   : > { %5264 = vrcp.f32 %v7131_v17  ;;  %v5263_v20 = vpop.eup %5262  ;;  %vm7155_vm10 = vmor %vm2854_vm7, %vm2855_vm6  ;;  %v2888_v32 = vand.u32 2147483647, %v7131_v17  ;;  %vm2884_vm14 = vweird.f32 %v7131_v17 }
 0x2fc   : > { %v2851_v29 = vsub.f32 1.0, %v2850_v36  ;;  %5266 = vtanh.f32 %v7090_v8  ;;  %v2865_v27 = vmul.f32 %v5263_v20, %v2832_v15  ;;  %v2842_v6 = vsel %vm7139_vm3, %v5257_v25, %v2838_v0  ;;  %v8667_v25 = vld [vmem:[#allocation150_spill] sm:$0xff] }
 0x2fd   : > { %5268 = vtanh.f32 %v7115_v9  ;;  %vm2870_vm5 = vweird.f32 %v5263_v20  ;;  %v2847_v57 = vsel %vm7143_vm4, %v2846_v52, %v2842_v6  ;;  %v2890_v15 = vand.u32 2147483648, %v7131_v17  ;;  %v8652_v6 = vld [vmem:[#allocation134_spill] sm:$0xff]  ;;  %v8655_v52 = vld [vmem:[#allocation145_spill] sm:$0xff] }
 0x2fe   : > { %v2852_v5 = vmul.f32 %v5261_v11, %v2851_v29  ;;  %5270 = vtanh.f32 %v7119_v46  ;;  %v2866_v38 = vsub.f32 1.0, %v2865_v27  ;;  %vm2871_vm9 = vmor %vm2869_vm8, %vm2870_vm5  ;;  %v2861_v29 = vor.u32 1.1754944e-38, %v2860_v43  ;;  %v8659_v43 = vld [vmem:[#allocation149_spill] sm:$0xff] }
 0x2ff   : > { %5272 = vtanh.f32 %v7123_v63  ;;  %vm2889_vm0 = vcmp.eq.f32.partialorder %v2888_v32, 8.507059e+37  ;;  %v8669_v32 = vld [vmem:[#allocation159_spill] sm:$0xff] }
 0x300   : > { %v2867_v39 = vmul.f32 %v5263_v20, %v2866_v38  ;;  %v2853_v10 = vadd.f32 %v5261_v11, %v2852_v5  ;;  %v2891_v5 = vor.u32 1.1754944e-38, %v2890_v15  ;;  %v8670_v15 = vld [vmem:[#allocation161_spill] sm:$0xff] }
 0x301   : > { %v5265_v50 = vpop.eup %5264 }
 0x302   : > { %v2880_v40 = vmul.f32 %v5265_v50, %v7131_v17  ;;  %v5267_v42 = vpop.eup %5266  ;;  %v2868_v49 = vadd.f32 %v5263_v20, %v2867_v39  ;;  %v2857_v45 = vsel %vm7155_vm10, %v5261_v11, %v2853_v10  ;;  %vm2885_vm12 = vweird.f32 %v5265_v50  ;;  %v8650_v17 = vld [vmem:[#allocation137_spill] sm:$0xff]  ;;  %v8653_v39 = vld [vmem:[#allocation139_spill] sm:$0xff] }
 0x303   : > { %v5269_v31 = vpop.eup %5268  ;;  %v2910_v14 = vmul.f32 %v5267_v42, %v2847_v57  ;;  %vm2886_vm15 = vmor %vm2884_vm14, %vm2885_vm12  ;;  %v8656_v10 = vld [vmem:[#allocation147_spill] sm:$0xff]  ;;  %v8658_v42 = vld [vmem:[#allocation138_spill] sm:$0xff] }
 0x304   : > { %v2881_v51 = vsub.f32 1.0, %v2880_v40  ;;  %v5271_v1 = vpop.eup %5270  ;;  %v2872_v28 = vsel %vm2871_vm9, %v5263_v20, %v2868_v49  ;;  %v2862_v20 = vsel %vm2859_vm13, %v2861_v29, %v2857_v45  ;;  %v8657_v40 = vld [vmem:[#allocation136_spill] sm:$0xff]  ;;  %v8660_v49 = vld [vmem:[#allocation151_spill] sm:$0xff]  ;;  %v8672_v45 = vld [vmem:[#allocation158_spill] sm:$0xff] }
 0x305   : > { %v5273_v30 = vpop.eup %5272  ;;  %v2877_v36 = vsel %vm2874_vm11, %v2876_v18, %v2872_v28  ;;  %v2911_v11 = vmul.f32 %v5269_v31, %v2862_v20  ;;  %v8661_v31 = vld [vmem:[#allocation141_spill] sm:$0xff]  ;;  %v8662_v57 = vld [vmem:[#allocation144_spill] sm:$0xff]  ;;  %v8676_v29 = vld [vmem:[#allocation162_spill] sm:$0xff] }
 0x306   : > { %v2882_v3 = vmul.f32 %v5265_v50, %v2881_v51  ;;  %v2912_v0 = vmul.f32 %v5271_v1, %v2877_v36  ;;  %v8664_v18 = vld [vmem:[#allocation148_spill] sm:$0xff]  ;;  %v8665_v51 = vld [vmem:[#allocation155_spill] sm:$0xff]  ;;  %v8666_v1 = vld [vmem:[#allocation157_spill] sm:$0xff] }
 0x307   : > { %v8668_v28 = vld [vmem:[#allocation152_spill] sm:$0xff]  ;;  %v8673_v36 = vld [vmem:[#allocation165_spill] sm:$0xff]  ;;  %v8679_v20 = vld [vmem:[#allocation166_spill] sm:$0xff] }
 0x308   : > { %v2883_v27 = vadd.f32 %v5265_v50, %v2882_v3  ;;  %v7164_v58 = vpack.c.bf16 %v2912_v0, %v2910_v14  ;;  %v8674_v3 = vld [vmem:[#allocation167_spill] sm:$0xff]  ;;  %v8675_v14 = vld [vmem:[#allocation160_spill] sm:$0xff]  ;;  %v8677_v0 = vld [vmem:[#allocation169_spill] sm:$0xff] }
 0x30a   : > { %v2887_v38 = vsel %vm2886_vm15, %v5265_v50, %v2883_v27  ;;  %2951 = vmatmul.bf16.vlgmr.msra.gmra.mxu0 %v7164_v58  ;;  %2979 = vmatmul.bf16.vlgmr.msra.gmra.mxu2 %v7164_v58  ;;  %v8651_v50 = vld [vmem:[#allocation131_spill] sm:$0xff] }
 0x30b   : > { %v2892_v60 = vsel %vm2889_vm0, %v2891_v5, %v2887_v38  ;;  %3055 = vmatpush.bf16.msra.mxu0 %v8511_v59  ;;  %3083 = vmatpush.bf16.msra.mxu2 %v8512_v24  ;;  %v8678_v27 = vld [vmem:[#allocation171_spill] sm:$0xff]  ;;  %v8680_v5 = vld [vmem:[#allocation168_spill] sm:$0xff] }
 0x30c   : > { %v2913_v47 = vmul.f32 %v5273_v30, %v2892_v60  ;;  %v8671_v30 = vld [vmem:[#allocation156_spill] sm:$0xff]  ;;  %v8681_v38 = vld [vmem:[#allocation175_spill] sm:$0xff]  ;;  %v8682_v60 = vld [vmem:[#allocation177_spill] sm:$0xff] }
 0x30e   : > { %v7170_v2 = vpack.c.bf16 %v2913_v47, %v2911_v11  ;;  %v8683_v11 = vld [vmem:[#allocation170_spill] sm:$0xff]  ;;  %v8684_v47 = vld [vmem:[#allocation172_spill] sm:$0xff] }
 0x30f   : > { %3056 = vmatpush.bf16.msra.mxu0 %v8513_v41  ;;  %3084 = vmatpush.bf16.msra.mxu2 %v8514_v34 }
 0x310   : > { %2965 = vmatmul.bf16.vlgmr.msra.gmra.mxu1 %v7170_v2  ;;  %2993 = vmatmul.bf16.vlgmr.msra.gmra.mxu3 %v7170_v2 }
 0x311   : > { %3069 = vmatpush.bf16.msra.mxu1 %v8517_v54  ;;  %3097 = vmatpush.bf16.msra.mxu3 %v8518_v56 }
 0x313   : > { %3057 = vmatpush.bf16.msra.mxu0 %v8515_v21  ;;  %3085 = vmatpush.bf16.msra.mxu2 %v8516_v44 }
 0x315   : > { %3070 = vmatpush.bf16.msra.mxu1 %v8521_v48  ;;  %3098 = vmatpush.bf16.msra.mxu3 %v8522_v62 }
 0x317   : > { %3058 = vmatpush.bf16.msra.mxu0 %v8519_v13  ;;  %3086 = vmatpush.bf16.msra.mxu2 %v8520_v33 }
 0x319   : > { %3071 = vmatpush.bf16.msra.mxu1 %v8525_v22  ;;  %3099 = vmatpush.bf16.msra.mxu3 %v8526_v23 }
 0x31a   : > { %3007 = vmatmul.bf16.vlgmr.msrb.gmra.mxu0 %v7164_v58  ;;  %3035 = vmatmul.bf16.vlgmr.msrb.gmra.mxu2 %v7164_v58 }
 0x31b   : > { %3059 = vmatpush.bf16.msra.mxu0 %v8523_v4  ;;  %3087 = vmatpush.bf16.msra.mxu2 %v8524_v55 }
 0x31d   : > { %3072 = vmatpush.bf16.msra.mxu1 %v8529_v53  ;;  %3100 = vmatpush.bf16.msra.mxu3 %v8530_v26 }
 0x31f   : > { %3060 = vmatpush.bf16.msra.mxu0 %v8527_v19  ;;  %3088 = vmatpush.bf16.msra.mxu2 %v8528_v37 }
 0x320   : > { %3021 = vmatmul.bf16.vlgmr.msrb.gmra.mxu1 %v7170_v2  ;;  %3049 = vmatmul.bf16.vlgmr.msrb.gmra.mxu3 %v7170_v2 }
 0x321   : > { %3073 = vmatpush.bf16.msra.mxu1 %v8532_v35  ;;  %3101 = vmatpush.bf16.msra.mxu3 %v8533_v16 }
 0x323   : > { %3061 = vmatpush.bf16.msra.mxu0 %v8531_v61  ;;  %3089 = vmatpush.bf16.msra.mxu2 %v8650_v17 }
 0x325   : > { %3074 = vmatpush.bf16.msra.mxu1 %v8651_v50  ;;  %3102 = vmatpush.bf16.msra.mxu3 %v8652_v6 }
 0x327   : > { %3062 = vmatpush.bf16.msra.mxu0 %v8653_v39  ;;  %3090 = vmatpush.bf16.msra.mxu2 %v8654_v7 }
 0x329   : > { %3075 = vmatpush.bf16.msra.mxu1 %v8657_v40  ;;  %3103 = vmatpush.bf16.msra.mxu3 %v8658_v42 }
 0x32a   : > { %3063 = vmatmul.bf16.vlgmr.msra.gmra.mxu0 %v7164_v58  ;;  %3091 = vmatmul.bf16.vlgmr.msra.gmra.mxu2 %v7164_v58 }
 0x32b   : > { %3111 = vmatpush.bf16.msrb.mxu0 %v8655_v52  ;;  %3139 = vmatpush.bf16.msrb.mxu2 %v8656_v10 }
 0x32d   : > { %3076 = vmatpush.bf16.msra.mxu1 %v8661_v31  ;;  %3104 = vmatpush.bf16.msra.mxu3 %v8662_v57 }
 0x32f   : > { %3112 = vmatpush.bf16.msrb.mxu0 %v8659_v43  ;;  %3140 = vmatpush.bf16.msrb.mxu2 %v8660_v49 }
 0x330   : > { %3077 = vmatmul.bf16.vlgmr.msra.gmra.mxu1 %v7170_v2  ;;  %3105 = vmatmul.bf16.vlgmr.msra.gmra.mxu3 %v7170_v2 }
 0x331   : > { %3125 = vmatpush.bf16.msrb.mxu1 %v8663_v12  ;;  %3153 = vmatpush.bf16.msrb.mxu3 %v8664_v18  ;;  %v8759_v18 = vld [vmem:[#allocation67_spill] sm:$0xff] }
 0x332   : > { %v2929_v12 = vunpack.c.l.bf16 %v8759_v18 }
 0x333   : > { %3113 = vmatpush.bf16.msrb.mxu0 %v8665_v51  ;;  %3141 = vmatpush.bf16.msrb.mxu2 %v8666_v1 }
 0x335   : > { %3126 = vmatpush.bf16.msrb.mxu1 %v8667_v25  ;;  %3154 = vmatpush.bf16.msrb.mxu3 %v8668_v28 }
 0x337   : > { %3114 = vmatpush.bf16.msrb.mxu0 %v8669_v32  ;;  %3142 = vmatpush.bf16.msrb.mxu2 %v8670_v15 }
 0x339   : > { %3127 = vmatpush.bf16.msrb.mxu1 %v8671_v30  ;;  %3155 = vmatpush.bf16.msrb.mxu3 %v8672_v45 }
 0x33b   : > { %3115 = vmatpush.bf16.msrb.mxu0 %v8673_v36  ;;  %3143 = vmatpush.bf16.msrb.mxu2 %v8674_v3  ;;  %v8685_v3 = vld [vmem:[#allocation179_spill] sm:$0xff] }
 0x33d   : > { %3128 = vmatpush.bf16.msrb.mxu1 %v8675_v14  ;;  %3156 = vmatpush.bf16.msrb.mxu3 %v8676_v29  ;;  %v8686_v14 = vld [vmem:[#allocation181_spill] sm:$0xff]  ;;  %v8687_v29 = vld [vmem:[#allocation12_spill] sm:$0xff] }
 0x33f   : > { %3116 = vmatpush.bf16.msrb.mxu0 %v8677_v0  ;;  %3144 = vmatpush.bf16.msrb.mxu2 %v8678_v27  ;;  %v8688_v0 = vld [vmem:[#allocation14_spill] sm:$0xff]  ;;  %v8689_v27 = vld [vmem:[#allocation176_spill] sm:$0xff] }
 0x341   : > { %3129 = vmatpush.bf16.msrb.mxu1 %v8679_v20  ;;  %3157 = vmatpush.bf16.msrb.mxu3 %v8680_v5  ;;  %v8690_v20 = vld [vmem:[#allocation178_spill] sm:$0xff] }
 0x343   : > { %3117 = vmatpush.bf16.msrb.mxu0 %v8681_v38  ;;  %3145 = vmatpush.bf16.msrb.mxu2 %v8682_v60  ;;  %v8691_v60 = vld [vmem:[#allocation16_spill] sm:$0xff] }
 0x345   : > { %3130 = vmatpush.bf16.msrb.mxu1 %v8683_v11  ;;  %3158 = vmatpush.bf16.msrb.mxu3 %v8684_v47  ;;  %v8692_v11 = vld [vmem:[#allocation18_spill] sm:$0xff]  ;;  %v8693_v47 = vld [vmem:[#allocation180_spill] sm:$0xff] }
 0x347   : > { %3118 = vmatpush.bf16.msrb.mxu0 %v8685_v3  ;;  %3146 = vmatpush.bf16.msrb.mxu2 %v8686_v14  ;;  %v8694_v3 = vld [vmem:[#allocation182_spill] sm:$0xff]  ;;  %v8695_v14 = vld [vmem:[#allocation13_spill] sm:$0xff] }
 0x349   : > { %3131 = vmatpush.bf16.msrb.mxu1 %v8689_v27  ;;  %3159 = vmatpush.bf16.msrb.mxu3 %v8690_v20  ;;  %v8698_v20 = vld [vmem:[#allocation22_spill] sm:$0xff] }
 0x34a   : > { %3119 = vmatmul.bf16.vlgmr.msrb.gmra.mxu0 %v7164_v58  ;;  %3147 = vmatmul.bf16.vlgmr.msrb.gmra.mxu2 %v7164_v58  ;;  %v8699_v58 = vld [vmem:[#allocation17_spill] sm:$0xff]  ;;  %v8706_v27 = vld [vmem:[#allocation30_spill] sm:$0xff] }
 0x34b   : > { %3448 = vmatpush.bf16.msra.mxu0 %v8687_v29  ;;  %3476 = vmatpush.bf16.msra.mxu2 %v8688_v0  ;;  %v8696_v29 = vld [vmem:[#allocation15_spill] sm:$0xff]  ;;  %v8697_v0 = vld [vmem:[#allocation20_spill] sm:$0xff] }
 0x34d   : > { %3132 = vmatpush.bf16.msrb.mxu1 %v8693_v47  ;;  %3160 = vmatpush.bf16.msrb.mxu3 %v8694_v3  ;;  %v8702_v47 = vld [vmem:[#allocation26_spill] sm:$0xff]  ;;  %v8703_v3 = vld [vmem:[#allocation21_spill] sm:$0xff] }
 0x34f   : > { %3449 = vmatpush.bf16.msra.mxu0 %v8691_v60  ;;  %3477 = vmatpush.bf16.msra.mxu2 %v8692_v11  ;;  %v8700_v60 = vld [vmem:[#allocation19_spill] sm:$0xff]  ;;  %v8701_v11 = vld [vmem:[#allocation24_spill] sm:$0xff] }
 0x350   : > { %3133 = vmatmul.bf16.vlgmr.msrb.gmra.mxu1 %v7170_v2  ;;  %3161 = vmatmul.bf16.vlgmr.msrb.gmra.mxu3 %v7170_v2  ;;  %v8707_v2 = vld [vmem:[#allocation25_spill] sm:$0xff] }
 0x351   : > { %3462 = vmatpush.bf16.msra.mxu1 %v8695_v14  ;;  %3490 = vmatpush.bf16.msra.mxu3 %v8696_v29  ;;  %v8704_v14 = vld [vmem:[#allocation23_spill] sm:$0xff]  ;;  %v8705_v29 = vld [vmem:[#allocation28_spill] sm:$0xff] }
 0x353   : > { %3450 = vmatpush.bf16.msra.mxu0 %v8697_v0  ;;  %3478 = vmatpush.bf16.msra.mxu2 %v8698_v20  ;;  %v8708_v0 = vld [vmem:[#allocation27_spill] sm:$0xff]  ;;  %v8709_v20 = vld [vmem:[#allocation32_spill] sm:$0xff] }
 0x355   : > { %3463 = vmatpush.bf16.msra.mxu1 %v8699_v58  ;;  %3491 = vmatpush.bf16.msra.mxu3 %v8700_v60  ;;  %v8710_v58 = vld [vmem:[#allocation34_spill] sm:$0xff]  ;;  %v8711_v60 = vld [vmem:[#allocation29_spill] sm:$0xff] }
 0x357   : > { %3451 = vmatpush.bf16.msra.mxu0 %v8701_v11  ;;  %3479 = vmatpush.bf16.msra.mxu2 %v8702_v47  ;;  %v8712_v11 = vld [vmem:[#allocation31_spill] sm:$0xff]  ;;  %v8713_v47 = vld [vmem:[#allocation36_spill] sm:$0xff] }
 0x359   : > { %3464 = vmatpush.bf16.msra.mxu1 %v8703_v3  ;;  %3492 = vmatpush.bf16.msra.mxu3 %v8704_v14  ;;  %v8714_v3 = vld [vmem:[#allocation38_spill] sm:$0xff]  ;;  %v8715_v14 = vld [vmem:[#allocation33_spill] sm:$0xff] }
 0x35b   : > { %3452 = vmatpush.bf16.msra.mxu0 %v8705_v29  ;;  %3480 = vmatpush.bf16.msra.mxu2 %v8706_v27  ;;  %v8716_v29 = vld [vmem:[#allocation35_spill] sm:$0xff]  ;;  %v8717_v27 = vld [vmem:[#allocation40_spill] sm:$0xff] }
 0x35d   : > { %3465 = vmatpush.bf16.msra.mxu1 %v8707_v2  ;;  %3493 = vmatpush.bf16.msra.mxu3 %v8708_v0  ;;  %v8718_v2 = vld [vmem:[#allocation42_spill] sm:$0xff]  ;;  %v8719_v0 = vld [vmem:[#allocation47_spill] sm:$0xff] }
 0x35f   : > { %3453 = vmatpush.bf16.msra.mxu0 %v8709_v20  ;;  %3481 = vmatpush.bf16.msra.mxu2 %v8710_v58  ;;  %v8720_v20 = vld [vmem:[#allocation50_spill] sm:$0xff]  ;;  %v8721_v58 = vld [vmem:[#allocation37_spill] sm:$0xff] }
 0x361   : > { %3466 = vmatpush.bf16.msra.mxu1 %v8711_v60  ;;  %3494 = vmatpush.bf16.msra.mxu3 %v8712_v11  ;;  %v8722_v60 = vld [vmem:[#allocation39_spill] sm:$0xff]  ;;  %v8723_v11 = vld [vmem:[#allocation52_spill] sm:$0xff] }
 0x363   : > { %3454 = vmatpush.bf16.msra.mxu0 %v8713_v47  ;;  %3482 = vmatpush.bf16.msra.mxu2 %v8714_v3  ;;  %v8724_v47 = vld [vmem:[#allocation54_spill] sm:$0xff]  ;;  %v8725_v3 = vld [vmem:[#allocation41_spill] sm:$0xff] }
 0x365   : > { %3467 = vmatpush.bf16.msra.mxu1 %v8715_v14  ;;  %3495 = vmatpush.bf16.msra.mxu3 %v8716_v29  ;;  %v8726_v14 = vld [vmem:[#allocation44_spill] sm:$0xff] }
 0x366   : > { %v8727_v29 = vld [vmem:[#allocation48_spill] sm:$0xff] }
 0x367   : > { %3455 = vmatpush.bf16.msra.mxu0 %v8717_v27  ;;  %3483 = vmatpush.bf16.msra.mxu2 %v8718_v2  ;;  %v8728_v27 = vld [vmem:[#allocation51_spill] sm:$0xff]  ;;  %v8729_v2 = vld [vmem:[#allocation60_spill] sm:$0xff] }
 0x369   : > { %3468 = vmatpush.bf16.msra.mxu1 %v8721_v58  ;;  %3496 = vmatpush.bf16.msra.mxu3 %v8722_v60  ;;  %v8732_v58 = vld [vmem:[#allocation55_spill] sm:$0xff]  ;;  %v8733_v60 = vld [vmem:[#allocation64_spill] sm:$0xff] }
 0x36b   : > { %3504 = vmatpush.bf16.msrb.mxu0 %v8719_v0  ;;  %3532 = vmatpush.bf16.msrb.mxu2 %v8720_v20  ;;  %v8730_v0 = vld [vmem:[#allocation62_spill] sm:$0xff]  ;;  %v8731_v20 = vld [vmem:[#allocation53_spill] sm:$0xff] }
 0x36d   : > { %3469 = vmatpush.bf16.msra.mxu1 %v8725_v3  ;;  %3497 = vmatpush.bf16.msra.mxu3 %v8726_v14  ;;  %v8736_v3 = vld [vmem:[#allocation63_spill] sm:$0xff]  ;;  %v8737_v14 = vld [vmem:[#allocation72_spill] sm:$0xff] }
 0x36f   : > { %3505 = vmatpush.bf16.msrb.mxu0 %v8723_v11  ;;  %3533 = vmatpush.bf16.msrb.mxu2 %v8724_v47  ;;  %v8734_v11 = vld [vmem:[#allocation66_spill] sm:$0xff]  ;;  %v8735_v47 = vld [vmem:[#allocation61_spill] sm:$0xff] }
 0x371   : > { %3518 = vmatpush.bf16.msrb.mxu1 %v8727_v29  ;;  %3546 = vmatpush.bf16.msrb.mxu3 %v8728_v27  ;;  %v8738_v29 = vld [vmem:[#allocation74_spill] sm:$0xff]  ;;  %v8739_v27 = vld [vmem:[#allocation65_spill] sm:$0xff] }
 0x373   : > { %3506 = vmatpush.bf16.msrb.mxu0 %v8729_v2  ;;  %3534 = vmatpush.bf16.msrb.mxu2 %v8730_v0  ;;  %v8740_v2 = vld [vmem:[#allocation68_spill] sm:$0xff] }
 0x374   : > { %v8741_v0 = vld [vmem:[#allocation76_spill] sm:$0xff] }
 0x375   : > { %3519 = vmatpush.bf16.msrb.mxu1 %v8731_v20  ;;  %3547 = vmatpush.bf16.msrb.mxu3 %v8732_v58  ;;  %v8742_v20 = vld [vmem:[#allocation78_spill] sm:$0xff]  ;;  %v8743_v58 = vld [vmem:[#allocation73_spill] sm:$0xff] }
 0x377   : > { %3507 = vmatpush.bf16.msrb.mxu0 %v8733_v60  ;;  %3535 = vmatpush.bf16.msrb.mxu2 %v8734_v11  ;;  %v8744_v60 = vld [vmem:[#allocation75_spill] sm:$0xff]  ;;  %v8745_v11 = vld [vmem:[#allocation84_spill] sm:$0xff] }
 0x379   : > { %3520 = vmatpush.bf16.msrb.mxu1 %v8735_v47  ;;  %3548 = vmatpush.bf16.msrb.mxu3 %v8736_v3  ;;  %v8746_v47 = vld [vmem:[#allocation86_spill] sm:$0xff]  ;;  %v8747_v3 = vld [vmem:[#allocation77_spill] sm:$0xff] }
 0x37b   : > { %3508 = vmatpush.bf16.msrb.mxu0 %v8737_v14  ;;  %3536 = vmatpush.bf16.msrb.mxu2 %v8738_v29  ;;  %v8748_v14 = vld [vmem:[#allocation80_spill] sm:$0xff] }
 0x37c   : > { %v8749_v29 = vld [vmem:[#allocation88_spill] sm:$0xff] }
 0x37d   : > { %3521 = vmatpush.bf16.msrb.mxu1 %v8739_v27  ;;  %3549 = vmatpush.bf16.msrb.mxu3 %v8740_v2  ;;  %v8750_v27 = vld [vmem:[#allocation90_spill] sm:$0xff]  ;;  %v8751_v2 = vld [vmem:[#allocation85_spill] sm:$0xff] }
 0x37f   : > { %3509 = vmatpush.bf16.msrb.mxu0 %v8741_v0  ;;  %3537 = vmatpush.bf16.msrb.mxu2 %v8742_v20  ;;  %v8752_v0 = vld [vmem:[#allocation87_spill] sm:$0xff]  ;;  %v8753_v20 = vld [vmem:[#allocation89_spill] sm:$0xff] }
 0x381   : > { %3522 = vmatpush.bf16.msrb.mxu1 %v8743_v58  ;;  %3550 = vmatpush.bf16.msrb.mxu3 %v8744_v60  ;;  %v8754_v58 = vld [vmem:[#allocation92_spill] sm:$0xff] }
 0x383   : > { %3510 = vmatpush.bf16.msrb.mxu0 %v8745_v11  ;;  %3538 = vmatpush.bf16.msrb.mxu2 %v8746_v47  ;;  %v8755_v11 = vld [vmem:[#allocation154_spill] sm:$0xff] }
 0x384   : > { %v2925_v38 = vunpack.c.l.bf16 %v8755_v11 }
 0x385   : > { %3523 = vmatpush.bf16.msrb.mxu1 %v8747_v3  ;;  %3551 = vmatpush.bf16.msrb.mxu3 %v8748_v14 }
 0x387   : > { %3511 = vmatpush.bf16.msrb.mxu0 %v8749_v29  ;;  %3539 = vmatpush.bf16.msrb.mxu2 %v8750_v27  ;;  %v2952_v60 = vpop.f32.mrf.mxu0  ;;  %v2926_v29 = vunpack.c.h.bf16 %v8755_v11  ;;  %v8757_v11 = vld [vmem:[#allocation163_spill] sm:$0xff] }
 0x388   : > { %v2953_v47 = vadd.f32 %v2952_v60, %v2925_v38 }
 0x389   : > { %3524 = vmatpush.bf16.msrb.mxu1 %v8751_v2  ;;  %3552 = vmatpush.bf16.msrb.mxu3 %v8752_v0  ;;  %v8756_v2 = vld [vmem:[#allocation164_spill] sm:$0xff] }
 0x38a   : > { %v2933_v30 = vunpack.c.l.bf16 %v8756_v2 }
 0x38d   : > { %3525 = vmatpush.bf16.msrb.mxu1 %v8753_v20  ;;  %3553 = vmatpush.bf16.msrb.mxu3 %v8754_v58  ;;  %v2966_v5 = vpop.f32.mrf.mxu1  ;;  %v2980_v3 = vpop.f32.mrf.mxu2 }
 0x38e   : > { %v2967_v36 = vadd.f32 %v2966_v5, %v2953_v47  ;;  %v2981_v27 = vadd.f32 %v2980_v3, %v2926_v29  ;;  %v2934_v5 = vunpack.c.h.bf16 %v8756_v2  ;;  %v2927_v47 = vunpack.c.l.bf16 %v8757_v11 }
 0x38f   : > { %v2954_v14 = vpop.f32.mrf.mxu0 }
 0x390   : > { %v4863_v45 = vmul.f32 -1.442695, %v2967_v36  ;;  %v2955_v15 = vadd.f32 %v2954_v14, %v2933_v30 }
 0x392   : > { %5274 = vpow2.f32 %v4863_v45 }
 0x393   : > { %v2994_v0 = vpop.f32.mrf.mxu3 }
 0x394   : > { %v2995_v20 = vadd.f32 %v2994_v0, %v2981_v27 }
 0x395   : > { %v2968_v32 = vpop.f32.mrf.mxu1  ;;  %v2982_v58 = vpop.f32.mrf.mxu2 }
 0x396   : > { %v4864_v28 = vmul.f32 -1.442695, %v2995_v20  ;;  %v2969_v25 = vadd.f32 %v2968_v32, %v2955_v15  ;;  %v2983_v45 = vadd.f32 %v2982_v58, %v2934_v5  ;;  %v2928_v58 = vunpack.c.h.bf16 %v8757_v11 }
 0x397   : > { %v3008_v1 = vpop.f32.mrf.mxu0 }
 0x398   : > { %v5275_v38 = vpop.eup %5274  ;;  %5276 = vpow2.f32 %v4864_v28  ;;  %v4865_v60 = vmul.f32 -1.442695, %v2969_v25  ;;  %v3009_v3 = vadd.f32 %v3008_v1, %v2927_v47 }
 0x399   : > { %v7316_v36 = vadd.f32 1.0, %v5275_v38 }
 0x39a   : > { %5278 = vpow2.f32 %v4865_v60 }
 0x39b   : > { %5280 = vrcp.f32 %v7316_v36  ;;  %v2996_v30 = vpop.f32.mrf.mxu3  ;;  %vm3188_vm1 = vweird.f32 %v7316_v36 }
 0x39c   : > { %v2997_v14 = vadd.f32 %v2996_v30, %v2983_v45  ;;  %v8758_v45 = vld [vmem:[#allocation173_spill] sm:$0xff] }
 0x39d   : > { %v3022_v29 = vpop.f32.mrf.mxu1  ;;  %v3036_v27 = vpop.f32.mrf.mxu2  ;;  %v2935_v47 = vunpack.c.l.bf16 %v8758_v45 }
 0x39e   : > { %v5277_v32 = vpop.eup %5276  ;;  %v4866_v15 = vmul.f32 -1.442695, %v2997_v14  ;;  %v3023_v0 = vadd.f32 %v3022_v29, %v3009_v3  ;;  %v3037_v5 = vadd.f32 %v3036_v27, %v2928_v58 }
 0x39f   : > { %v7320_v28 = vadd.f32 1.0, %v5277_v32  ;;  %v3010_v25 = vpop.f32.mrf.mxu0 }
 0x3a0   : > { %v5279_v2 = vpop.eup %5278  ;;  %5282 = vpow2.f32 %v4866_v15  ;;  %v4867_v20 = vmul.f32 -1.442695, %v3023_v0  ;;  %v3011_v14 = vadd.f32 %v3010_v25, %v2935_v47 }
 0x3a1   : > { %v7323_v38 = vpop.eup %5280  ;;  %5284 = vrcp.f32 %v7320_v28  ;;  %v7326_v60 = vadd.f32 1.0, %v5279_v2  ;;  %v2936_v2 = vunpack.c.h.bf16 %v8758_v45  ;;  %v3209_v58 = vand.u32 2147483648, %v7320_v28 }
 0x3a2   : > { %v3184_v1 = vmul.f32 %v7323_v38, %v7316_v36  ;;  %5286 = vpow2.f32 %v4867_v20  ;;  %v3192_v20 = vand.u32 2147483647, %v7316_v36  ;;  %vm3189_vm3 = vweird.f32 %v7323_v38 }
 0x3a3   : > { %5288 = vrcp.f32 %v7326_v60  ;;  %v3050_v30 = vpop.f32.mrf.mxu3  ;;  %vm3203_vm4 = vweird.f32 %v7320_v28  ;;  %vm7378_vm5 = vmor %vm3188_vm1, %vm3189_vm3  ;;  %vm3218_vm7 = vweird.f32 %v7326_v60 }
 0x3a4   : > { %v3185_v3 = vsub.f32 1.0, %v3184_v1  ;;  %v3051_v29 = vadd.f32 %v3050_v30, %v3037_v5  ;;  %v8760_v1 = vld [vmem:[#allocation70_spill] sm:$0xff]  ;;  %vm7356_vm2 = vcmp.eq.f32.partialorder %v3192_v20, 8.507059e+37 }
 0x3a5   : > { %v3024_v11 = vpop.f32.mrf.mxu1  ;;  %v3038_v32 = vpop.f32.mrf.mxu2  ;;  %v8770_v61 = vunpack.c.l.bf16 %v8760_v1 }
 0x3a6   : > { %v5283_v15 = vpop.eup %5282  ;;  %v4868_v0 = vmul.f32 -1.442695, %v3051_v29  ;;  %v3025_v51 = vadd.f32 %v3024_v11, %v3011_v14  ;;  %v3186_v45 = vmul.f32 %v7323_v38, %v3185_v3  ;;  %v3039_v31 = vadd.f32 %v3038_v32, %v2936_v2 }
 0x3a7   : > { %v7334_v57 = vpop.eup %5284  ;;  %v7336_v27 = vadd.f32 1.0, %v5283_v15  ;;  %v3064_v14 = vpop.f32.mrf.mxu0  ;;  %v3194_v15 = vand.u32 2147483648, %v7316_v36 }
 0x3a8   : > { %v5287_v5 = vpop.eup %5286  ;;  %v3199_v47 = vmul.f32 %v7334_v57, %v7320_v28  ;;  %5290 = vpow2.f32 %v4868_v0  ;;  %v4869_v30 = vmul.f32 -1.442695, %v3025_v51  ;;  %v3224_v51 = vand.u32 2147483648, %v7326_v60 }
 0x3a9   : > { %v7344_v29 = vpop.eup %5288  ;;  %5292 = vrcp.f32 %v7336_v27  ;;  %v7347_v11 = vadd.f32 1.0, %v5287_v5  ;;  %v3187_v42 = vadd.f32 %v7323_v38, %v3186_v45  ;;  %v3065_v32 = vadd.f32 %v3064_v14, %v2929_v12 }
 0x3aa   : > { %v3214_v25 = vmul.f32 %v7344_v29, %v7326_v60  ;;  %5294 = vpow2.f32 %v4869_v30  ;;  %v3200_v49 = vsub.f32 1.0, %v3199_v47  ;;  %v3195_v2 = vor.u32 1.1754944e-38, %v3194_v15 }
 0x3ab   : > { %5296 = vrcp.f32 %v7347_v11  ;;  %v3052_v3 = vpop.f32.mrf.mxu3  ;;  %v3207_v30 = vand.u32 2147483647, %v7320_v28  ;;  %v7366_v5 = vor.u32 1.1754944e-38, %v3209_v58  ;;  %vm3204_vm6 = vweird.f32 %v7334_v57 }
 0x3ac   : > { %v3053_v43 = vadd.f32 %v3052_v3, %v3039_v31  ;;  %v3215_v52 = vsub.f32 1.0, %v3214_v25  ;;  %v7368_v31 = vor.u32 1.1754944e-38, %v3224_v51  ;;  %vm3219_vm8 = vweird.f32 %v7344_v29  ;;  %vm7425_vm14 = vmor %vm3203_vm4, %vm3204_vm6 }
 0x3ad   : > { %v3078_v7 = vpop.f32.mrf.mxu1  ;;  %v3092_v39 = vpop.f32.mrf.mxu2  ;;  %v3270_v58 = vand.u32 2147483648, %v7347_v11  ;;  %v3268_v51 = vand.u32 2147483647, %v7347_v11  ;;  %vm3264_vm9 = vweird.f32 %v7347_v11  ;;  %vm7398_vm10 = vcmp.eq.f32.partialorder %v3207_v30, 8.507059e+37  ;;  %vm7438_vm15 = vmor %vm3218_vm7, %vm3219_vm8 }
 0x3ae   : > { %v5291_v10 = vpop.eup %5290  ;;  %v4870_v20 = vmul.f32 -1.442695, %v3053_v43  ;;  %v3079_v12 = vadd.f32 %v3078_v7, %v3065_v32  ;;  %v3191_v7 = vsel %vm7378_vm5, %v7323_v38, %v3187_v42  ;;  %v8767_v25 = vunpack.c.h.bf16 %v8759_v18 }
 0x3af   : > { %v7370_v47 = vpop.eup %5292  ;;  %v7372_v45 = vadd.f32 1.0, %v5291_v10  ;;  %v3201_v10 = vmul.f32 %v7334_v57, %v3200_v49  ;;  %v3066_v32 = vpop.f32.mrf.mxu0  ;;  %v3216_v49 = vmul.f32 %v7344_v29, %v3215_v52  ;;  %v3271_v6 = vor.u32 1.1754944e-38, %v3270_v58 }
 0x3b0   : > { %v5295_v43 = vpop.eup %5294  ;;  %5298 = vpow2.f32 %v4870_v20  ;;  %v3229_v14 = vmul.f32 %v7370_v47, %v7336_v27  ;;  %v3196_v20 = vsel %vm7356_vm2, %v3195_v2, %v3191_v7  ;;  %v3237_v50 = vand.u32 2147483647, %v7336_v27 }
 0x3b1   : > { %v5297_v36 = vpop.eup %5296  ;;  %5300 = vrcp.f32 %v7372_v45  ;;  %v7393_v15 = vadd.f32 1.0, %v5295_v43  ;;  %v3285_v38 = vand.u32 2147483648, %v7372_v45  ;;  %v3093_v43 = vadd.f32 %v3092_v39, %v8767_v25 }
 0x3b2   : > { %v3260_v3 = vmul.f32 %v5297_v36, %v7347_v11  ;;  %5302 = vtanh.f32 %v3079_v12  ;;  %v3202_v30 = vadd.f32 %v7334_v57, %v3201_v10  ;;  %v3230_v17 = vsub.f32 1.0, %v3229_v14 }
 0x3b3   : > { %5304 = vrcp.f32 %v7393_v15  ;;  %v3106_v12 = vpop.f32.mrf.mxu3  ;;  %vm7411_vm11 = vcmp.eq.f32.partialorder %v3268_v51, 8.507059e+37  ;;  %v3067_v16 = vadd.f32 %v3066_v32, %v8770_v61  ;;  %vm3265_vm12 = vweird.f32 %v5297_v36 }
 0x3b4   : > { %v3261_v40 = vsub.f32 1.0, %v3260_v3  ;;  %v3107_v0 = vadd.f32 %v3106_v12, %v3093_v43  ;;  %vm3279_vm13 = vweird.f32 %v7372_v45  ;;  %v3217_v18 = vadd.f32 %v7344_v29, %v3216_v49  ;;  %vm3266_vm2 = vmor %vm3264_vm9, %vm3265_vm12 }
 0x3b5   : > { %v3080_v39 = vpop.f32.mrf.mxu1  ;;  %v3286_v10 = vor.u32 1.1754944e-38, %v3285_v38  ;;  %v3300_v32 = vand.u32 2147483648, %v7393_v15  ;;  %v3206_v38 = vsel %vm7425_vm14, %v7334_v57, %v3202_v30  ;;  %v3094_v43 = vpop.f32.mrf.mxu2  ;;  %vm3233_vm1 = vweird.f32 %v7336_v27 }
 0x3b6   : > { %v5299_v2 = vpop.eup %5298  ;;  %v3262_v7 = vmul.f32 %v5297_v36, %v3261_v40  ;;  %5306 = vtanh.f32 %v3107_v0  ;;  %v3081_v61 = vadd.f32 %v3080_v39, %v3067_v16  ;;  %v8775_v16 = vand.u32 2147483647, %v7326_v60 }
 0x3b7   : > { %v5301_v58 = vpop.eup %5300  ;;  %v7419_v3 = vadd.f32 1.0, %v5299_v2  ;;  %v3283_v30 = vand.u32 2147483647, %v7372_v45  ;;  %v3231_v0 = vmul.f32 %v7370_v47, %v3230_v17  ;;  %v3221_v39 = vsel %vm7438_vm15, %v7344_v29, %v3217_v18 }
 0x3b8   : > { %v5303_v40 = vpop.eup %5302  ;;  %v3275_v51 = vmul.f32 %v5301_v58, %v7372_v45  ;;  %v3263_v49 = vadd.f32 %v5297_v36, %v3262_v7  ;;  %vm7444_vm0 = vcmp.eq.f32.partialorder %v8775_v16, 8.507059e+37  ;;  %v3211_v11 = vsel %vm7398_vm10, %v7366_v5, %v3206_v38 }
 0x3b9   : > { %v5305_v12 = vpop.eup %5304  ;;  %5308 = vrcp.f32 %v7419_v3  ;;  %v3403_v57 = vmul.f32 %v5303_v40, %v3196_v20  ;;  %v8778_v20 = vunpack.c.h.bf16 %v8760_v1  ;;  %vm3280_vm3 = vweird.f32 %v5301_v58 }
 0x3ba   : > { %v3276_v60 = vsub.f32 1.0, %v3275_v51  ;;  %v3290_v2 = vmul.f32 %v5305_v12, %v7393_v15  ;;  %v3267_v7 = vsel %vm3266_vm2, %v5297_v36, %v3263_v49  ;;  %5310 = vtanh.f32 %v3081_v61  ;;  %vm3281_vm6 = vmor %vm3279_vm13, %vm3280_vm3 }
 0x3bb   : > { %v3272_v14 = vsel %vm7411_vm11, %v3271_v6, %v3267_v7  ;;  %v3095_v40 = vadd.f32 %v3094_v43, %v8778_v20  ;;  %v3108_v49 = vpop.f32.mrf.mxu3  ;;  %vm7467_vm4 = vcmp.eq.f32.partialorder %v3237_v50, 8.507059e+37  ;;  %v3298_v6 = vand.u32 2147483647, %v7393_v15 }
 0x3bc   : > { %v3277_v17 = vmul.f32 %v5301_v58, %v3276_v60  ;;  %v3291_v51 = vsub.f32 1.0, %v3290_v2  ;;  %v3399_v36 = vmul.f32 %v3272_v14, %v7090_v8  ;;  %v5307_v29 = vpop.eup %5306  ;;  %v3232_v5 = vadd.f32 %v7370_v47, %v3231_v0 }
 0x3bd   : > { %v3109_v52 = vadd.f32 %v3108_v49, %v3095_v40  ;;  %vm3234_vm5 = vweird.f32 %v7370_v47  ;;  %v3404_v61 = vmul.f32 %v5307_v29, %v3211_v11  ;;  %vm3294_vm7 = vweird.f32 %v7393_v15 }
 0x3be   : > { %v3292_v1 = vmul.f32 %v5305_v12, %v3291_v51  ;;  %v7474_v42 = vadd.f32 %v3403_v57, %v3399_v36  ;;  %v3278_v18 = vadd.f32 %v5301_v58, %v3277_v17  ;;  %vm3295_vm8 = vweird.f32 %v5305_v12  ;;  %vm7489_vm11 = vmor %vm3233_vm1, %vm3234_vm5  ;;  %v8783_v36 = vld [vmem:[#allocation69_spill] sm:$0xff] }
 0x3bf   : > { %v5309_v38 = vpop.eup %5308  ;;  %v3239_v8 = vand.u32 2147483648, %v7336_v27  ;;  %5312 = vtanh.f32 %v3109_v52  ;;  %v3301_v50 = vor.u32 1.1754944e-38, %v3300_v32  ;;  %vm3284_vm9 = vcmp.eq.f32.partialorder %v3283_v30, 8.507059e+37  ;;  %vm3296_vm12 = vmor %vm3294_vm7, %vm3295_vm8 }
 0x3c0   : > { %v3305_v16 = vmul.f32 %v5309_v38, %v7419_v3  ;;  %v3282_v43 = vsel %vm3281_vm6, %v5301_v58, %v3278_v18  ;;  %v5311_v57 = vpop.eup %5310  ;;  %v3226_v60 = vsel %vm7444_vm0, %v7368_v31, %v3221_v39  ;;  %v3293_v2 = vadd.f32 %v5305_v12, %v3292_v1 }
 0x3c1   : > { %v3287_v0 = vsel %vm3284_vm9, %v3286_v10, %v3282_v43  ;;  %vm3299_vm10 = vcmp.eq.f32.partialorder %v3298_v6, 8.507059e+37  ;;  %v3405_v32 = vmul.f32 %v5311_v57, %v3226_v60  ;;  %v3236_v10 = vsel %vm7489_vm11, %v7370_v47, %v3232_v5 }
 0x3c2   : > { %v3306_v15 = vsub.f32 1.0, %v3305_v16  ;;  %v3400_v58 = vmul.f32 %v3287_v0, %v7115_v9  ;;  %v3315_v31 = vand.u32 2147483648, %v7419_v3  ;;  %v3297_v25 = vsel %vm3296_vm12, %v5305_v12, %v3293_v2  ;;  %v8784_v16 = vld [vmem:[#allocation71_spill] sm:$0xff] }
 0x3c3   : > { %v3240_v30 = vor.u32 1.1754944e-38, %v3239_v8  ;;  %v3313_v7 = vand.u32 2147483647, %v7419_v3  ;;  %vm3310_vm13 = vweird.f32 %v5309_v38  ;;  %v3302_v14 = vsel %vm3299_vm10, %v3301_v50, %v3297_v25 }
 0x3c4   : > { %v3307_v27 = vmul.f32 %v5309_v38, %v3306_v15  ;;  %v7499_v39 = vadd.f32 %v3404_v61, %v3400_v58  ;;  %v3401_v9 = vmul.f32 %v3302_v14, %v7119_v46  ;;  %vm3309_vm14 = vweird.f32 %v7419_v3 }
 0x3c5   : > { %v5313_v20 = vpop.eup %5312  ;;  %v3241_v40 = vsel %vm7467_vm4, %v3240_v30, %v3236_v10  ;;  %vm3311_vm15 = vmor %vm3309_vm14, %vm3310_vm13  ;;  %v3316_v12 = vor.u32 1.1754944e-38, %v3315_v31  ;;  %v2931_v49 = vunpack.c.l.bf16 %v8783_v36  ;;  %vm3314_vm0 = vcmp.eq.f32.partialorder %v3313_v7, 8.507059e+37 }
 0x3c6   : > { %v3308_v47 = vadd.f32 %v5309_v38, %v3307_v27  ;;  %v3406_v17 = vmul.f32 %v5313_v20, %v3241_v40  ;;  %v7505_v51 = vadd.f32 %v3405_v32, %v3401_v9  ;;  %v2932_v61 = vunpack.c.h.bf16 %v8783_v36 }
 0x3c7   : > { %v3120_v11 = vpop.f32.mrf.mxu0  ;;  %v2939_v43 = vunpack.c.l.bf16 %v8784_v16  ;;  %v2940_v32 = vunpack.c.h.bf16 %v8784_v16 }
 0x3c8   : > { %v3312_v29 = vsel %vm3311_vm15, %v5309_v38, %v3308_v47  ;;  %v3121_v52 = vadd.f32 %v3120_v11, %v2931_v49 }
 0x3c9   : > { %v3317_v6 = vsel %vm3314_vm0, %v3316_v12, %v3312_v29 }
 0x3ca   : > { %v3402_v5 = vmul.f32 %v3317_v6, %v7123_v63 }
 0x3cc   : > { %v7509_v18 = vadd.f32 %v3406_v17, %v3402_v5 }
 0x3cd   : > { %v3134_v46 = vpop.f32.mrf.mxu1  ;;  %v3148_v1 = vpop.f32.mrf.mxu2 }
 0x3ce   : > { %v3135_v28 = vadd.f32 %v3134_v46, %v3121_v52  ;;  %v3149_v50 = vadd.f32 %v3148_v1, %v2932_v61 }
 0x3cf   : > { %v3122_v8 = vpop.f32.mrf.mxu0 }
 0x3d0   : > { %v4871_v3 = vmul.f32 -1.442695, %v3135_v28  ;;  %v3123_v38 = vadd.f32 %v3122_v8, %v2939_v43 }
 0x3d2   : > { %5314 = vpow2.f32 %v4871_v3 }
 0x3d3   : > { %v3162_v57 = vpop.f32.mrf.mxu3 }
 0x3d4   : > { %v3163_v0 = vadd.f32 %v3162_v57, %v3149_v50  ;;  %v8813_v50 = vld [vmem:[#allocation161_spill] sm:$0xff] }
 0x3d5   : > { %v3136_v60 = vpop.f32.mrf.mxu1  ;;  %v3150_v63 = vpop.f32.mrf.mxu2 }
 0x3d6   : > { %v4872_v2 = vmul.f32 -1.442695, %v3163_v0  ;;  %v3137_v45 = vadd.f32 %v3136_v60, %v3123_v38  ;;  %v3151_v31 = vadd.f32 %v3150_v63, %v2940_v32 }
 0x3d8   : > { %v5315_v15 = vpop.eup %5314  ;;  %5316 = vpow2.f32 %v4872_v2  ;;  %v4873_v58 = vmul.f32 -1.442695, %v3137_v45 }
 0x3d9   : > { %v3335_v10 = vadd.f32 1.0, %v5315_v15 }
 0x3da   : > { %5318 = vpow2.f32 %v4873_v58 }
 0x3db   : > { %5320 = vrcp.f32 %v3335_v10  ;;  %v3164_v25 = vpop.f32.mrf.mxu3  ;;  %v3348_v52 = vand.u32 2147483647, %v3335_v10  ;;  %v3350_v28 = vand.u32 2147483648, %v3335_v10  ;;  %vm3344_vm2 = vweird.f32 %v3335_v10 }
 0x3dc   : > { %v3165_v30 = vadd.f32 %v3164_v25, %v3151_v31 }
 0x3dd   : > { %vm7529_vm4 = vcmp.eq.f32.partialorder %v3348_v52, 8.507059e+37  ;;  %v3351_v60 = vor.u32 1.1754944e-38, %v3350_v28 }
 0x3de   : > { %v5317_v7 = vpop.eup %5316  ;;  %v4874_v27 = vmul.f32 -1.442695, %v3165_v30 }
 0x3df   : > { %v7514_v14 = vadd.f32 1.0, %v5317_v7 }
 0x3e0   : > { %v5319_v11 = vpop.eup %5318  ;;  %5322 = vpow2.f32 %v4874_v27  ;;  %v8831_v27 = vld [vmem:[#allocation178_spill] sm:$0xff] }
 0x3e1   : > { %v5321_v20 = vpop.eup %5320  ;;  %5324 = vrcp.f32 %v7514_v14  ;;  %v3337_v40 = vadd.f32 1.0, %v5319_v11  ;;  %vm3359_vm7 = vweird.f32 %v7514_v14  ;;  %v3365_v15 = vand.u32 2147483648, %v7514_v14 }
 0x3e2   : > { %v3340_v9 = vmul.f32 %v5321_v20, %v3335_v10  ;;  %vm3345_vm1 = vweird.f32 %v5321_v20  ;;  %v3363_v31 = vand.u32 2147483647, %v7514_v14 }
 0x3e3   : > { %5326 = vrcp.f32 %v3337_v40  ;;  %vm7525_vm3 = vmor %vm3344_vm2, %vm3345_vm1  ;;  %v3380_v16 = vand.u32 2147483648, %v3337_v40  ;;  %v3378_v0 = vand.u32 2147483647, %v3337_v40  ;;  %vm3374_vm8 = vweird.f32 %v3337_v40 }
 0x3e4   : > { %v3341_v47 = vsub.f32 1.0, %v3340_v9  ;;  %vm3364_vm13 = vcmp.eq.f32.partialorder %v3363_v31, 8.507059e+37  ;;  %v8827_v31 = vld [vmem:[#allocation172_spill] sm:$0xff] }
 0x3e5   : > { %v3381_v25 = vor.u32 1.1754944e-38, %v3380_v16  ;;  %vm3379_vm11 = vcmp.eq.f32.partialorder %v3378_v0, 8.507059e+37  ;;  %v8814_v16 = vld [vmem:[#allocation156_spill] sm:$0xff] }
 0x3e6   : > { %v5323_v17 = vpop.eup %5322  ;;  %v3342_v36 = vmul.f32 %v5321_v20, %v3341_v47  ;;  %v8818_v0 = vld [vmem:[#allocation160_spill] sm:$0xff] }
 0x3e7   : > { %v5325_v12 = vpop.eup %5324  ;;  %v7517_v49 = vadd.f32 1.0, %v5323_v17 }
 0x3e8   : > { %v3355_v29 = vmul.f32 %v5325_v12, %v7514_v14  ;;  %v3343_v46 = vadd.f32 %v5321_v20, %v3342_v36  ;;  %vm3360_vm6 = vweird.f32 %v5325_v12 }
 0x3e9   : > { %5328 = vrcp.f32 %v7517_v49  ;;  %v5327_v6 = vpop.eup %5326  ;;  %vm7541_vm10 = vmor %vm3359_vm7, %vm3360_vm6  ;;  %v3395_v9 = vand.u32 2147483648, %v7517_v49  ;;  %vm3389_vm14 = vweird.f32 %v7517_v49 }
 0x3ea   : > { %v3356_v5 = vsub.f32 1.0, %v3355_v29  ;;  %5330 = vtanh.f32 %v7474_v42  ;;  %v3370_v1 = vmul.f32 %v5327_v6, %v3337_v40  ;;  %v3347_v57 = vsel %vm7525_vm3, %v5321_v20, %v3343_v46 }
 0x3eb   : > { %5332 = vtanh.f32 %v7499_v39  ;;  %vm3375_vm5 = vweird.f32 %v5327_v6  ;;  %v3352_v10 = vsel %vm7529_vm4, %v3351_v60, %v3347_v57  ;;  %v3393_v20 = vand.u32 2147483647, %v7517_v49  ;;  %v8816_v57 = vld [vmem:[#allocation165_spill] sm:$0xff]  ;;  %v8819_v60 = vld [vmem:[#allocation162_spill] sm:$0xff] }
 0x3ec   : > { %v3357_v3 = vmul.f32 %v5325_v12, %v3356_v5  ;;  %5334 = vtanh.f32 %v7505_v51  ;;  %v3371_v61 = vsub.f32 1.0, %v3370_v1  ;;  %vm3376_vm9 = vmor %vm3374_vm8, %vm3375_vm5  ;;  %v3366_v29 = vor.u32 1.1754944e-38, %v3365_v15  ;;  %v8823_v15 = vld [vmem:[#allocation168_spill] sm:$0xff] }
 0x3ed   : > { %5336 = vtanh.f32 %v7509_v18  ;;  %v3396_v1 = vor.u32 1.1754944e-38, %v3395_v9  ;;  %vm3394_vm0 = vcmp.eq.f32.partialorder %v3393_v20, 8.507059e+37  ;;  %v8833_v20 = vld [vmem:[#allocation182_spill] sm:$0xff] }
 0x3ee   : > { %v3372_v38 = vmul.f32 %v5327_v6, %v3371_v61  ;;  %v3358_v2 = vadd.f32 %v5325_v12, %v3357_v3 }
 0x3ef   : > { %v5329_v43 = vpop.eup %5328 }
 0x3f0   : > { %v3385_v45 = vmul.f32 %v5329_v43, %v7517_v49  ;;  %v5331_v63 = vpop.eup %5330  ;;  %v3373_v58 = vadd.f32 %v5327_v6, %v3372_v38  ;;  %v3362_v47 = vsel %vm7541_vm10, %v5325_v12, %v3358_v2  ;;  %vm3390_vm12 = vweird.f32 %v5329_v43  ;;  %v8812_v49 = vld [vmem:[#allocation159_spill] sm:$0xff]  ;;  %v8820_v2 = vld [vmem:[#allocation169_spill] sm:$0xff] }
 0x3f1   : > { %v5333_v32 = vpop.eup %5332  ;;  %v3415_v36 = vmul.f32 %v5331_v63, %v3352_v10  ;;  %vm3391_vm15 = vmor %vm3389_vm14, %vm3390_vm12  ;;  %v8817_v38 = vld [vmem:[#allocation167_spill] sm:$0xff]  ;;  %v8822_v63 = vld [vmem:[#allocation166_spill] sm:$0xff] }
 0x3f2   : > { %v3386_v30 = vsub.f32 1.0, %v3385_v45  ;;  %v5335_v7 = vpop.eup %5334  ;;  %v3377_v11 = vsel %vm3376_vm9, %v5327_v6, %v3373_v58  ;;  %v3367_v6 = vsel %vm3364_vm13, %v3366_v29, %v3362_v47  ;;  %v8821_v45 = vld [vmem:[#allocation171_spill] sm:$0xff]  ;;  %v8826_v10 = vld [vmem:[#allocation170_spill] sm:$0xff] }
 0x3f3   : > { %v5337_v40 = vpop.eup %5336  ;;  %v3382_v17 = vsel %vm3379_vm11, %v3381_v25, %v3377_v11  ;;  %v3416_v12 = vmul.f32 %v5333_v32, %v3367_v6  ;;  %v8824_v58 = vld [vmem:[#allocation175_spill] sm:$0xff]  ;;  %v8825_v32 = vld [vmem:[#allocation177_spill] sm:$0xff]  ;;  %v8832_v11 = vld [vmem:[#allocation180_spill] sm:$0xff] }
 0x3f4   : > { %v3387_v14 = vmul.f32 %v5329_v43, %v3386_v30  ;;  %v3417_v52 = vmul.f32 %v5335_v7, %v3382_v17  ;;  %v8828_v25 = vld [vmem:[#allocation179_spill] sm:$0xff]  ;;  %v8829_v30 = vld [vmem:[#allocation181_spill] sm:$0xff]  ;;  %v8830_v7 = vld [vmem:[#allocation176_spill] sm:$0xff] }
 0x3f6   : > { %v3388_v5 = vadd.f32 %v5329_v43, %v3387_v14  ;;  %v7550_v46 = vpack.c.bf16 %v3417_v52, %v3415_v36 }
 0x3f8   : > { %v3392_v28 = vsel %vm3391_vm15, %v5329_v43, %v3388_v5  ;;  %3456 = vmatmul.bf16.vlgmr.msra.gmra.mxu0 %v7550_v46  ;;  %3484 = vmatmul.bf16.vlgmr.msra.gmra.mxu2 %v7550_v46  ;;  %v8815_v43 = vld [vmem:[#allocation158_spill] sm:$0xff] }
 0x3f9   : > { %v3397_v3 = vsel %vm3394_vm0, %v3396_v1, %v3392_v28  ;;  %3560 = vmatpush.bf16.msra.mxu0 %v8511_v59  ;;  %3588 = vmatpush.bf16.msra.mxu2 %v8512_v24  ;;  %v8791_v59 = vld [vmem:[#allocation129_spill] sm:$0xff]  ;;  %v8792_v24 = vld [vmem:[#allocation135_spill] sm:$0xff]  ;;  %v8835_v1 = vld [vmem:[#allocation184_spill] sm:$0xff] }
 0x3fa   : > { %v3418_v61 = vmul.f32 %v5337_v40, %v3397_v3  ;;  %v8834_v40 = vld [vmem:[#allocation174_spill] sm:$0xff]  ;;  %v3438_v28 = vunpack.c.l.bf16 %v8835_v1 }
 0x3fb   : > { %v3430_v47 = vunpack.c.l.bf16 %v8834_v40  ;;  %v3431_v6 = vunpack.c.h.bf16 %v8834_v40 }
 0x3fc   : > { %v7556_v8 = vpack.c.bf16 %v3418_v61, %v3416_v12 }
 0x3fd   : > { %3561 = vmatpush.bf16.msra.mxu0 %v8513_v41  ;;  %3589 = vmatpush.bf16.msra.mxu2 %v8514_v34  ;;  %v8793_v41 = vld [vmem:[#allocation137_spill] sm:$0xff]  ;;  %v8794_v34 = vld [vmem:[#allocation131_spill] sm:$0xff] }
 0x3fe   : > { %3470 = vmatmul.bf16.vlgmr.msra.gmra.mxu1 %v7556_v8  ;;  %3498 = vmatmul.bf16.vlgmr.msra.gmra.mxu3 %v7556_v8 }
 0x3ff   : > { %3574 = vmatpush.bf16.msra.mxu1 %v8517_v54  ;;  %3602 = vmatpush.bf16.msra.mxu3 %v8518_v56  ;;  %v8797_v54 = vld [vmem:[#allocation142_spill] sm:$0xff]  ;;  %v8798_v56 = vld [vmem:[#allocation145_spill] sm:$0xff] }
 0x401   : > { %3562 = vmatpush.bf16.msra.mxu0 %v8515_v21  ;;  %3590 = vmatpush.bf16.msra.mxu2 %v8516_v44  ;;  %v8795_v21 = vld [vmem:[#allocation134_spill] sm:$0xff]  ;;  %v8796_v44 = vld [vmem:[#allocation139_spill] sm:$0xff] }
 0x403   : > { %3575 = vmatpush.bf16.msra.mxu1 %v8521_v48  ;;  %3603 = vmatpush.bf16.msra.mxu3 %v8522_v62  ;;  %v8801_v48 = vld [vmem:[#allocation138_spill] sm:$0xff]  ;;  %v8802_v62 = vld [vmem:[#allocation149_spill] sm:$0xff] }
 0x405   : > { %3563 = vmatpush.bf16.msra.mxu0 %v8519_v13  ;;  %3591 = vmatpush.bf16.msra.mxu2 %v8520_v33  ;;  %v8799_v13 = vld [vmem:[#allocation147_spill] sm:$0xff]  ;;  %v8800_v33 = vld [vmem:[#allocation136_spill] sm:$0xff] }
 0x407   : > { %3576 = vmatpush.bf16.msra.mxu1 %v8525_v22  ;;  %3604 = vmatpush.bf16.msra.mxu3 %v8526_v23  ;;  %v8805_v22 = vld [vmem:[#allocation144_spill] sm:$0xff]  ;;  %v8806_v23 = vld [vmem:[#allocation146_spill] sm:$0xff] }
 0x408   : > { %3512 = vmatmul.bf16.vlgmr.msrb.gmra.mxu0 %v7550_v46  ;;  %3540 = vmatmul.bf16.vlgmr.msrb.gmra.mxu2 %v7550_v46 }
 0x409   : > { %3564 = vmatpush.bf16.msra.mxu0 %v8523_v4  ;;  %3592 = vmatpush.bf16.msra.mxu2 %v8524_v55  ;;  %v8803_v4 = vld [vmem:[#allocation151_spill] sm:$0xff]  ;;  %v8804_v55 = vld [vmem:[#allocation141_spill] sm:$0xff] }
 0x40b   : > { %3577 = vmatpush.bf16.msra.mxu1 %v8529_v53  ;;  %3605 = vmatpush.bf16.msra.mxu3 %v8530_v26  ;;  %v8809_v53 = vld [vmem:[#allocation157_spill] sm:$0xff]  ;;  %v8810_v26 = vld [vmem:[#allocation150_spill] sm:$0xff] }
 0x40d   : > { %3565 = vmatpush.bf16.msra.mxu0 %v8527_v19  ;;  %3593 = vmatpush.bf16.msra.mxu2 %v8528_v37  ;;  %v8807_v19 = vld [vmem:[#allocation148_spill] sm:$0xff]  ;;  %v8808_v37 = vld [vmem:[#allocation155_spill] sm:$0xff] }
 0x40e   : > { %3526 = vmatmul.bf16.vlgmr.msrb.gmra.mxu1 %v7556_v8  ;;  %3554 = vmatmul.bf16.vlgmr.msrb.gmra.mxu3 %v7556_v8 }
 0x40f   : > { %3578 = vmatpush.bf16.msra.mxu1 %v8532_v35  ;;  %3606 = vmatpush.bf16.msra.mxu3 %v8791_v59  ;;  %v8811_v35 = vld [vmem:[#allocation152_spill] sm:$0xff] }
 0x411   : > { %3566 = vmatpush.bf16.msra.mxu0 %v8792_v24  ;;  %3594 = vmatpush.bf16.msra.mxu2 %v8793_v41 }
 0x413   : > { %3579 = vmatpush.bf16.msra.mxu1 %v8794_v34  ;;  %3607 = vmatpush.bf16.msra.mxu3 %v8795_v21 }
 0x415   : > { %3567 = vmatpush.bf16.msra.mxu0 %v8796_v44  ;;  %3595 = vmatpush.bf16.msra.mxu2 %v8797_v54  ;;  %v3439_v54 = vunpack.c.h.bf16 %v8835_v1 }
 0x417   : > { %3580 = vmatpush.bf16.msra.mxu1 %v8800_v33  ;;  %3608 = vmatpush.bf16.msra.mxu3 %v8801_v48  ;;  %v8836_v33 = vld [vmem:[#allocation183_spill] sm:$0xff] }
 0x418   : > { %3568 = vmatmul.bf16.vlgmr.msra.gmra.mxu0 %v7550_v46  ;;  %3596 = vmatmul.bf16.vlgmr.msra.gmra.mxu2 %v7550_v46  ;;  %v3432_v48 = vunpack.c.l.bf16 %v8836_v33 }
 0x419   : > { %3616 = vmatpush.bf16.msrb.mxu0 %v8798_v56  ;;  %3644 = vmatpush.bf16.msrb.mxu2 %v8799_v13 }
 0x41b   : > { %3581 = vmatpush.bf16.msra.mxu1 %v8804_v55  ;;  %3609 = vmatpush.bf16.msra.mxu3 %v8805_v22 }
 0x41d   : > { %3617 = vmatpush.bf16.msrb.mxu0 %v8802_v62  ;;  %3645 = vmatpush.bf16.msrb.mxu2 %v8803_v4 }
 0x41e   : > { %3582 = vmatmul.bf16.vlgmr.msra.gmra.mxu1 %v7556_v8  ;;  %3610 = vmatmul.bf16.vlgmr.msra.gmra.mxu3 %v7556_v8 }
 0x41f   : > { %3630 = vmatpush.bf16.msrb.mxu1 %v8806_v23  ;;  %3658 = vmatpush.bf16.msrb.mxu3 %v8807_v19 }
 0x421   : > { %3618 = vmatpush.bf16.msrb.mxu0 %v8808_v37  ;;  %3646 = vmatpush.bf16.msrb.mxu2 %v8809_v53 }
 0x423   : > { %3631 = vmatpush.bf16.msrb.mxu1 %v8810_v26  ;;  %3659 = vmatpush.bf16.msrb.mxu3 %v8811_v35 }
 0x425   : > { %3619 = vmatpush.bf16.msrb.mxu0 %v8812_v49  ;;  %3647 = vmatpush.bf16.msrb.mxu2 %v8813_v50 }
 0x427   : > { %3632 = vmatpush.bf16.msrb.mxu1 %v8814_v16  ;;  %3660 = vmatpush.bf16.msrb.mxu3 %v8815_v43  ;;  %v3433_v16 = vunpack.c.h.bf16 %v8836_v33 }
 0x429   : > { %3620 = vmatpush.bf16.msrb.mxu0 %v8816_v57  ;;  %3648 = vmatpush.bf16.msrb.mxu2 %v8817_v38 }
 0x42b   : > { %3633 = vmatpush.bf16.msrb.mxu1 %v8818_v0  ;;  %3661 = vmatpush.bf16.msrb.mxu3 %v8819_v60  ;;  %v8837_v60 = vld [vmem:[#allocation185_spill] sm:$0xff] }
 0x42d   : > { %3621 = vmatpush.bf16.msrb.mxu0 %v8820_v2  ;;  %3649 = vmatpush.bf16.msrb.mxu2 %v8821_v45  ;;  %v3440_v2 = vunpack.c.l.bf16 %v8837_v60 }
 0x42f   : > { %3634 = vmatpush.bf16.msrb.mxu1 %v8822_v63  ;;  %3662 = vmatpush.bf16.msrb.mxu3 %v8823_v15 }
 0x431   : > { %3622 = vmatpush.bf16.msrb.mxu0 %v8824_v58  ;;  %3650 = vmatpush.bf16.msrb.mxu2 %v8825_v32 }
 0x433   : > { %3635 = vmatpush.bf16.msrb.mxu1 %v8826_v10  ;;  %3663 = vmatpush.bf16.msrb.mxu3 %v8827_v31 }
 0x435   : > { %3623 = vmatpush.bf16.msrb.mxu0 %v8828_v25  ;;  %3651 = vmatpush.bf16.msrb.mxu2 %v8829_v30 }
 0x437   : > { %3636 = vmatpush.bf16.msrb.mxu1 %v8830_v7  ;;  %3664 = vmatpush.bf16.msrb.mxu3 %v8831_v27  ;;  %v3441_v7 = vunpack.c.h.bf16 %v8837_v60  ;;  %v8838_v27 = vld [vmem:[#allocation79_spill] sm:$0xff] }
 0x438   : > { %3624 = vmatmul.bf16.vlgmr.msrb.gmra.mxu0 %v7550_v46  ;;  %3652 = vmatmul.bf16.vlgmr.msrb.gmra.mxu2 %v7550_v46 }
 0x43b   : > { %3637 = vmatpush.bf16.msrb.mxu1 %v8832_v11  ;;  %3665 = vmatpush.bf16.msrb.mxu3 %v8833_v20  ;;  %v3434_v11 = vunpack.c.l.bf16 %v8838_v27 }
 0x43e   : > { %3638 = vmatmul.bf16.vlgmr.msrb.gmra.mxu1 %v7556_v8  ;;  %3666 = vmatmul.bf16.vlgmr.msrb.gmra.mxu3 %v7556_v8 }
 0x475   : > { %v3457_v9 = vpop.f32.mrf.mxu0 }
 0x476   : > { %v3458_v17 = vadd.f32 %v3457_v9, %v3430_v47  ;;  %v3435_v47 = vunpack.c.h.bf16 %v8838_v27 }
 0x47b   : > { %v3471_v14 = vpop.f32.mrf.mxu1  ;;  %v3485_v36 = vpop.f32.mrf.mxu2 }
 0x47c   : > { %v3472_v29 = vadd.f32 %v3471_v14, %v3458_v17  ;;  %v3486_v46 = vadd.f32 %v3485_v36, %v3431_v6  ;;  %v8839_v17 = vld [vmem:[#allocation82_spill] sm:$0xff] }
 0x47d   : > { %v3459_v52 = vpop.f32.mrf.mxu0  ;;  %v3442_v14 = vunpack.c.l.bf16 %v8839_v17 }
 0x47e   : > { %v4875_v5 = vmul.f32 -1.442695, %v3472_v29  ;;  %v3460_v12 = vadd.f32 %v3459_v52, %v3438_v28 }
 0x480   : > { %5338 = vpow2.f32 %v4875_v5 }
 0x481   : > { %v3499_v3 = vpop.f32.mrf.mxu3 }
 0x482   : > { %v3500_v61 = vadd.f32 %v3499_v3, %v3486_v46 }
 0x483   : > { %v3473_v59 = vpop.f32.mrf.mxu1  ;;  %v3487_v8 = vpop.f32.mrf.mxu2 }
 0x484   : > { %v4876_v24 = vmul.f32 -1.442695, %v3500_v61  ;;  %v3474_v41 = vadd.f32 %v3473_v59, %v3460_v12  ;;  %v3488_v13 = vadd.f32 %v3487_v8, %v3439_v54 }
 0x485   : > { %v3513_v34 = vpop.f32.mrf.mxu0 }
 0x486   : > { %v5339_v21 = vpop.eup %5338  ;;  %5340 = vpow2.f32 %v4876_v24  ;;  %v4877_v44 = vmul.f32 -1.442695, %v3474_v41  ;;  %v3514_v4 = vadd.f32 %v3513_v34, %v3432_v48  ;;  %v3443_v41 = vunpack.c.h.bf16 %v8839_v17 }
 0x487   : > { %v7638_v56 = vadd.f32 1.0, %v5339_v21 }
 0x488   : > { %5342 = vpow2.f32 %v4877_v44 }
 0x489   : > { %5344 = vrcp.f32 %v7638_v56  ;;  %v3501_v62 = vpop.f32.mrf.mxu3  ;;  %v3697_v40 = vand.u32 2147483647, %v7638_v56  ;;  %v3699_v28 = vand.u32 2147483648, %v7638_v56  ;;  %vm3693_vm1 = vweird.f32 %v7638_v56 }
 0x48a   : > { %v3502_v55 = vadd.f32 %v3501_v62, %v3488_v13 }
 0x48b   : > { %v3527_v22 = vpop.f32.mrf.mxu1  ;;  %v3541_v23 = vpop.f32.mrf.mxu2  ;;  %vm7678_vm2 = vcmp.eq.f32.partialorder %v3697_v40, 8.507059e+37  ;;  %v3700_v13 = vor.u32 1.1754944e-38, %v3699_v28 }
 0x48c   : > { %v5341_v19 = vpop.eup %5340  ;;  %v4878_v37 = vmul.f32 -1.442695, %v3502_v55  ;;  %v3528_v53 = vadd.f32 %v3527_v22, %v3514_v4  ;;  %v3542_v0 = vadd.f32 %v3541_v23, %v3433_v16 }
 0x48d   : > { %v7642_v26 = vadd.f32 1.0, %v5341_v19  ;;  %v3515_v35 = vpop.f32.mrf.mxu0 }
 0x48e   : > { %v5343_v49 = vpop.eup %5342  ;;  %5346 = vpow2.f32 %v4878_v37  ;;  %v4879_v50 = vmul.f32 -1.442695, %v3528_v53  ;;  %v3516_v15 = vadd.f32 %v3515_v35, %v3440_v2 }
 0x48f   : > { %v7645_v43 = vpop.eup %5344  ;;  %5348 = vrcp.f32 %v7642_v26  ;;  %v7648_v57 = vadd.f32 1.0, %v5343_v49  ;;  %v3714_v3 = vand.u32 2147483648, %v7642_v26  ;;  %v3712_v33 = vand.u32 2147483647, %v7642_v26 }
 0x490   : > { %v3689_v38 = vmul.f32 %v7645_v43, %v7638_v56  ;;  %5350 = vpow2.f32 %v4879_v50  ;;  %vm3694_vm3 = vweird.f32 %v7645_v43  ;;  %vm3708_vm4 = vweird.f32 %v7642_v26 }
 0x491   : > { %5352 = vrcp.f32 %v7648_v57  ;;  %v3555_v45 = vpop.f32.mrf.mxu3  ;;  %v3729_v59 = vand.u32 2147483648, %v7648_v57  ;;  %v3727_v48 = vand.u32 2147483647, %v7648_v57  ;;  %v7688_v19 = vor.u32 1.1754944e-38, %v3714_v3  ;;  %vm7700_vm5 = vmor %vm3693_vm1, %vm3694_vm3 }
 0x492   : > { %v3690_v63 = vsub.f32 1.0, %v3689_v38  ;;  %v3556_v58 = vadd.f32 %v3555_v45, %v3542_v0  ;;  %vm3723_vm7 = vweird.f32 %v7648_v57  ;;  %vm7720_vm10 = vcmp.eq.f32.partialorder %v3712_v33, 8.507059e+37 }
 0x493   : > { %v3529_v32 = vpop.f32.mrf.mxu1  ;;  %v3543_v10 = vpop.f32.mrf.mxu2  ;;  %v7690_v37 = vor.u32 1.1754944e-38, %v3729_v59  ;;  %vm7766_vm0 = vcmp.eq.f32.partialorder %v3727_v48, 8.507059e+37 }
 0x494   : > { %v5347_v31 = vpop.eup %5346  ;;  %v4880_v25 = vmul.f32 -1.442695, %v3556_v58  ;;  %v3530_v30 = vadd.f32 %v3529_v32, %v3516_v15  ;;  %v3691_v6 = vmul.f32 %v7645_v43, %v3690_v63  ;;  %v3544_v61 = vadd.f32 %v3543_v10, %v3441_v7 }
 0x495   : > { %v7656_v20 = vpop.eup %5348  ;;  %v7658_v9 = vadd.f32 1.0, %v5347_v31  ;;  %v3569_v5 = vpop.f32.mrf.mxu0 }
 0x496   : > { %v5351_v36 = vpop.eup %5350  ;;  %v3704_v29 = vmul.f32 %v7656_v20, %v7642_v26  ;;  %5354 = vpow2.f32 %v4880_v25  ;;  %v4881_v52 = vmul.f32 -1.442695, %v3530_v30  ;;  %v3692_v44 = vadd.f32 %v7645_v43, %v3691_v6 }
 0x497   : > { %v7666_v46 = vpop.eup %5352  ;;  %5356 = vrcp.f32 %v7658_v9  ;;  %v7669_v1 = vadd.f32 1.0, %v5351_v36  ;;  %v3570_v54 = vadd.f32 %v3569_v5, %v3434_v11  ;;  %vm3709_vm6 = vweird.f32 %v7656_v20 }
 0x498   : > { %v3719_v12 = vmul.f32 %v7666_v46, %v7648_v57  ;;  %5358 = vpow2.f32 %v4881_v52  ;;  %v3705_v34 = vsub.f32 1.0, %v3704_v29  ;;  %vm3724_vm8 = vweird.f32 %v7666_v46  ;;  %vm7747_vm14 = vmor %vm3708_vm4, %vm3709_vm6 }
 0x499   : > { %5360 = vrcp.f32 %v7669_v1  ;;  %v3557_v8 = vpop.f32.mrf.mxu3  ;;  %v3775_v38 = vand.u32 2147483648, %v7669_v1  ;;  %v3696_v0 = vsel %vm7700_vm5, %v7645_v43, %v3692_v44  ;;  %v3773_v63 = vand.u32 2147483647, %v7669_v1  ;;  %vm7760_vm15 = vmor %vm3723_vm7, %vm3724_vm8 }
 0x49a   : > { %v3558_v21 = vadd.f32 %v3557_v8, %v3544_v61  ;;  %v3720_v4 = vsub.f32 1.0, %v3719_v12  ;;  %v3706_v56 = vmul.f32 %v7656_v20, %v3705_v34  ;;  %vm3769_vm9 = vweird.f32 %v7669_v1 }
 0x49b   : > { %v3583_v22 = vpop.f32.mrf.mxu1  ;;  %v3597_v23 = vpop.f32.mrf.mxu2  ;;  %v3701_v31 = vsel %vm7678_vm2, %v3700_v13, %v3696_v0  ;;  %v3776_v7 = vor.u32 1.1754944e-38, %v3775_v38  ;;  %v3742_v36 = vand.u32 2147483647, %v7658_v9  ;;  %vm7733_vm11 = vcmp.eq.f32.partialorder %v3773_v63, 8.507059e+37 }
 0x49c   : > { %v5355_v62 = vpop.eup %5354  ;;  %v4882_v55 = vmul.f32 -1.442695, %v3558_v21  ;;  %v3584_v49 = vadd.f32 %v3583_v22, %v3570_v54  ;;  %v3721_v32 = vmul.f32 %v7666_v46, %v3720_v4  ;;  %v3598_v25 = vadd.f32 %v3597_v23, %v3435_v47 }
 0x49d   : > { %v7692_v53 = vpop.eup %5356  ;;  %v7694_v35 = vadd.f32 1.0, %v5355_v62  ;;  %v3571_v58 = vpop.f32.mrf.mxu0  ;;  %v3707_v40 = vadd.f32 %v7656_v20, %v3706_v56  ;;  %vm3738_vm1 = vweird.f32 %v7658_v9  ;;  %vm7789_vm4 = vcmp.eq.f32.partialorder %v3742_v36, 8.507059e+37 }
 0x49e   : > { %v5359_v16 = vpop.eup %5358  ;;  %5362 = vpow2.f32 %v4882_v55  ;;  %v3734_v2 = vmul.f32 %v7692_v53, %v7658_v9  ;;  %v3572_v5 = vadd.f32 %v3571_v58, %v3442_v14  ;;  %v3722_v47 = vadd.f32 %v7666_v46, %v3721_v32 }
 0x49f   : > { %v5361_v60 = vpop.eup %5360  ;;  %5364 = vrcp.f32 %v7694_v35  ;;  %v7715_v45 = vadd.f32 1.0, %v5359_v16  ;;  %v3790_v10 = vand.u32 2147483648, %v7694_v35  ;;  %vm3784_vm13 = vweird.f32 %v7694_v35 }
 0x4a0   : > { %v3765_v15 = vmul.f32 %v5361_v60, %v7669_v1  ;;  %5366 = vtanh.f32 %v3584_v49  ;;  %v3735_v29 = vsub.f32 1.0, %v3734_v2  ;;  %vm3770_vm12 = vweird.f32 %v5361_v60 }
 0x4a1   : > { %5368 = vrcp.f32 %v7715_v45  ;;  %v3611_v11 = vpop.f32.mrf.mxu3  ;;  %v3791_v61 = vor.u32 1.1754944e-38, %v3790_v10  ;;  %v3805_v21 = vand.u32 2147483648, %v7715_v45  ;;  %v3711_v54 = vsel %vm7747_vm14, %v7656_v20, %v3707_v40  ;;  %vm3771_vm2 = vmor %vm3769_vm9, %vm3770_vm12 }
 0x4a2   : > { %v3766_v30 = vsub.f32 1.0, %v3765_v15  ;;  %v3612_v6 = vadd.f32 %v3611_v11, %v3598_v25  ;;  %v3788_v4 = vand.u32 2147483647, %v7694_v35  ;;  %v3736_v55 = vmul.f32 %v7692_v53, %v3735_v29 }
 0x4a3   : > { %v3585_v27 = vpop.f32.mrf.mxu1  ;;  %v3599_v33 = vpop.f32.mrf.mxu2  ;;  %v3726_v23 = vsel %vm7760_vm15, %v7666_v46, %v3722_v47  ;;  %v3716_v1 = vsel %vm7720_vm10, %v7688_v19, %v3711_v54  ;;  %v3803_v2 = vand.u32 2147483647, %v7715_v45  ;;  %vm3739_vm5 = vweird.f32 %v7692_v53 }
 0x4a4   : > { %v5363_v28 = vpop.eup %5362  ;;  %v3767_v3 = vmul.f32 %v5361_v60, %v3766_v30  ;;  %5370 = vtanh.f32 %v3612_v6  ;;  %v3586_v14 = vadd.f32 %v3585_v27, %v3572_v5  ;;  %v3600_v50 = vadd.f32 %v3599_v33, %v3443_v41 }
 0x4a5   : > { %v5365_v12 = vpop.eup %5364  ;;  %v7741_v59 = vadd.f32 1.0, %v5363_v28  ;;  %v3737_v19 = vadd.f32 %v7692_v53, %v3736_v55  ;;  %vm3799_vm7 = vweird.f32 %v7715_v45  ;;  %v3806_v32 = vor.u32 1.1754944e-38, %v3805_v21 }
 0x4a6   : > { %v5367_v24 = vpop.eup %5366  ;;  %v3780_v34 = vmul.f32 %v5365_v12, %v7694_v35  ;;  %v3768_v44 = vadd.f32 %v5361_v60, %v3767_v3  ;;  %vm3785_vm3 = vweird.f32 %v5365_v12  ;;  %vm3789_vm9 = vcmp.eq.f32.partialorder %v3788_v4, 8.507059e+37 }
 0x4a7   : > { %v5369_v62 = vpop.eup %5368  ;;  %5372 = vrcp.f32 %v7741_v59  ;;  %v3908_v20 = vmul.f32 %v5367_v24, %v3701_v31  ;;  %vm3786_vm6 = vmor %vm3784_vm13, %vm3785_vm3  ;;  %v3731_v35 = vsel %vm7766_vm0, %v7690_v37, %v3726_v23  ;;  %vm3804_vm10 = vcmp.eq.f32.partialorder %v3803_v2, 8.507059e+37  ;;  %v8858_v24 = vld [vmem:[#allocation81_spill] sm:$0xff] }
 0x4a8   : > { %v3781_v57 = vsub.f32 1.0, %v3780_v34  ;;  %v3795_v48 = vmul.f32 %v5369_v62, %v7715_v45  ;;  %v3772_v22 = vsel %vm3771_vm2, %v5361_v60, %v3768_v44  ;;  %5374 = vtanh.f32 %v3586_v14 }
 0x4a9   : > { %v3777_v49 = vsel %vm7733_vm11, %v3776_v7, %v3772_v22  ;;  %v3613_v56 = vpop.f32.mrf.mxu3  ;;  %vm3800_vm8 = vweird.f32 %v5369_v62  ;;  %vm7812_vm11 = vmor %vm3738_vm1, %vm3739_vm5  ;;  %v3820_v52 = vand.u32 2147483648, %v7741_v59  ;;  %vm3814_vm14 = vweird.f32 %v7741_v59 }
 0x4aa   : > { %v3782_v16 = vmul.f32 %v5365_v12, %v3781_v57  ;;  %v3796_v38 = vsub.f32 1.0, %v3795_v48  ;;  %v3904_v0 = vmul.f32 %v3777_v49, %v7474_v42  ;;  %v5371_v46 = vpop.eup %5370  ;;  %v3614_v63 = vadd.f32 %v3613_v56, %v3600_v50  ;;  %vm3801_vm12 = vmor %vm3799_vm7, %vm3800_vm8  ;;  %v8859_v57 = vld [vmem:[#allocation83_spill] sm:$0xff] }
 0x4ab   : > { %v3909_v58 = vmul.f32 %v5371_v46, %v3716_v1  ;;  %v3744_v42 = vand.u32 2147483648, %v7658_v9  ;;  %v3741_v37 = vsel %vm7812_vm11, %v7692_v53, %v3737_v19  ;;  %v3818_v9 = vand.u32 2147483647, %v7741_v59 }
 0x4ac   : > { %v3797_v17 = vmul.f32 %v5369_v62, %v3796_v38  ;;  %v7796_v41 = vadd.f32 %v3908_v20, %v3904_v0  ;;  %v3783_v15 = vadd.f32 %v5365_v12, %v3782_v16  ;;  %5376 = vtanh.f32 %v3614_v63 }
 0x4ad   : > { %v5373_v43 = vpop.eup %5372  ;;  %v3745_v6 = vor.u32 1.1754944e-38, %v3744_v42  ;;  %v3821_v8 = vor.u32 1.1754944e-38, %v3820_v52  ;;  %v3436_v34 = vunpack.c.l.bf16 %v8858_v24  ;;  %vm3819_vm0 = vcmp.eq.f32.partialorder %v3818_v9, 8.507059e+37 }
 0x4ae   : > { %v3810_v10 = vmul.f32 %v5373_v43, %v7741_v59  ;;  %3928 = vst [vmem:[#allocation3] sm:$0xff] %v7796_v41  ;;  %v3787_v31 = vsel %vm3786_vm6, %v5365_v12, %v3783_v15  ;;  %v5375_v25 = vpop.eup %5374  ;;  %v3798_v7 = vadd.f32 %v5369_v62, %v3797_v17  ;;  %vm3815_vm13 = vweird.f32 %v5373_v43 }
 0x4af   : > { %v3792_v30 = vsel %vm3789_vm9, %v3791_v61, %v3787_v31  ;;  %v3910_v29 = vmul.f32 %v5375_v25, %v3731_v35  ;;  %v3746_v12 = vsel %vm7789_vm4, %v3745_v6, %v3741_v37  ;;  %vm3816_vm15 = vmor %vm3814_vm14, %vm3815_vm13  ;;  %v3437_v20 = vunpack.c.h.bf16 %v8858_v24 }
 0x4b0   : > { %v3811_v40 = vsub.f32 1.0, %v3810_v10  ;;  %v3905_v36 = vmul.f32 %v3792_v30, %v7499_v39  ;;  %v3802_v5 = vsel %vm3801_vm12, %v5369_v62, %v3798_v7  ;;  %v3444_v48 = vunpack.c.l.bf16 %v8859_v57 }
 0x4b1   : > { %v3807_v45 = vsel %vm3804_vm10, %v3806_v32, %v3802_v5  ;;  %v3445_v56 = vunpack.c.h.bf16 %v8859_v57 }
 0x4b2   : > { %v3812_v28 = vmul.f32 %v5373_v43, %v3811_v40  ;;  %v7824_v3 = vadd.f32 %v3909_v58, %v3905_v36  ;;  %v5377_v47 = vpop.eup %5376  ;;  %v3906_v39 = vmul.f32 %v3807_v45, %v7505_v51 }
 0x4b3   : > { %v3911_v61 = vmul.f32 %v5377_v47, %v3746_v12 }
 0x4b4   : > { %3929 = vst [vmem:[#allocation3 + $0x18] sm:$0xff] %v7824_v3  ;;  %v3813_v53 = vadd.f32 %v5373_v43, %v3812_v28  ;;  %v7831_v14 = vadd.f32 %v3910_v29, %v3906_v39 }
 0x4b5   : > { %v3625_v27 = vpop.f32.mrf.mxu0 }
 0x4b6   : > { %v3817_v21 = vsel %vm3816_vm15, %v5373_v43, %v3813_v53  ;;  %3930 = vst [vmem:[#allocation3 + $0x8] sm:$0xff] %v7831_v14  ;;  %v3626_v44 = vadd.f32 %v3625_v27, %v3436_v34 }
 0x4b7   : > { %v3822_v51 = vsel %vm3819_vm0, %v3821_v8, %v3817_v21 }
 0x4b8   : > { %v3907_v54 = vmul.f32 %v3822_v51, %v7509_v18 }
 0x4ba   : > { %v7836_v33 = vadd.f32 %v3911_v61, %v3907_v54 }
 0x4bb   : > { %v3639_v26 = vpop.f32.mrf.mxu1  ;;  %v3653_v59 = vpop.f32.mrf.mxu2 }
 0x4bc   : > { %v3640_v13 = vadd.f32 %v3639_v26, %v3626_v44  ;;  %3931 = vst [vmem:[#allocation3 + $0x10] sm:$0xff] %v7836_v33  ;;  %v3654_v55 = vadd.f32 %v3653_v59, %v3437_v20 }
 0x4bd   : > { %v3627_v4 = vpop.f32.mrf.mxu0 }
 0x4be   : > { %v4883_v62 = vmul.f32 -1.442695, %v3640_v13  ;;  %v3628_v23 = vadd.f32 %v3627_v4, %v3444_v48 }
 0x4c0   : > { %5378 = vpow2.f32 %v4883_v62 }
 0x4c1   : > { %v3667_v22 = vpop.f32.mrf.mxu3 }
 0x4c2   : > { %v3668_v49 = vadd.f32 %v3667_v22, %v3654_v55 }
 0x4c3   : > { %v3641_v1 = vpop.f32.mrf.mxu1  ;;  %v3655_v16 = vpop.f32.mrf.mxu2 }
 0x4c4   : > { %v4884_v18 = vmul.f32 -1.442695, %v3668_v49  ;;  %v3642_v50 = vadd.f32 %v3641_v1, %v3628_v23  ;;  %v3656_v46 = vadd.f32 %v3655_v16, %v3445_v56 }
 0x4c6   : > { %v5379_v38 = vpop.eup %5378  ;;  %5380 = vpow2.f32 %v4884_v18  ;;  %v4885_v0 = vmul.f32 -1.442695, %v3642_v50 }
 0x4c7   : > { %v3840_v60 = vadd.f32 1.0, %v5379_v38 }
 0x4c8   : > { %5382 = vpow2.f32 %v4885_v0 }
 0x4c9   : > { %5384 = vrcp.f32 %v3840_v60  ;;  %v3669_v2 = vpop.f32.mrf.mxu3  ;;  %v3855_v31 = vand.u32 2147483648, %v3840_v60  ;;  %v3853_v35 = vand.u32 2147483647, %v3840_v60  ;;  %vm3849_vm2 = vweird.f32 %v3840_v60 }
 0x4ca   : > { %v3670_v63 = vadd.f32 %v3669_v2, %v3656_v46 }
 0x4cb   : > { %v3856_v29 = vor.u32 1.1754944e-38, %v3855_v31  ;;  %vm3854_vm4 = vcmp.eq.f32.partialorder %v3853_v35, 8.507059e+37 }
 0x4cc   : > { %v5381_v19 = vpop.eup %5380  ;;  %v4886_v17 = vmul.f32 -1.442695, %v3670_v63 }
 0x4cd   : > { %v3841_v15 = vadd.f32 1.0, %v5381_v19 }
 0x4ce   : > { %v5383_v58 = vpop.eup %5382  ;;  %5386 = vpow2.f32 %v4886_v17 }
 0x4cf   : > { %v5385_v43 = vpop.eup %5384  ;;  %5388 = vrcp.f32 %v3841_v15  ;;  %v3842_v32 = vadd.f32 1.0, %v5383_v58  ;;  %v3870_v9 = vand.u32 2147483648, %v3841_v15  ;;  %v3868_v47 = vand.u32 2147483647, %v3841_v15 }
 0x4d0   : > { %v3845_v42 = vmul.f32 %v5385_v43, %v3840_v60  ;;  %vm3850_vm1 = vweird.f32 %v5385_v43  ;;  %vm3864_vm6 = vweird.f32 %v3841_v15 }
 0x4d1   : > { %5390 = vrcp.f32 %v3842_v32  ;;  %vm3851_vm3 = vmor %vm3849_vm2, %vm3850_vm1  ;;  %v3885_v53 = vand.u32 2147483648, %v3842_v32  ;;  %v3871_v8 = vor.u32 1.1754944e-38, %v3870_v9  ;;  %v3883_v24 = vand.u32 2147483647, %v3842_v32 }
 0x4d2   : > { %v3846_v10 = vsub.f32 1.0, %v3845_v42  ;;  %5392 = vtanh.f32 %v7796_v41  ;;  %vm3869_vm9 = vcmp.eq.f32.partialorder %v3868_v47, 8.507059e+37  ;;  %vm3879_vm10 = vweird.f32 %v3842_v32 }
 0x4d3   : > { %vm3884_vm12 = vcmp.eq.f32.partialorder %v3883_v24, 8.507059e+37 }
 0x4d4   : > { %v5387_v25 = vpop.eup %5386  ;;  %v3847_v30 = vmul.f32 %v5385_v43, %v3846_v10 }
 0x4d5   : > { %v5389_v7 = vpop.eup %5388  ;;  %v3843_v11 = vadd.f32 1.0, %v5387_v25 }
 0x4d6   : > { %v3848_v40 = vadd.f32 %v5385_v43, %v3847_v30  ;;  %v3860_v36 = vmul.f32 %v5389_v7, %v3841_v15  ;;  %vm3865_vm5 = vweird.f32 %v5389_v7 }
 0x4d7   : > { %5394 = vrcp.f32 %v3843_v11  ;;  %v5391_v37 = vpop.eup %5390  ;;  %vm3866_vm7 = vmor %vm3864_vm6, %vm3865_vm5  ;;  %v3900_v62 = vand.u32 2147483648, %v3843_v11  ;;  %v3898_v57 = vand.u32 2147483647, %v3843_v11  ;;  %vm3894_vm14 = vweird.f32 %v3843_v11 }
 0x4d8   : > { %v3852_v52 = vsel %vm3851_vm3, %v5385_v43, %v3848_v40  ;;  %v3861_v5 = vsub.f32 1.0, %v3860_v36  ;;  %v5393_v6 = vpop.eup %5392  ;;  %5396 = vtanh.f32 %v7824_v3  ;;  %v3875_v28 = vmul.f32 %v5391_v37, %v3842_v32 }
 0x4d9   : > { %v3857_v41 = vsel %vm3854_vm4, %v3856_v29, %v3852_v52  ;;  %5398 = vtanh.f32 %v7831_v14  ;;  %vm3880_vm8 = vweird.f32 %v5391_v37  ;;  %v3886_v14 = vor.u32 1.1754944e-38, %v3885_v53 }
 0x4da   : > { %v7844_v45 = vmul.f32 %v5393_v6, %v3857_v41  ;;  %v3862_v27 = vmul.f32 %v5389_v7, %v3861_v5  ;;  %v3876_v39 = vsub.f32 1.0, %v3875_v28  ;;  %vm3881_vm11 = vmor %vm3879_vm10, %vm3880_vm8  ;;  %5400 = vtanh.f32 %v7836_v33 }
 0x4db   : > { %v3901_v23 = vor.u32 1.1754944e-38, %v3900_v62  ;;  %vm3899_vm0 = vcmp.eq.f32.partialorder %v3898_v57, 8.507059e+37 }
 0x4dc   : > { %3924 = vst [vmem:[#allocation2 + $0x10] sm:$0xff] %v7844_v45  ;;  %v3863_v12 = vadd.f32 %v5389_v7, %v3862_v27  ;;  %v3877_v3 = vmul.f32 %v5391_v37, %v3876_v39 }
 0x4dd   : > { %v5395_v61 = vpop.eup %5394 }
 0x4de   : > { %v3867_v34 = vsel %vm3866_vm7, %v5389_v7, %v3863_v12  ;;  %v3890_v21 = vmul.f32 %v5395_v61, %v3843_v11  ;;  %v5397_v51 = vpop.eup %5396  ;;  %v3878_v54 = vadd.f32 %v5391_v37, %v3877_v3  ;;  %vm3895_vm13 = vweird.f32 %v5395_v61 }
 0x4df   : > { %v3872_v44 = vsel %vm3869_vm9, %v3871_v8, %v3867_v34  ;;  %v5399_v20 = vpop.eup %5398  ;;  %vm3896_vm15 = vmor %vm3894_vm14, %vm3895_vm13 }
 0x4e0   : > { %v7848_v26 = vmul.f32 %v5397_v51, %v3872_v44  ;;  %v3891_v59 = vsub.f32 1.0, %v3890_v21  ;;  %v3882_v13 = vsel %vm3881_vm11, %v5391_v37, %v3878_v54  ;;  %v5401_v1 = vpop.eup %5400 }
 0x4e1   : > { %v3887_v4 = vsel %vm3884_vm12, %v3886_v14, %v3882_v13 }
 0x4e2   : > { %3925 = vst [vmem:[#allocation2] sm:$0xff] %v7848_v26  ;;  %v3892_v55 = vmul.f32 %v5395_v61, %v3891_v59  ;;  %v3922_v48 = vmul.f32 %v5399_v20, %v3887_v4 }
 0x4e4   : > { %v3893_v22 = vadd.f32 %v5395_v61, %v3892_v55  ;;  %3926 = vst [vmem:[#allocation2 + $0x18] sm:$0xff] %v3922_v48 }
 0x4e6   : > { %v3897_v49 = vsel %vm3896_vm15, %v5395_v61, %v3893_v22  ;;  %3935 = sbr.rel (%p4887_p8) target bundleno = 1430 (0x596), region = 64 }
 0x4e7   : > { %v3902_v33 = vsel %vm3899_vm0, %v3901_v23, %v3897_v49 }
 0x4e8   : > { %v3923_v18 = vmul.f32 %v5401_v1, %v3902_v33 }
 0x4ea   : > { %3927 = vst [vmem:[#allocation2 + $0x8] sm:$0xff] %v3923_v18 }
 0x4eb   : > { %v5115_v50 = vld [vmem:[%s7921_s6 + $0x38] sm:$0xff]  ;;  %v5114_v38 = vld [vmem:[%s7921_s6 + $0x30] sm:$0xff]  ;;  %v5113_v56 = vld [vmem:[%s7921_s6 + $0x28] sm:$0xff]  ;;  %v3936_v10 = vpack.c.bf16 %v3922_v48, %v7844_v45  ;;  %v3937_v31 = vpack.c.bf16 %v3923_v18, %v7848_v26  ;;  %vm4098_vm1 = vcmask 39936  }
 0x4ec   : > { %v5123_v16 = vld [vmem:[%s7921_s6 + $0x78] sm:$0xff]  ;;  %4070 = vmatpush.bf16.msra.mxu0 %v5115_v50  ;;  %v5122_v0 = vld [vmem:[%s7921_s6 + $0x70] sm:$0xff]  ;;  %v5121_v60 = vld [vmem:[%s7921_s6 + $0x68] sm:$0xff] }
 0x4ed   : > { %4084 = vmatpush.bf16.msra.mxu1 %v5123_v16  ;;  %v5112_v46 = vld [vmem:[%s7921_s6 + $0x20] sm:$0xff]  ;;  %v5111_v63 = vld [vmem:[%s7921_s6 + $0x18] sm:$0xff]  ;;  %v5110_v17 = vld [vmem:[%s7921_s6 + $0x10] sm:$0xff] }
 0x4ee   : > { %v5120_v2 = vld [vmem:[%s7921_s6 + $0x60] sm:$0xff]  ;;  %v5119_v19 = vld [vmem:[%s7921_s6 + $0x58] sm:$0xff]  ;;  %v5118_v15 = vld [vmem:[%s7921_s6 + $0x50] sm:$0xff] }
 0x4ef   : > { %v5109_v58 = vld [vmem:[%s7921_s6 + $0x8] sm:$0xff]  ;;  %v5108_v42 = vld [vmem:[%s7921_s6] sm:$0xff] }
 0x4f0   : > { %4071 = vmatpush.bf16.msra.mxu0 %v5114_v38  ;;  %v5117_v43 = vld [vmem:[%s7921_s6 + $0x48] sm:$0xff]  ;;  %v5116_v32 = vld [vmem:[%s7921_s6 + $0x40] sm:$0xff] }
 0x4f1   : > { %4085 = vmatpush.bf16.msra.mxu1 %v5122_v0  ;;  %v5402_v25 = vld [vmem:[%s7922_s7] ss:$0 sm:$0xff] }
 0x4f4   : > { %4072 = vmatpush.bf16.msra.mxu0 %v5113_v56 }
 0x4f5   : > { %4086 = vmatpush.bf16.msra.mxu1 %v5121_v60 }
 0x4f8   : > { %4073 = vmatpush.bf16.msra.mxu0 %v5112_v46 }
 0x4f9   : > { %4087 = vmatpush.bf16.msra.mxu1 %v5120_v2 }
 0x4fc   : > { %4074 = vmatpush.bf16.msra.mxu0 %v5111_v63 }
 0x4fd   : > { %4088 = vmatpush.bf16.msra.mxu1 %v5119_v19 }
 0x500   : > { %4075 = vmatpush.bf16.msra.mxu0 %v5110_v17 }
 0x501   : > { %4089 = vmatpush.bf16.msra.mxu1 %v5118_v15 }
 0x504   : > { %4076 = vmatpush.bf16.msra.mxu0 %v5109_v58 }
 0x505   : > { %4090 = vmatpush.bf16.msra.mxu1 %v5117_v43 }
 0x508   : > { %4077 = vmatpush.bf16.msra.mxu0 %v5108_v42 }
 0x509   : > { %4091 = vmatpush.bf16.msra.mxu1 %v5116_v32 }
 0x50b   : > { %4078 = vmatmul.bf16.vlgmr.msra.gmra.mxu0 %v3936_v10 }
 0x50c   : > { %4092 = vmatmul.bf16.vlgmr.msra.gmra.mxu1 %v3937_v31 }
 0x588   : > { %v4079_v30 = vpop.f32.mrf.mxu0 }
 0x589   : > { %v4093_v35 = vpop.f32.mrf.mxu1  ;;  %v4080_v7 = vadd.f32 %v5402_v25, %v4079_v30 }
 0x58b   : > { %v4094_v11 = vadd.f32 %v4093_v35, %v4080_v7 }
 0x58d   : > { %4099 = vst.msk [vmem:[%s7923_s8] sm:$0xff] %vm4098_vm1, %v4094_v11 }
 0x590   : > { %v4081_v40 = vpop.f32.mrf.mxu0 }
 0x591   : > { %v4082_v36 = vadd.f32 %v5402_v25, %v4081_v40  ;;  %v4095_v29 = vpop.f32.mrf.mxu1 }
 0x593   : > { %v4096_v37 = vadd.f32 %v4095_v29, %v4082_v36 }
 0x595   : > { %4100 = vst.msk [vmem:[%s7923_s8 + $0x8] sm:$0xff] %vm4098_vm1, %v4096_v37 }
 0x596 PF: > { %s19_s27 = sadd.s32 1, %s5443_s27  }
 0x597   : > { %p16_p9 = scmp.ge.s32.totalorder %s19_s27, 4  }
 0x599   :  { %18 = sbr.rel (!%p16_p9) target bundleno = 1 (0x1), region = 98 }
 0x59e   :  { %4112 = vsyncpa [#allocation6], 1 }
 0x59f   :  { %4114 = vsyncpa [#allocation6 + $0x1], 1 }

</bundles_post_ra>
